<compile_context>
chip_gen: v7x
topology: tpu7x:2x2x1
jax: 0.10.0
libtpu: 0.0.40
codegen_flags: <defaults>
</compile_context>

<pallas_src>
import functools

import jax
import jax.numpy as jnp
from jax.experimental import pallas as pl
from jax.experimental.pallas import tpu as pltpu

EPS = 1e-5
NUM_HIDDEN = 5            # hidden_1 .. hidden_5
NUM_BN = NUM_HIDDEN + 1   # input-layer BN + 5 hidden BNs
LANE = 128


def _round_up(n, m=LANE):
    return ((n + m - 1) // m) * m


def _pad2(a, rows, cols):
    return jnp.pad(a, ((0, rows - a.shape[0]), (0, cols - a.shape[1])))


def _batchnorm_train(y, gamma, beta, inv_b):
    """Training-mode BN, scale/shift form, one read of y for both stats.

    sum / sumsq scaled by a single precomputed 1/B constant; rsqrt goes to
    the EUP slot.  Biased variance (matches BatchNorm1d training mode).
    """
    s = jnp.sum(y, axis=0, keepdims=True)
    sq = jnp.sum(y * y, axis=0, keepdims=True)
    mean = s * inv_b
    var = jnp.maximum(sq * inv_b - mean * mean, 0.0)   # clamp fp noise
    scale = gamma * jax.lax.rsqrt(var + EPS)           # rsqrt -> EUP
    shift = beta - mean * scale
    return y * scale + shift                           # 1 mul + 1 add / elem


def deepnoma_kernel(x_ref, w_in_ref, w_hid_ref, w_out_ref, gb_ref, b_out_ref,
                    out_ref, *, inv_b):
    # x_ref    : (B, P_in)        bf16
    # w_in_ref : (P_in, P_h)      bf16
    # w_hid_ref: (5, P_h, P_h)    bf16
    # w_out_ref: (P_h, P_out)     bf16
    # gb_ref   : (12, P_h)        f32   rows 0..5 gamma, 6..11 beta
    # b_out_ref: (1, P_out)       f32
    # Biases of Linears feeding BN are omitted (exactly cancelled by BN).

    # Layer 0: Linear + BN (no ReLU in the PyTorch forward for ind == 0).
    y = jnp.dot(x_ref[...], w_in_ref[...], preferred_element_type=jnp.float32)
    y = _batchnorm_train(y, gb_ref[pl.ds(0, 1), :],
                         gb_ref[pl.ds(NUM_BN, 1), :], inv_b)

    for i in range(NUM_HIDDEN):
        y = jnp.dot(y.astype(jnp.bfloat16), w_hid_ref[i],
                    preferred_element_type=jnp.float32)
        y = _batchnorm_train(y, gb_ref[pl.ds(1 + i, 1), :],
                             gb_ref[pl.ds(NUM_BN + 1 + i, 1), :], inv_b)
        y = jnp.maximum(y, 0.0)
        # TODO(synk): Dropout(p=0.1) treated as identity (eval semantics); a
        # training-mode stochastic mask would need pltpu.prng_seed +
        # pltpu.prng_random_bits in-kernel.

    out_ref[...] = (jnp.dot(y.astype(jnp.bfloat16), w_out_ref[...],
                            preferred_element_type=jnp.float32)
                    + b_out_ref[...])


def pack_params(params):
    """Pad/pack params into lane-dense bf16 slabs (one-time cost).

    w_in  -> (P_in, P_h) bf16; hidden weights -> (5, P_h, P_h) bf16;
    w_out -> (P_h, P_out) bf16; gamma/beta -> (12, P_h) f32; b_out f32.
    b_in / b_hid are intentionally dropped: BN's mean subtraction cancels
    them exactly.
    """
    il, hl = params["w_in"].shape
    num_labels = params["w_out"].shape[1]
    p_in, p_h, p_out = _round_up(il), _round_up(hl), _round_up(num_labels)

    w_in = _pad2(params["w_in"], p_in, p_h).astype(jnp.bfloat16)
    w_hid = jnp.stack([_pad2(params["w_hid"][i], p_h, p_h)
                       for i in range(NUM_HIDDEN)]).astype(jnp.bfloat16)
    w_out = _pad2(params["w_out"], p_h, p_out).astype(jnp.bfloat16)

    gb = jnp.concatenate([_pad2(params["gamma"], NUM_BN, p_h),
                          _pad2(params["beta"], NUM_BN, p_h)],
                         axis=0)                                  # (12, P_h)
    b_out = _pad2(params["b_out"], 1, p_out)                      # (1, P_out)

    return {"w_in": w_in, "w_hid": w_hid, "w_out": w_out,
            "gb": gb, "b_out": b_out,
            "P_in": p_in, "P_h": p_h, "P_out": p_out,
            "num_labels": num_labels}


def deepnoma_forward(x, packed):
    B = x.shape[0]
    p_in, p_h, p_out = packed["P_in"], packed["P_h"], packed["P_out"]

    # Lane-pad features and cast to bf16 for the MXU; batch stays whole
    # (training-mode BN needs full-batch statistics).
    x_p = _pad2(x, B, p_in).astype(jnp.bfloat16)

    # Explicit VMEM budget for the whole-batch-resident design.
    est = (x_p.nbytes + B * p_out * 4
           + packed["w_in"].nbytes + packed["w_hid"].nbytes
           + packed["w_out"].nbytes + packed["gb"].nbytes
           + packed["b_out"].nbytes
           + 4 * B * p_h * 4)                 # live f32 activations headroom
    vmem_limit = int(min(max(2 * est, 16 * 1024 * 1024), 48 * 1024 * 1024))
    if 2 * est > 48 * 1024 * 1024:
        raise ValueError(
            "Batch too large for whole-batch-in-VMEM DeepNOMA kernel; "
            "see TODO(synk) about batch-tiled two-pass BN.")

    vmem = pl.BlockSpec(memory_space=pltpu.MemorySpace.VMEM)
    kernel = functools.partial(deepnoma_kernel, inv_b=1.0 / B)
    out = pl.pallas_call(
        kernel,
        out_shape=jax.ShapeDtypeStruct((B, p_out), jnp.float32),  # lane-dense
        in_specs=[vmem] * 6,
        out_specs=vmem,
        compiler_params=pltpu.CompilerParams(vmem_limit_bytes=vmem_limit),
    )(x_p, packed["w_in"], packed["w_hid"], packed["w_out"],
      packed["gb"], packed["b_out"])
    return out[:, :packed["num_labels"]]


def deepnoma_mirror(x, packed):
    """Plain-JAX mirror of the exact kernel math (bf16 operands, f32 accum).

    Used as a tight implementation-correctness reference.
    """
    B = x.shape[0]
    inv_b = 1.0 / B
    gb = packed["gb"]
    x_p = _pad2(x, B, packed["P_in"]).astype(jnp.bfloat16)

    y = jnp.dot(x_p, packed["w_in"], preferred_element_type=jnp.float32)
    y = _batchnorm_train(y, gb[0:1], gb[NUM_BN:NUM_BN + 1], inv_b)
    for i in range(NUM_HIDDEN):
        y = jnp.dot(y.astype(jnp.bfloat16), packed["w_hid"][i],
                    preferred_element_type=jnp.float32)
        y = _batchnorm_train(y, gb[1 + i:2 + i],
                             gb[NUM_BN + 1 + i:NUM_BN + 2 + i], inv_b)
        y = jnp.maximum(y, 0.0)
    out = jnp.dot(y.astype(jnp.bfloat16), packed["w_out"],
                  preferred_element_type=jnp.float32) + packed["b_out"]
    return out[:, :packed["num_labels"]]


def deepnoma_ref(x, params):
    """Pure-JAX f32 spec reference (biases + two-pass BN, no bf16)."""
    def bn(y, g, b):
        mean = jnp.mean(y, axis=0, keepdims=True)
        var = jnp.mean((y - mean) ** 2, axis=0, keepdims=True)
        return (y - mean) * jax.lax.rsqrt(var + EPS) * g + b

    y = x @ params["w_in"] + params["b_in"]
    y = bn(y, params["gamma"][0:1], params["beta"][0:1])
    for i in range(NUM_HIDDEN):
        y = y @ params["w_hid"][i] + params["b_hid"][i]
        y = bn(y, params["gamma"][i + 1:i + 2], params["beta"][i + 1:i + 2])
        y = jnp.maximum(y, 0.0)
    return y @ params["w_out"] + params["b_out"]


def init_params(key, il, hl, num_labels):
    """Deterministic synthetic init mirroring the module's parameter set.

    PyTorch Linear(a, b) holds weight (b, a); here weights are stored
    pre-transposed as (a, b). BN gamma=1, beta=0 as in the module. b_in and
    b_hid exist for faithfulness but are dead in the forward (cancelled by BN).
    """
    keys = jax.random.split(key, 32)

    def kaiming_uniform(k, fan_in, shape):
        bound = jnp.sqrt(6.0 / fan_in)
        return jax.random.uniform(k, shape, jnp.float32, -bound, bound)

    def bias_uniform(k, fan_in, shape):
        bound = 1.0 / jnp.sqrt(fan_in)
        return jax.random.uniform(k, shape, jnp.float32, -bound, bound)

    w_in = kaiming_uniform(keys[0], il, (il, hl))
    b_in = bias_uniform(keys[1], il, (1, hl))

    w_hid = jnp.stack(
        [kaiming_uniform(keys[2 + i], hl, (hl, hl)) for i in range(NUM_HIDDEN)])
    b_hid = jnp.stack(
        [bias_uniform(keys[10 + i], hl, (hl,)) for i in range(NUM_HIDDEN)])

    w_out = kaiming_uniform(keys[20], hl, (hl, num_labels))
    b_out = bias_uniform(keys[21], hl, (1, num_labels))

    gamma = jnp.ones((NUM_BN, hl), jnp.float32)
    beta = jnp.zeros((NUM_BN, hl), jnp.float32)

    return {"w_in": w_in, "b_in": b_in,
            "w_hid": w_hid, "b_hid": b_hid,
            "w_out": w_out, "b_out": b_out,
            "gamma": gamma, "beta": beta}


if __name__ == "__main__":
    # Module-consistent shapes (il == hl since hl = input_features * 1).
    # B=256 so the MXU's M dimension is actually fed (per perf review);
    # still a tiny problem (< 1 MiB of data).
    B, IL, HL, NUM_LABELS = 256, 32, 32, 16

    key = jax.random.PRNGKey(0)
    k_x, k_p = jax.random.split(key)
    x = jax.random.normal(k_x, (B, IL), jnp.float32)
    params = init_params(k_p, IL, HL, NUM_LABELS)
    packed = pack_params(params)

    out = deepnoma_forward(x, packed)
    out = jax.block_until_ready(out)

    assert out.shape == (B, NUM_LABELS)
    assert bool(jnp.all(jnp.isfinite(out)))

    # 1) Tight check against a plain-JAX mirror of the exact kernel math
    #    (validates the Pallas implementation itself).
    mirror = deepnoma_mirror(x, packed)
    assert bool(jnp.allclose(out, mirror, atol=5e-3, rtol=5e-3))

    # 2) Fidelity check against the f32 spec reference (biases + two-pass BN).
    #    bf16 matmul operands through 7 layers give ~1% relative deviation;
    #    accept up to 5% in relative L2 norm.
    ref = deepnoma_ref(x, params)
    rel_err = jnp.linalg.norm(out - ref) / jnp.linalg.norm(ref)
    assert float(rel_err) < 5e-2

    print("KERNEL_OK")
</pallas_src>

<mosaic_0001>
module attributes {stable_mosaic.version = 11 : i64} {
  func.func @deepnoma_kernel(%arg0: memref<256x128xbf16, #tpu.memory_space<vmem>>, %arg1: memref<128x128xbf16, #tpu.memory_space<vmem>>, %arg2: memref<5x128x128xbf16, #tpu.memory_space<vmem>>, %arg3: memref<128x128xbf16, #tpu.memory_space<vmem>>, %arg4: memref<12x128xf32, #tpu.memory_space<vmem>>, %arg5: memref<1x128xf32, #tpu.memory_space<vmem>>, %arg6: memref<256x128xf32, #tpu.memory_space<vmem>>) attributes {dimension_semantics = [], scalar_prefetch = 0 : i64, scratch_operands = 0 : i64, tpu.core_type = #tpu.core_type<tc>} {
    %c0 = arith.constant 0 : index
    %c0_0 = arith.constant 0 : index
    %0 = vector.load %arg0[%c0, %c0_0] : memref<256x128xbf16, #tpu.memory_space<vmem>>, vector<256x128xbf16>
    %c0_1 = arith.constant 0 : index
    %c0_2 = arith.constant 0 : index
    %1 = vector.load %arg1[%c0_1, %c0_2] : memref<128x128xbf16, #tpu.memory_space<vmem>>, vector<128x128xbf16>
    %cst = arith.constant dense<0.000000e+00> : vector<256x128xf32>
    %2 = tpu.matmul %0, %1, %cst {dimension_numbers = #tpu.dot_dimension_numbers<[1], [0], [0], [1], [0, 0, 1, 1], [], []>} : vector<256x128xbf16>, vector<128x128xbf16>, vector<256x128xf32> -> vector<256x128xf32>
    %c0_3 = arith.constant 0 : index
    %c0_4 = arith.constant 0 : index
    %3 = vector.load %arg4[%c0_3, %c0_4] : memref<12x128xf32, #tpu.memory_space<vmem>>, vector<1x128xf32>
    %c6 = arith.constant 6 : index
    %c0_5 = arith.constant 0 : index
    %4 = vector.load %arg4[%c6, %c0_5] : memref<12x128xf32, #tpu.memory_space<vmem>>, vector<1x128xf32>
    %cst_6 = arith.constant dense<0.000000e+00> : vector<128xf32>
    %5 = vector.multi_reduction <add>, %2, %cst_6 [0] : vector<256x128xf32> to vector<128xf32>
    %6 = vector.shape_cast %5 : vector<128xf32> to vector<1x128xf32>
    %7 = arith.mulf %2, %2 : vector<256x128xf32>
    %cst_7 = arith.constant dense<0.000000e+00> : vector<128xf32>
    %8 = vector.multi_reduction <add>, %7, %cst_7 [0] : vector<256x128xf32> to vector<128xf32>
    %9 = vector.shape_cast %8 : vector<128xf32> to vector<1x128xf32>
    %cst_8 = arith.constant 3.906250e-03 : f32
    %10 = vector.broadcast %cst_8 : f32 to vector<1x128xf32>
    %11 = arith.mulf %6, %10 : vector<1x128xf32>
    %cst_9 = arith.constant 3.906250e-03 : f32
    %12 = vector.broadcast %cst_9 : f32 to vector<1x128xf32>
    %13 = arith.mulf %9, %12 : vector<1x128xf32>
    %14 = arith.mulf %11, %11 : vector<1x128xf32>
    %15 = arith.subf %13, %14 : vector<1x128xf32>
    %cst_10 = arith.constant 0.000000e+00 : f32
    %16 = vector.broadcast %cst_10 : f32 to vector<1x128xf32>
    %17 = arith.maximumf %15, %16 : vector<1x128xf32>
    %cst_11 = arith.constant 9.99999974E-6 : f32
    %18 = vector.broadcast %cst_11 : f32 to vector<1x128xf32>
    %19 = arith.addf %17, %18 : vector<1x128xf32>
    %20 = math.rsqrt %19 : vector<1x128xf32>
    %21 = arith.mulf %3, %20 : vector<1x128xf32>
    %22 = arith.mulf %11, %21 : vector<1x128xf32>
    %23 = arith.subf %4, %22 : vector<1x128xf32>
    %24 = vector.broadcast %21 : vector<1x128xf32> to vector<256x128xf32>
    %25 = arith.mulf %2, %24 : vector<256x128xf32>
    %26 = vector.broadcast %23 : vector<1x128xf32> to vector<256x128xf32>
    %27 = arith.addf %25, %26 : vector<256x128xf32>
    %28 = arith.truncf %27 : vector<256x128xf32> to vector<256x128xbf16>
    %c0_12 = arith.constant 0 : index
    %c0_13 = arith.constant 0 : index
    %c0_14 = arith.constant 0 : index
    %29 = vector.load %arg2[%c0_12, %c0_13, %c0_14] : memref<5x128x128xbf16, #tpu.memory_space<vmem>>, vector<1x128x128xbf16>
    %30 = vector.shape_cast %29 : vector<1x128x128xbf16> to vector<128x128xbf16>
    %cst_15 = arith.constant dense<0.000000e+00> : vector<256x128xf32>
    %31 = tpu.matmul %28, %30, %cst_15 {dimension_numbers = #tpu.dot_dimension_numbers<[1], [0], [0], [1], [0, 0, 1, 1], [], []>} : vector<256x128xbf16>, vector<128x128xbf16>, vector<256x128xf32> -> vector<256x128xf32>
    %c1 = arith.constant 1 : index
    %c0_16 = arith.constant 0 : index
    %32 = vector.load %arg4[%c1, %c0_16] : memref<12x128xf32, #tpu.memory_space<vmem>>, vector<1x128xf32>
    %c7 = arith.constant 7 : index
    %c0_17 = arith.constant 0 : index
    %33 = vector.load %arg4[%c7, %c0_17] : memref<12x128xf32, #tpu.memory_space<vmem>>, vector<1x128xf32>
    %cst_18 = arith.constant dense<0.000000e+00> : vector<128xf32>
    %34 = vector.multi_reduction <add>, %31, %cst_18 [0] : vector<256x128xf32> to vector<128xf32>
    %35 = vector.shape_cast %34 : vector<128xf32> to vector<1x128xf32>
    %36 = arith.mulf %31, %31 : vector<256x128xf32>
    %cst_19 = arith.constant dense<0.000000e+00> : vector<128xf32>
    %37 = vector.multi_reduction <add>, %36, %cst_19 [0] : vector<256x128xf32> to vector<128xf32>
    %38 = vector.shape_cast %37 : vector<128xf32> to vector<1x128xf32>
    %cst_20 = arith.constant 3.906250e-03 : f32
    %39 = vector.broadcast %cst_20 : f32 to vector<1x128xf32>
    %40 = arith.mulf %35, %39 : vector<1x128xf32>
    %cst_21 = arith.constant 3.906250e-03 : f32
    %41 = vector.broadcast %cst_21 : f32 to vector<1x128xf32>
    %42 = arith.mulf %38, %41 : vector<1x128xf32>
    %43 = arith.mulf %40, %40 : vector<1x128xf32>
    %44 = arith.subf %42, %43 : vector<1x128xf32>
    %cst_22 = arith.constant 0.000000e+00 : f32
    %45 = vector.broadcast %cst_22 : f32 to vector<1x128xf32>
    %46 = arith.maximumf %44, %45 : vector<1x128xf32>
    %cst_23 = arith.constant 9.99999974E-6 : f32
    %47 = vector.broadcast %cst_23 : f32 to vector<1x128xf32>
    %48 = arith.addf %46, %47 : vector<1x128xf32>
    %49 = math.rsqrt %48 : vector<1x128xf32>
    %50 = arith.mulf %32, %49 : vector<1x128xf32>
    %51 = arith.mulf %40, %50 : vector<1x128xf32>
    %52 = arith.subf %33, %51 : vector<1x128xf32>
    %53 = vector.broadcast %50 : vector<1x128xf32> to vector<256x128xf32>
    %54 = arith.mulf %31, %53 : vector<256x128xf32>
    %55 = vector.broadcast %52 : vector<1x128xf32> to vector<256x128xf32>
    %56 = arith.addf %54, %55 : vector<256x128xf32>
    %cst_24 = arith.constant 0.000000e+00 : f32
    %57 = vector.broadcast %cst_24 : f32 to vector<256x128xf32>
    %58 = arith.maximumf %56, %57 : vector<256x128xf32>
    %59 = arith.truncf %58 : vector<256x128xf32> to vector<256x128xbf16>
    %c1_25 = arith.constant 1 : index
    %c0_26 = arith.constant 0 : index
    %c0_27 = arith.constant 0 : index
    %60 = vector.load %arg2[%c1_25, %c0_26, %c0_27] : memref<5x128x128xbf16, #tpu.memory_space<vmem>>, vector<1x128x128xbf16>
    %61 = vector.shape_cast %60 : vector<1x128x128xbf16> to vector<128x128xbf16>
    %cst_28 = arith.constant dense<0.000000e+00> : vector<256x128xf32>
    %62 = tpu.matmul %59, %61, %cst_28 {dimension_numbers = #tpu.dot_dimension_numbers<[1], [0], [0], [1], [0, 0, 1, 1], [], []>} : vector<256x128xbf16>, vector<128x128xbf16>, vector<256x128xf32> -> vector<256x128xf32>
    %c2 = arith.constant 2 : index
    %c0_29 = arith.constant 0 : index
    %63 = vector.load %arg4[%c2, %c0_29] : memref<12x128xf32, #tpu.memory_space<vmem>>, vector<1x128xf32>
    %c8 = arith.constant 8 : index
    %c0_30 = arith.constant 0 : index
    %64 = vector.load %arg4[%c8, %c0_30] : memref<12x128xf32, #tpu.memory_space<vmem>>, vector<1x128xf32>
    %cst_31 = arith.constant dense<0.000000e+00> : vector<128xf32>
    %65 = vector.multi_reduction <add>, %62, %cst_31 [0] : vector<256x128xf32> to vector<128xf32>
    %66 = vector.shape_cast %65 : vector<128xf32> to vector<1x128xf32>
    %67 = arith.mulf %62, %62 : vector<256x128xf32>
    %cst_32 = arith.constant dense<0.000000e+00> : vector<128xf32>
    %68 = vector.multi_reduction <add>, %67, %cst_32 [0] : vector<256x128xf32> to vector<128xf32>
    %69 = vector.shape_cast %68 : vector<128xf32> to vector<1x128xf32>
    %cst_33 = arith.constant 3.906250e-03 : f32
    %70 = vector.broadcast %cst_33 : f32 to vector<1x128xf32>
    %71 = arith.mulf %66, %70 : vector<1x128xf32>
    %cst_34 = arith.constant 3.906250e-03 : f32
    %72 = vector.broadcast %cst_34 : f32 to vector<1x128xf32>
    %73 = arith.mulf %69, %72 : vector<1x128xf32>
    %74 = arith.mulf %71, %71 : vector<1x128xf32>
    %75 = arith.subf %73, %74 : vector<1x128xf32>
    %cst_35 = arith.constant 0.000000e+00 : f32
    %76 = vector.broadcast %cst_35 : f32 to vector<1x128xf32>
    %77 = arith.maximumf %75, %76 : vector<1x128xf32>
    %cst_36 = arith.constant 9.99999974E-6 : f32
    %78 = vector.broadcast %cst_36 : f32 to vector<1x128xf32>
    %79 = arith.addf %77, %78 : vector<1x128xf32>
    %80 = math.rsqrt %79 : vector<1x128xf32>
    %81 = arith.mulf %63, %80 : vector<1x128xf32>
    %82 = arith.mulf %71, %81 : vector<1x128xf32>
    %83 = arith.subf %64, %82 : vector<1x128xf32>
    %84 = vector.broadcast %81 : vector<1x128xf32> to vector<256x128xf32>
    %85 = arith.mulf %62, %84 : vector<256x128xf32>
    %86 = vector.broadcast %83 : vector<1x128xf32> to vector<256x128xf32>
    %87 = arith.addf %85, %86 : vector<256x128xf32>
    %cst_37 = arith.constant 0.000000e+00 : f32
    %88 = vector.broadcast %cst_37 : f32 to vector<256x128xf32>
    %89 = arith.maximumf %87, %88 : vector<256x128xf32>
    %90 = arith.truncf %89 : vector<256x128xf32> to vector<256x128xbf16>
    %c2_38 = arith.constant 2 : index
    %c0_39 = arith.constant 0 : index
    %c0_40 = arith.constant 0 : index
    %91 = vector.load %arg2[%c2_38, %c0_39, %c0_40] : memref<5x128x128xbf16, #tpu.memory_space<vmem>>, vector<1x128x128xbf16>
    %92 = vector.shape_cast %91 : vector<1x128x128xbf16> to vector<128x128xbf16>
    %cst_41 = arith.constant dense<0.000000e+00> : vector<256x128xf32>
    %93 = tpu.matmul %90, %92, %cst_41 {dimension_numbers = #tpu.dot_dimension_numbers<[1], [0], [0], [1], [0, 0, 1, 1], [], []>} : vector<256x128xbf16>, vector<128x128xbf16>, vector<256x128xf32> -> vector<256x128xf32>
    %c3 = arith.constant 3 : index
    %c0_42 = arith.constant 0 : index
    %94 = vector.load %arg4[%c3, %c0_42] : memref<12x128xf32, #tpu.memory_space<vmem>>, vector<1x128xf32>
    %c9 = arith.constant 9 : index
    %c0_43 = arith.constant 0 : index
    %95 = vector.load %arg4[%c9, %c0_43] : memref<12x128xf32, #tpu.memory_space<vmem>>, vector<1x128xf32>
    %cst_44 = arith.constant dense<0.000000e+00> : vector<128xf32>
    %96 = vector.multi_reduction <add>, %93, %cst_44 [0] : vector<256x128xf32> to vector<128xf32>
    %97 = vector.shape_cast %96 : vector<128xf32> to vector<1x128xf32>
    %98 = arith.mulf %93, %93 : vector<256x128xf32>
    %cst_45 = arith.constant dense<0.000000e+00> : vector<128xf32>
    %99 = vector.multi_reduction <add>, %98, %cst_45 [0] : vector<256x128xf32> to vector<128xf32>
    %100 = vector.shape_cast %99 : vector<128xf32> to vector<1x128xf32>
    %cst_46 = arith.constant 3.906250e-03 : f32
    %101 = vector.broadcast %cst_46 : f32 to vector<1x128xf32>
    %102 = arith.mulf %97, %101 : vector<1x128xf32>
    %cst_47 = arith.constant 3.906250e-03 : f32
    %103 = vector.broadcast %cst_47 : f32 to vector<1x128xf32>
    %104 = arith.mulf %100, %103 : vector<1x128xf32>
    %105 = arith.mulf %102, %102 : vector<1x128xf32>
    %106 = arith.subf %104, %105 : vector<1x128xf32>
    %cst_48 = arith.constant 0.000000e+00 : f32
    %107 = vector.broadcast %cst_48 : f32 to vector<1x128xf32>
    %108 = arith.maximumf %106, %107 : vector<1x128xf32>
    %cst_49 = arith.constant 9.99999974E-6 : f32
    %109 = vector.broadcast %cst_49 : f32 to vector<1x128xf32>
    %110 = arith.addf %108, %109 : vector<1x128xf32>
    %111 = math.rsqrt %110 : vector<1x128xf32>
    %112 = arith.mulf %94, %111 : vector<1x128xf32>
    %113 = arith.mulf %102, %112 : vector<1x128xf32>
    %114 = arith.subf %95, %113 : vector<1x128xf32>
    %115 = vector.broadcast %112 : vector<1x128xf32> to vector<256x128xf32>
    %116 = arith.mulf %93, %115 : vector<256x128xf32>
    %117 = vector.broadcast %114 : vector<1x128xf32> to vector<256x128xf32>
    %118 = arith.addf %116, %117 : vector<256x128xf32>
    %cst_50 = arith.constant 0.000000e+00 : f32
    %119 = vector.broadcast %cst_50 : f32 to vector<256x128xf32>
    %120 = arith.maximumf %118, %119 : vector<256x128xf32>
    %121 = arith.truncf %120 : vector<256x128xf32> to vector<256x128xbf16>
    %c3_51 = arith.constant 3 : index
    %c0_52 = arith.constant 0 : index
    %c0_53 = arith.constant 0 : index
    %122 = vector.load %arg2[%c3_51, %c0_52, %c0_53] : memref<5x128x128xbf16, #tpu.memory_space<vmem>>, vector<1x128x128xbf16>
    %123 = vector.shape_cast %122 : vector<1x128x128xbf16> to vector<128x128xbf16>
    %cst_54 = arith.constant dense<0.000000e+00> : vector<256x128xf32>
    %124 = tpu.matmul %121, %123, %cst_54 {dimension_numbers = #tpu.dot_dimension_numbers<[1], [0], [0], [1], [0, 0, 1, 1], [], []>} : vector<256x128xbf16>, vector<128x128xbf16>, vector<256x128xf32> -> vector<256x128xf32>
    %c4 = arith.constant 4 : index
    %c0_55 = arith.constant 0 : index
    %125 = vector.load %arg4[%c4, %c0_55] : memref<12x128xf32, #tpu.memory_space<vmem>>, vector<1x128xf32>
    %c10 = arith.constant 10 : index
    %c0_56 = arith.constant 0 : index
    %126 = vector.load %arg4[%c10, %c0_56] : memref<12x128xf32, #tpu.memory_space<vmem>>, vector<1x128xf32>
    %cst_57 = arith.constant dense<0.000000e+00> : vector<128xf32>
    %127 = vector.multi_reduction <add>, %124, %cst_57 [0] : vector<256x128xf32> to vector<128xf32>
    %128 = vector.shape_cast %127 : vector<128xf32> to vector<1x128xf32>
    %129 = arith.mulf %124, %124 : vector<256x128xf32>
    %cst_58 = arith.constant dense<0.000000e+00> : vector<128xf32>
    %130 = vector.multi_reduction <add>, %129, %cst_58 [0] : vector<256x128xf32> to vector<128xf32>
    %131 = vector.shape_cast %130 : vector<128xf32> to vector<1x128xf32>
    %cst_59 = arith.constant 3.906250e-03 : f32
    %132 = vector.broadcast %cst_59 : f32 to vector<1x128xf32>
    %133 = arith.mulf %128, %132 : vector<1x128xf32>
    %cst_60 = arith.constant 3.906250e-03 : f32
    %134 = vector.broadcast %cst_60 : f32 to vector<1x128xf32>
    %135 = arith.mulf %131, %134 : vector<1x128xf32>
    %136 = arith.mulf %133, %133 : vector<1x128xf32>
    %137 = arith.subf %135, %136 : vector<1x128xf32>
    %cst_61 = arith.constant 0.000000e+00 : f32
    %138 = vector.broadcast %cst_61 : f32 to vector<1x128xf32>
    %139 = arith.maximumf %137, %138 : vector<1x128xf32>
    %cst_62 = arith.constant 9.99999974E-6 : f32
    %140 = vector.broadcast %cst_62 : f32 to vector<1x128xf32>
    %141 = arith.addf %139, %140 : vector<1x128xf32>
    %142 = math.rsqrt %141 : vector<1x128xf32>
    %143 = arith.mulf %125, %142 : vector<1x128xf32>
    %144 = arith.mulf %133, %143 : vector<1x128xf32>
    %145 = arith.subf %126, %144 : vector<1x128xf32>
    %146 = vector.broadcast %143 : vector<1x128xf32> to vector<256x128xf32>
    %147 = arith.mulf %124, %146 : vector<256x128xf32>
    %148 = vector.broadcast %145 : vector<1x128xf32> to vector<256x128xf32>
    %149 = arith.addf %147, %148 : vector<256x128xf32>
    %cst_63 = arith.constant 0.000000e+00 : f32
    %150 = vector.broadcast %cst_63 : f32 to vector<256x128xf32>
    %151 = arith.maximumf %149, %150 : vector<256x128xf32>
    %152 = arith.truncf %151 : vector<256x128xf32> to vector<256x128xbf16>
    %c4_64 = arith.constant 4 : index
    %c0_65 = arith.constant 0 : index
    %c0_66 = arith.constant 0 : index
    %153 = vector.load %arg2[%c4_64, %c0_65, %c0_66] : memref<5x128x128xbf16, #tpu.memory_space<vmem>>, vector<1x128x128xbf16>
    %154 = vector.shape_cast %153 : vector<1x128x128xbf16> to vector<128x128xbf16>
    %cst_67 = arith.constant dense<0.000000e+00> : vector<256x128xf32>
    %155 = tpu.matmul %152, %154, %cst_67 {dimension_numbers = #tpu.dot_dimension_numbers<[1], [0], [0], [1], [0, 0, 1, 1], [], []>} : vector<256x128xbf16>, vector<128x128xbf16>, vector<256x128xf32> -> vector<256x128xf32>
    %c5 = arith.constant 5 : index
    %c0_68 = arith.constant 0 : index
    %156 = vector.load %arg4[%c5, %c0_68] : memref<12x128xf32, #tpu.memory_space<vmem>>, vector<1x128xf32>
    %c11 = arith.constant 11 : index
    %c0_69 = arith.constant 0 : index
    %157 = vector.load %arg4[%c11, %c0_69] : memref<12x128xf32, #tpu.memory_space<vmem>>, vector<1x128xf32>
    %cst_70 = arith.constant dense<0.000000e+00> : vector<128xf32>
    %158 = vector.multi_reduction <add>, %155, %cst_70 [0] : vector<256x128xf32> to vector<128xf32>
    %159 = vector.shape_cast %158 : vector<128xf32> to vector<1x128xf32>
    %160 = arith.mulf %155, %155 : vector<256x128xf32>
    %cst_71 = arith.constant dense<0.000000e+00> : vector<128xf32>
    %161 = vector.multi_reduction <add>, %160, %cst_71 [0] : vector<256x128xf32> to vector<128xf32>
    %162 = vector.shape_cast %161 : vector<128xf32> to vector<1x128xf32>
    %cst_72 = arith.constant 3.906250e-03 : f32
    %163 = vector.broadcast %cst_72 : f32 to vector<1x128xf32>
    %164 = arith.mulf %159, %163 : vector<1x128xf32>
    %cst_73 = arith.constant 3.906250e-03 : f32
    %165 = vector.broadcast %cst_73 : f32 to vector<1x128xf32>
    %166 = arith.mulf %162, %165 : vector<1x128xf32>
    %167 = arith.mulf %164, %164 : vector<1x128xf32>
    %168 = arith.subf %166, %167 : vector<1x128xf32>
    %cst_74 = arith.constant 0.000000e+00 : f32
    %169 = vector.broadcast %cst_74 : f32 to vector<1x128xf32>
    %170 = arith.maximumf %168, %169 : vector<1x128xf32>
    %cst_75 = arith.constant 9.99999974E-6 : f32
    %171 = vector.broadcast %cst_75 : f32 to vector<1x128xf32>
    %172 = arith.addf %170, %171 : vector<1x128xf32>
    %173 = math.rsqrt %172 : vector<1x128xf32>
    %174 = arith.mulf %156, %173 : vector<1x128xf32>
    %175 = arith.mulf %164, %174 : vector<1x128xf32>
    %176 = arith.subf %157, %175 : vector<1x128xf32>
    %177 = vector.broadcast %174 : vector<1x128xf32> to vector<256x128xf32>
    %178 = arith.mulf %155, %177 : vector<256x128xf32>
    %179 = vector.broadcast %176 : vector<1x128xf32> to vector<256x128xf32>
    %180 = arith.addf %178, %179 : vector<256x128xf32>
    %cst_76 = arith.constant 0.000000e+00 : f32
    %181 = vector.broadcast %cst_76 : f32 to vector<256x128xf32>
    %182 = arith.maximumf %180, %181 : vector<256x128xf32>
    %183 = arith.truncf %182 : vector<256x128xf32> to vector<256x128xbf16>
    %c0_77 = arith.constant 0 : index
    %c0_78 = arith.constant 0 : index
    %184 = vector.load %arg3[%c0_77, %c0_78] : memref<128x128xbf16, #tpu.memory_space<vmem>>, vector<128x128xbf16>
    %cst_79 = arith.constant dense<0.000000e+00> : vector<256x128xf32>
    %185 = tpu.matmul %183, %184, %cst_79 {dimension_numbers = #tpu.dot_dimension_numbers<[1], [0], [0], [1], [0, 0, 1, 1], [], []>} : vector<256x128xbf16>, vector<128x128xbf16>, vector<256x128xf32> -> vector<256x128xf32>
    %c0_80 = arith.constant 0 : index
    %c0_81 = arith.constant 0 : index
    %186 = vector.load %arg5[%c0_80, %c0_81] : memref<1x128xf32, #tpu.memory_space<vmem>>, vector<1x128xf32>
    %187 = vector.broadcast %186 : vector<1x128xf32> to vector<256x128xf32>
    %188 = arith.addf %185, %187 : vector<256x128xf32>
    %c0_82 = arith.constant 0 : index
    %c0_83 = arith.constant 0 : index
    %189 = vector.load %arg6[%c0_82, %c0_83] : memref<256x128xf32, #tpu.memory_space<vmem>>, vector<256x128xf32>
    tpu.vector_store %arg6[%c0_82, %c0_83], %188 {strides = array<i32>} : memref<256x128xf32, #tpu.memory_space<vmem>>, vector<256x128xf32>,
    return
  }
}

</mosaic_0001>

<bundles_post_ra>
// kernel: tpu_custom_call.1
= control target key start
LH: loop header
LB: loop body
LE: loop exit
PB: predicated region body
PF: predicated region fallthrough
CT: control target
= control target key end

     0   :  { %11 = vsyncpa [#allocation3], 0  ;;  %s5423_s0 = inlined_call_operand.hbm [shape: bf16[256,128], index: 0, kind: input, shape index: {}]   ;;  %s5424_s1 = inlined_call_operand.hbm [shape: bf16[128,128], index: 1, kind: input, shape index: {}]   ;;  %s5425_s2 = inlined_call_operand.hbm [shape: bf16[5,128,128], index: 2, kind: input, shape index: {}]   ;;  %s5426_s3 = inlined_call_operand.hbm [shape: bf16[128,128], index: 3, kind: input, shape index: {}]   ;;  %s5427_s4 = inlined_call_operand.hbm [shape: f32[12,128], index: 4, kind: input, shape index: {}]   ;;  %s5428_s5 = inlined_call_operand.vmem [shape: f32[1,128], index: 5, kind: input, shape index: {}]   ;;  %s5429_s6 = inlined_call_operand.hbm [shape: f32[256,128], index: 6, kind: output, shape index: {}]  }
   0x1   :  { %12 = vsyncpa [#allocation6], 0 }
   0x2   :  { %13 = vsyncpa [#allocation9], 0 }
   0x3   :  { %14 = vsyncpa [#allocation4], 0  ;;  %s4081_s21 = smov [#allocation5]   ;;  %s4082_s23 = smov [#allocation8]  }
   0x4   :  { %s32_s22 = sshll.u32 %s4081_s21, 4  ;;  %s56_s24 = sshll.u32 %s4082_s23, 4  ;;  %s33_s22 = int_to_ptr.vmem [resolvable:$true] %s32_s22  ;;  %s4126_s24 = int_to_ptr.vmem [resolvable:$true] %s56_s24 }
   0x5   :  { %s3941_s27 = scalar_lea.hbm %s5424_s1, 1024 }
   0x6   :  { %p3942_p0 = scmp.ne.s32.totalorder %s5424_s1, %s3941_s27  ;;  %p3945_p1 = scmp.lt.u32.totalorder %s3941_s27, %s5424_s1 }
   0x8   :  { %p3947_p2 = pnand %p3945_p1, %p3942_p0 }
   0xa   :  { %3950 = shalt.err (!%p3947_p2)
}
   0xb   :  { %s3951_s8 = scalar_lea.vmem %s33_s22, 1024  ;;  %p3956_p4 = scmp.lt.s32.totalorder %s33_s22, %s33_s22 }
   0xc   :  { %p3952_p3 = scmp.ne.s32.totalorder %s33_s22, %s3951_s8  ;;  %p3957_p5 = scmp.lt.s32.totalorder %s3951_s8, %s3951_s8 }
   0xe   :  { %p3958_p6 = por %p3957_p5, %p3956_p4 }
  0x10   :  { %p3959_p7 = pnand %p3958_p6, %p3952_p3 }
  0x12   :  { %3962 = shalt.err (!%p3959_p7)
}
  0x13   :  { %s4083_s9 = smov 64   ;;  %s4084_s10 = smov 4  }
  0x14   :  { %38 = dma.hbm_to_vmem [thread:$0]  %s5424_s1, 1024, %s33_s22, [#allocation6], %s4083_s9, %s4083_s9, %s4084_s10  }
  0x15   :  { %s3963_s15 = scalar_lea.hbm %s5426_s3, 1024 }
  0x16   :  { %p3964_p8 = scmp.ne.s32.totalorder %s5426_s3, %s3963_s15  ;;  %p3967_p9 = scmp.lt.u32.totalorder %s3963_s15, %s5426_s3 }
  0x18   :  { %p3969_p10 = pnand %p3967_p9, %p3964_p8 }
  0x1a   :  { %3972 = shalt.err (!%p3969_p10)
}
  0x1b   :  { %s3973_s20 = scalar_lea.vmem %s4126_s24, 1024  ;;  %p3978_p12 = scmp.lt.s32.totalorder %s4126_s24, %s4126_s24 }
  0x1c   :  { %p3974_p11 = scmp.ne.s32.totalorder %s4126_s24, %s3973_s20  ;;  %p3979_p13 = scmp.lt.s32.totalorder %s3973_s20, %s3973_s20 }
  0x1e   :  { %p3980_p0 = por %p3979_p13, %p3978_p12 }
  0x20   :  { %p3981_p1 = pnand %p3980_p0, %p3974_p11 }
  0x22   :  { %3984 = shalt.err (!%p3981_p1)
}
  0x23   :  { %62 = dma.hbm_to_vmem [thread:$0]  %s5426_s3, 1024, %s4126_s24, [#allocation9], %s4083_s9, %s4083_s9, %s4084_s10  }
  0x24   :  { %s4085_s22 = smov [#allocation2]   ;;  %s4086_s25 = smov [#allocation7]  }
  0x25   :  { %s20_s23 = sshll.u32 %s4085_s22, 4  ;;  %s44_s26 = sshll.u32 %s4086_s25, 4  ;;  %s21_s23 = int_to_ptr.vmem [resolvable:$true] %s20_s23  ;;  %s4163_s26 = int_to_ptr.vmem [resolvable:$true] %s44_s26 }
  0x26   :  { %s3985_s29 = scalar_lea.hbm %s5423_s0, 2048 }
  0x27   :  { %p3986_p2 = scmp.ne.s32.totalorder %s5423_s0, %s3985_s29  ;;  %p3989_p3 = scmp.lt.u32.totalorder %s3985_s29, %s5423_s0 }
  0x29   :  { %p3991_p4 = pnand %p3989_p3, %p3986_p2 }
  0x2b   :  { %3994 = shalt.err (!%p3991_p4)
}
  0x2c   :  { %s3995_s3 = scalar_lea.vmem %s21_s23, 2048  ;;  %p4000_p6 = scmp.lt.s32.totalorder %s21_s23, %s21_s23 }
  0x2d   :  { %p3996_p5 = scmp.ne.s32.totalorder %s21_s23, %s3995_s3  ;;  %p4001_p7 = scmp.lt.s32.totalorder %s3995_s3, %s3995_s3 }
  0x2f   :  { %p4002_p8 = por %p4001_p7, %p4000_p6 }
  0x31   :  { %p4003_p9 = pnand %p4002_p8, %p3996_p5 }
  0x33   :  { %4006 = shalt.err (!%p4003_p9)
}
  0x34   :  { %26 = dma.hbm_to_vmem [thread:$0]  %s5423_s0, 2048, %s21_s23, [#allocation3], %s4083_s9, %s4083_s9, %s4084_s10  }
  0x35   :  { %s4007_s15 = scalar_lea.hbm %s5425_s2, 5120 }
  0x36   :  { %p4008_p10 = scmp.ne.s32.totalorder %s5425_s2, %s4007_s15  ;;  %p4011_p11 = scmp.lt.u32.totalorder %s4007_s15, %s5425_s2 }
  0x38   :  { %p4013_p12 = pnand %p4011_p11, %p4008_p10 }
  0x3a   :  { %4016 = shalt.err (!%p4013_p12)
}
  0x3b   :  { %s4017_s20 = scalar_lea.vmem %s4163_s26, 5120  ;;  %p4022_p0 = scmp.lt.s32.totalorder %s4163_s26, %s4163_s26 }
  0x3c   :  { %p4018_p13 = scmp.ne.s32.totalorder %s4163_s26, %s4017_s20  ;;  %p4023_p1 = scmp.lt.s32.totalorder %s4017_s20, %s4017_s20 }
  0x3e   :  { %p4024_p2 = por %p4023_p1, %p4022_p0 }
  0x40   :  { %p4025_p3 = pnand %p4024_p2, %p4018_p13 }
  0x42   :  { %4028 = shalt.err (!%p4025_p3)
}
  0x43   :  { %50 = dma.hbm_to_vmem [thread:$0]  %s5425_s2, 5120, %s4163_s26, [#allocation6], %s4083_s9, %s4083_s9, %s4084_s10  }
  0x44   :  { %s4087_s21 = smov [#allocation10]   ;;  %s4029_s27 = scalar_lea.hbm %s5427_s4, 256 }
  0x45   :  { %s68_s22 = sshll.u32 %s4087_s21, 4  ;;  %p4030_p4 = scmp.ne.s32.totalorder %s5427_s4, %s4029_s27  ;;  %s69_s22 = int_to_ptr.vmem [resolvable:$true] %s68_s22 }
  0x46   :  { %p4033_p5 = scmp.lt.u32.totalorder %s4029_s27, %s5427_s4 }
  0x48   :  { %p4035_p6 = pnand %p4033_p5, %p4030_p4 }
  0x4a   :  { %4038 = shalt.err (!%p4035_p6)
}
  0x4b   :  { %s4039_s8 = scalar_lea.vmem %s69_s22, 256  ;;  %p4044_p8 = scmp.lt.s32.totalorder %s69_s22, %s69_s22 }
  0x4c   :  { %p4040_p7 = scmp.ne.s32.totalorder %s69_s22, %s4039_s8  ;;  %p4045_p9 = scmp.lt.s32.totalorder %s4039_s8, %s4039_s8 }
  0x4e   :  { %p4046_p10 = por %p4045_p9, %p4044_p8 }
  0x50   :  { %p4047_p11 = pnand %p4046_p10, %p4040_p7 }
  0x52   :  { %4050 = shalt.err (!%p4047_p11)
}
  0x53   :  { %s4088_s2 = smov 128   ;;  %s4089_s9 = smov 8  }
  0x54   :  { %74 = dma.hbm_to_vmem [thread:$0]  %s5427_s4, 256, %s69_s22, [#allocation9], %s4088_s2, %s4088_s2, %s4089_s9  }
  0x55   :  { %4073 = dma.done.wait [#allocation3], 2048  }
  0x56   :  { %4074 = vsyncadd [#allocation3], 4294965248 }
  0x57   :  { %4075 = dma.done.wait [#allocation6], 6144  }
  0x58   :  { %4076 = vsyncadd [#allocation6], 4294961152 }
  0x59   :  { %4077 = dma.done.wait [#allocation9], 1280  }
  0x5a   :  { %4078 = vsyncadd [#allocation9], 4294966016  ;;  %v3857_v0 = vld [vmem:[#allocation5] sm:$0xff]   ;;  %v3858_v1 = vld [vmem:[#allocation5 + $0x8] sm:$0xff]  }
  0x5b   :  { %3495 = vmatprep.subr.bf16.mxu0 %v3857_v0  ;;  %3831 = vmatprep.subr.bf16.mxu1 %v3857_v0  ;;  %v3859_v2 = vld [vmem:[#allocation5 + $0x10] sm:$0xff]   ;;  %v3860_v3 = vld [vmem:[#allocation5 + $0x18] sm:$0xff]   ;;  %v3865_v4 = vld [vmem:[#allocation2] sm:$0xff]  }
  0x5c   :  { %3496 = vmatpush3.bf16.msra.mxu0 %v3857_v0  ;;  %3839 = vmatpush3.bf16.msra.mxu1 %v3857_v0  ;;  %v3861_v5 = vld [vmem:[#allocation5 + $0x20] sm:$0xff]   ;;  %v3862_v6 = vld [vmem:[#allocation5 + $0x28] sm:$0xff]   ;;  %v3863_v8 = vld [vmem:[#allocation5 + $0x30] sm:$0xff]  }
  0x5d   :  { %3497 = vmatprep.subr.bf16.mxu0 %v3858_v1  ;;  %3832 = vmatprep.subr.bf16.mxu1 %v3858_v1  ;;  %v3873_v7 = vld [vmem:[#allocation2 + $0x40] sm:$0xff]   ;;  %v3864_v9 = vld [vmem:[#allocation5 + $0x38] sm:$0xff]   ;;  %v3866_v10 = vld [vmem:[#allocation2 + $0x8] sm:$0xff]  }
  0x5e   :  { %3511 = vmatprep.mubr.bf16.mxu0 %v3865_v4  ;;  %3527 = vmatprep.mubr.bf16.mxu1 %v3873_v7  ;;  %v3874_v11 = vld [vmem:[#allocation2 + $0x48] sm:$0xff]   ;;  %v3867_v12 = vld [vmem:[#allocation2 + $0x10] sm:$0xff]   ;;  %v3868_v14 = vld [vmem:[#allocation2 + $0x18] sm:$0xff]  }
  0x5f   :  { %v3875_v13 = vld [vmem:[#allocation2 + $0x50] sm:$0xff]   ;;  %v3876_v15 = vld [vmem:[#allocation2 + $0x58] sm:$0xff]   ;;  %v3869_v16 = vld [vmem:[#allocation2 + $0x20] sm:$0xff]  }
  0x60   :  { %3498 = vmatpush3.bf16.msra.mxu0 %v3858_v1  ;;  %3840 = vmatpush3.bf16.msra.mxu1 %v3858_v1  ;;  %v3877_v17 = vld [vmem:[#allocation2 + $0x60] sm:$0xff]   ;;  %v3870_v18 = vld [vmem:[#allocation2 + $0x28] sm:$0xff]   ;;  %v3871_v20 = vld [vmem:[#allocation2 + $0x30] sm:$0xff]  }
  0x61   :  { %3499 = vmatprep.subr.bf16.mxu0 %v3859_v2  ;;  %3833 = vmatprep.subr.bf16.mxu1 %v3859_v2  ;;  %v3878_v19 = vld [vmem:[#allocation2 + $0x68] sm:$0xff]   ;;  %v3879_v21 = vld [vmem:[#allocation2 + $0x70] sm:$0xff]   ;;  %v3872_v22 = vld [vmem:[#allocation2 + $0x38] sm:$0xff]  }
  0x62   :  { %v3880_v23 = vld [vmem:[#allocation2 + $0x78] sm:$0xff]   ;;  %v3881_v24 = vld [vmem:[#allocation7] sm:$0xff]   ;;  %v3882_v25 = vld [vmem:[#allocation7 + $0x8] sm:$0xff]  }
  0x63   :  { %v3883_v26 = vld [vmem:[#allocation7 + $0x10] sm:$0xff]   ;;  %v3884_v27 = vld [vmem:[#allocation7 + $0x18] sm:$0xff]   ;;  %v3885_v28 = vld [vmem:[#allocation7 + $0x20] sm:$0xff]  }
  0x64   :  { %3500 = vmatpush3.bf16.msra.mxu0 %v3859_v2  ;;  %3841 = vmatpush3.bf16.msra.mxu1 %v3859_v2  ;;  %v3886_v29 = vld [vmem:[#allocation7 + $0x28] sm:$0xff]   ;;  %v3887_v30 = vld [vmem:[#allocation7 + $0x30] sm:$0xff]   ;;  %v3888_v31 = vld [vmem:[#allocation7 + $0x38] sm:$0xff]  }
  0x65   :  { %3501 = vmatprep.subr.bf16.mxu0 %v3860_v3  ;;  %3834 = vmatprep.subr.bf16.mxu1 %v3860_v3 }
  0x68   :  { %3502 = vmatpush3.bf16.msra.mxu0 %v3860_v3  ;;  %3842 = vmatpush3.bf16.msra.mxu1 %v3860_v3 }
  0x69   :  { %3503 = vmatprep.subr.bf16.mxu0 %v3861_v5  ;;  %3835 = vmatprep.subr.bf16.mxu1 %v3861_v5 }
  0x6c   :  { %3504 = vmatpush3.bf16.msra.mxu0 %v3861_v5  ;;  %3843 = vmatpush3.bf16.msra.mxu1 %v3861_v5 }
  0x6d   :  { %3505 = vmatprep.subr.bf16.mxu0 %v3862_v6  ;;  %3836 = vmatprep.subr.bf16.mxu1 %v3862_v6 }
  0x70   :  { %3506 = vmatpush3.bf16.msra.mxu0 %v3862_v6  ;;  %3844 = vmatpush3.bf16.msra.mxu1 %v3862_v6 }
  0x71   :  { %3507 = vmatprep.subr.bf16.mxu0 %v3863_v8  ;;  %3837 = vmatprep.subr.bf16.mxu1 %v3863_v8 }
  0x74   :  { %3508 = vmatpush3.bf16.msra.mxu0 %v3863_v8  ;;  %3845 = vmatpush3.bf16.msra.mxu1 %v3863_v8 }
  0x75   :  { %3509 = vmatprep.subr.bf16.mxu0 %v3864_v9  ;;  %3838 = vmatprep.subr.bf16.mxu1 %v3864_v9 }
  0x78   :  { %3510 = vmatpush3.bf16.msra.mxu0 %v3864_v9  ;;  %3846 = vmatpush3.bf16.msra.mxu1 %v3864_v9 }
  0x79   :  { %3543 = vmatprep.subr.bf16.mxu1 %v3881_v24 }
  0x7b   :  { %3512 = vmatmul.mubr.bf16.vlgmr.msra.gmra.mrb[0].mxu0 %v3866_v10  ;;  %3528 = vmatmul.mubr.bf16.vlgmr.msra.gmra.mrb[0].mxu1 %v3874_v11 }
  0x7c   :  { %3515 = vmatprep.mubr.bf16.mxu0 %v3867_v12  ;;  %3531 = vmatprep.mubr.bf16.mxu1 %v3875_v13 }
  0x7d   :  { %3544 = vmatpush3.bf16.msra.mxu1 %v3881_v24 }
  0x7e   :  { %3545 = vmatprep.subr.bf16.mxu1 %v3882_v25 }
  0x81   :  { %3546 = vmatpush3.bf16.msra.mxu1 %v3882_v25 }
  0x82   :  { %3547 = vmatprep.subr.bf16.mxu1 %v3883_v26 }
  0x83   :  { %3516 = vmatmul.mubr.bf16.gmra.mrb[4].mxu0 %v3868_v14  ;;  %3532 = vmatmul.mubr.bf16.gmra.mrb[4].mxu1 %v3876_v15 }
  0x84   :  { %3519 = vmatprep.mubr.bf16.mxu0 %v3869_v16  ;;  %3535 = vmatprep.mubr.bf16.mxu1 %v3877_v17 }
  0x85   :  { %3548 = vmatpush3.bf16.msra.mxu1 %v3883_v26 }
  0x86   :  { %3549 = vmatprep.subr.bf16.mxu1 %v3884_v27 }
  0x89   :  { %3550 = vmatpush3.bf16.msra.mxu1 %v3884_v27 }
  0x8a   :  { %3551 = vmatprep.subr.bf16.mxu1 %v3885_v28 }
  0x8b   :  { %3520 = vmatmul.mubr.bf16.gmra.mrb[8].mxu0 %v3870_v18  ;;  %3536 = vmatmul.mubr.bf16.gmra.mrb[8].mxu1 %v3878_v19 }
  0x8c   :  { %3523 = vmatprep.mubr.bf16.mxu0 %v3871_v20  ;;  %3539 = vmatprep.mubr.bf16.mxu1 %v3879_v21 }
  0x8d   :  { %3552 = vmatpush3.bf16.msra.mxu1 %v3885_v28 }
  0x8e   :  { %3553 = vmatprep.subr.bf16.mxu1 %v3886_v29 }
  0x91   :  { %3554 = vmatpush3.bf16.msra.mxu1 %v3886_v29 }
  0x92   :  { %3555 = vmatprep.subr.bf16.mxu1 %v3887_v30 }
  0x93   :  { %3524 = vmatmul.mubr.bf16.gmra.mrb[12].mxu0 %v3872_v22  ;;  %3540 = vmatmul.mubr.bf16.gmra.mrb[12].mxu1 %v3880_v23 }
  0x95   :  { %3556 = vmatpush3.bf16.msra.mxu1 %v3887_v30 }
  0x96   :  { %3557 = vmatprep.subr.bf16.mxu1 %v3888_v31 }
  0x99   :  { %3558 = vmatpush3.bf16.msra.mxu1 %v3888_v31 }
 0x14e   :  { %v4215_v32 = vpop.f32.mrb[0].mxu0  ;;  %v4217_v33 = vpop.f32.mrb[0].mxu1 }
 0x14f   :  { %v4219_v34 = vpop.f32.mrb[1].mxu0  ;;  %v4221_v35 = vpop.f32.mrb[1].mxu1  ;;  %v487_v43 = vmul.f32 %v4215_v32, %v4215_v32 }
 0x150   :  { %v4223_v36 = vpop.f32.mrb[2].mxu0  ;;  %v4225_v37 = vpop.f32.mrb[2].mxu1  ;;  %v485_v40 = vmul.f32 %v4219_v34, %v4219_v34 }
 0x151   :  { %v4227_v38 = vpop.f32.mrb[3].mxu0  ;;  %v4229_v39 = vpop.f32.mrb[3].mxu1  ;;  %v488_v46 = vmul.f32 %v4223_v36, %v4223_v36 }
 0x152   :  { %v448_v41 = vadd.f32 %v4227_v38, %v4219_v34  ;;  %v486_v42 = vmul.f32 %v4227_v38, %v4227_v38 }
 0x154   :  { %v449_v44 = vadd.f32 %v4215_v32, %v448_v41  ;;  %v517_v45 = vadd.f32 %v486_v42, %v485_v40 }
 0x156   :  { %v518_v47 = vadd.f32 %v517_v45, %v487_v43  ;;  %v4242_v48 = vpop.f32.mrb[4].mxu0  ;;  %v450_v49 = vadd.f32 %v4223_v36, %v449_v44  ;;  %v4245_v50 = vpop.f32.mrb[4].mxu1 }
 0x157   :  { %v4247_v51 = vpop.f32.mrb[5].mxu0  ;;  %v4249_v52 = vpop.f32.mrb[5].mxu1  ;;  %v491_v63 = vmul.f32 %v4242_v48, %v4242_v48 }
 0x158   :  { %v451_v53 = vadd.f32 %v450_v49, %v4247_v51  ;;  %v489_v54 = vmul.f32 %v4247_v51, %v4247_v51  ;;  %v519_v55 = vadd.f32 %v518_v47, %v488_v46  ;;  %v4254_v56 = vpop.f32.mrb[6].mxu0  ;;  %v4256_v57 = vpop.f32.mrb[6].mxu1 }
 0x159   :  { %v4258_v58 = vpop.f32.mrb[7].mxu0  ;;  %v4260_v59 = vpop.f32.mrb[7].mxu1  ;;  %v492_v2 = vmul.f32 %v4254_v56, %v4254_v56 }
 0x15a   :  { %v520_v60 = vadd.f32 %v519_v55, %v489_v54  ;;  %v452_v61 = vadd.f32 %v451_v53, %v4258_v58  ;;  %v490_v62 = vmul.f32 %v4258_v58, %v4258_v58 }
 0x15c   :  { %v453_v0 = vadd.f32 %v4242_v48, %v452_v61  ;;  %v521_v1 = vadd.f32 %v520_v60, %v490_v62  ;;  %v501_v61 = vmul.f32 %v4221_v35, %v4221_v35 }
 0x15e   :  { %v522_v3 = vadd.f32 %v521_v1, %v491_v63  ;;  %v4270_v4 = vpop.f32.mrb[8].mxu0  ;;  %v454_v5 = vadd.f32 %v4254_v56, %v453_v0  ;;  %v4273_v6 = vpop.f32.mrb[8].mxu1 }
 0x15f   :  { %v4275_v7 = vpop.f32.mrb[9].mxu0  ;;  %v4277_v8 = vpop.f32.mrb[9].mxu1  ;;  %v495_v19 = vmul.f32 %v4270_v4, %v4270_v4 }
 0x160   :  { %v455_v9 = vadd.f32 %v454_v5, %v4275_v7  ;;  %v493_v10 = vmul.f32 %v4275_v7, %v4275_v7  ;;  %v523_v11 = vadd.f32 %v522_v3, %v492_v2  ;;  %v4282_v12 = vpop.f32.mrb[10].mxu0  ;;  %v4284_v13 = vpop.f32.mrb[10].mxu1  ;;  %v502_v2 = vmul.f32 %v4229_v39, %v4229_v39 }
 0x161   :  { %v4286_v14 = vpop.f32.mrb[11].mxu0  ;;  %v4288_v15 = vpop.f32.mrb[11].mxu1  ;;  %v496_v22 = vmul.f32 %v4282_v12, %v4282_v12  ;;  %v503_v3 = vmul.f32 %v4217_v33, %v4217_v33 }
 0x162   :  { %v524_v16 = vadd.f32 %v523_v11, %v493_v10  ;;  %v456_v17 = vadd.f32 %v455_v9, %v4286_v14  ;;  %v494_v18 = vmul.f32 %v4286_v14, %v4286_v14  ;;  %v504_v10 = vmul.f32 %v4225_v37, %v4225_v37 }
 0x164   :  { %v457_v20 = vadd.f32 %v4270_v4, %v456_v17  ;;  %v525_v21 = vadd.f32 %v524_v16, %v494_v18  ;;  %v505_v17 = vmul.f32 %v4249_v52, %v4249_v52 }
 0x166   :  { %v526_v23 = vadd.f32 %v525_v21, %v495_v19  ;;  %v4298_v24 = vpop.f32.mrb[12].mxu0  ;;  %v458_v25 = vadd.f32 %v4282_v12, %v457_v20  ;;  %v4301_v26 = vpop.f32.mrb[12].mxu1 }
 0x167   :  { %v4303_v27 = vpop.f32.mrb[13].mxu0  ;;  %v4305_v28 = vpop.f32.mrb[13].mxu1  ;;  %v499_v47 = vmul.f32 %v4298_v24, %v4298_v24 }
 0x168   :  { %v459_v29 = vadd.f32 %v458_v25, %v4303_v27  ;;  %v497_v30 = vmul.f32 %v4303_v27, %v4303_v27  ;;  %v527_v31 = vadd.f32 %v526_v23, %v496_v22  ;;  %v4310_v40 = vpop.f32.mrb[14].mxu0  ;;  %v4312_v41 = vpop.f32.mrb[14].mxu1  ;;  %v506_v22 = vmul.f32 %v4260_v59, %v4260_v59 }
 0x169   :  { %v4314_v42 = vpop.f32.mrb[15].mxu0  ;;  %v4316_v43 = vpop.f32.mrb[15].mxu1  ;;  %v500_v54 = vmul.f32 %v4310_v40, %v4310_v40  ;;  %v507_v23 = vmul.f32 %v4245_v50, %v4245_v50 }
 0x16a   :  { %v528_v44 = vadd.f32 %v527_v31, %v497_v30  ;;  %v460_v45 = vadd.f32 %v459_v29, %v4314_v42  ;;  %v498_v46 = vmul.f32 %v4314_v42, %v4314_v42  ;;  %v508_v30 = vmul.f32 %v4256_v57, %v4256_v57 }
 0x16c   :  { %v461_v49 = vadd.f32 %v4298_v24, %v460_v45  ;;  %v529_v53 = vadd.f32 %v528_v44, %v498_v46  ;;  %v509_v45 = vmul.f32 %v4277_v8, %v4277_v8 }
 0x16e   :  { %v530_v55 = vadd.f32 %v529_v53, %v499_v47  ;;  %v462_v60 = vadd.f32 %v4310_v40, %v461_v49 }
 0x170   :  { %v463_v62 = vadd.f32 %v462_v60, %v4221_v35  ;;  %v531_v63 = vadd.f32 %v530_v55, %v500_v54  ;;  %v510_v54 = vmul.f32 %v4288_v15, %v4288_v15  ;;  %v511_v55 = vmul.f32 %v4273_v6, %v4273_v6 }
 0x172   :  { %v532_v0 = vadd.f32 %v531_v63, %v501_v61  ;;  %v464_v1 = vadd.f32 %v463_v62, %v4229_v39  ;;  %v512_v62 = vmul.f32 %v4284_v13, %v4284_v13 }
 0x174   :  { %v465_v5 = vadd.f32 %v4217_v33, %v464_v1  ;;  %v533_v9 = vadd.f32 %v532_v0, %v502_v2  ;;  %v513_v1 = vmul.f32 %v4305_v28, %v4305_v28 }
 0x176   :  { %v534_v11 = vadd.f32 %v533_v9, %v503_v3  ;;  %v466_v16 = vadd.f32 %v4225_v37, %v465_v5 }
 0x178   :  { %v467_v18 = vadd.f32 %v466_v16, %v4249_v52  ;;  %v535_v19 = vadd.f32 %v534_v11, %v504_v10  ;;  %v514_v10 = vmul.f32 %v4316_v43, %v4316_v43  ;;  %v515_v11 = vmul.f32 %v4301_v26, %v4301_v26 }
 0x17a   :  { %v536_v20 = vadd.f32 %v535_v19, %v505_v17  ;;  %v468_v21 = vadd.f32 %v467_v18, %v4260_v59  ;;  %v516_v18 = vmul.f32 %v4312_v41, %v4312_v41 }
 0x17c   :  { %v469_v25 = vadd.f32 %v4245_v50, %v468_v21  ;;  %v537_v29 = vadd.f32 %v536_v20, %v506_v22 }
 0x17e   :  { %v538_v31 = vadd.f32 %v537_v29, %v507_v23  ;;  %v470_v44 = vadd.f32 %v4256_v57, %v469_v25 }
 0x180   :  { %v471_v46 = vadd.f32 %v470_v44, %v4277_v8  ;;  %v539_v47 = vadd.f32 %v538_v31, %v508_v30 }
 0x182   :  { %v540_v49 = vadd.f32 %v539_v47, %v509_v45  ;;  %v472_v53 = vadd.f32 %v471_v46, %v4288_v15 }
 0x184   :  { %v473_v60 = vadd.f32 %v4273_v6, %v472_v53  ;;  %v541_v61 = vadd.f32 %v540_v49, %v510_v54 }
 0x186   :  { %v542_v63 = vadd.f32 %v541_v61, %v511_v55  ;;  %v474_v0 = vadd.f32 %v4284_v13, %v473_v60 }
 0x188   :  { %v475_v2 = vadd.f32 %v474_v0, %v4305_v28  ;;  %v543_v3 = vadd.f32 %v542_v63, %v512_v62  ;;  %v564_v0 = vlaneseq }
 0x18a   :  { %v544_v5 = vadd.f32 %v543_v3, %v513_v1  ;;  %v476_v9 = vadd.f32 %v475_v2, %v4316_v43  ;;  %v565_v1 = vshrl.u32 %v564_v0, 7  ;;  %v446_v2 = vld [vmem:[#allocation10] sm:$0x1] }
 0x18c   :  { %v477_v16 = vadd.f32 %v4301_v26, %v476_v9  ;;  %v545_v17 = vadd.f32 %v544_v5, %v514_v10  ;;  %v4375_v3 = vsub.s32 0, %v565_v1  ;;  %v447_v10 = vld [vmem:[#allocation10 + $0x6] sm:$0x1] }
 0x18e   :  { %v478_v19 = vadd.f32 %v4312_v41, %v477_v16  ;;  %v546_v20 = vadd.f32 %v545_v17, %v515_v11 }
 0x190   :  { %v479_v21 = vrot.slane %v478_v19, 4  ;;  %v547_v22 = vadd.f32 %v546_v20, %v516_v18 }
 0x192   :  { %v480_v23 = vadd.f32 %v479_v21, %v478_v19  ;;  %v548_v25 = vrot.slane %v547_v22, 4 }
 0x194   :  { %v481_v29 = vrot.slane %v480_v23, 2  ;;  %v549_v30 = vadd.f32 %v548_v25, %v547_v22 }
 0x196   :  { %v482_v31 = vadd.f32 %v481_v29, %v480_v23  ;;  %v550_v44 = vrot.slane %v549_v30, 2 }
 0x198   :  { %v483_v45 = vrot.slane %v482_v31, 1  ;;  %v551_v46 = vadd.f32 %v550_v44, %v549_v30 }
 0x19a   :  { %v484_v47 = vadd.f32 %v483_v45, %v482_v31  ;;  %v552_v49 = vrot.slane %v551_v46, 1 }
 0x19c   :  { %v553_v53 = vadd.f32 %v552_v49, %v551_v46  ;;  %v554_v54 = vmul.f32 0.00390625, %v484_v47 }
 0x19e   :  { %v555_v55 = vmul.f32 0.00390625, %v553_v53  ;;  %v556_v60 = vmul.f32 %v554_v54, %v554_v54 }
 0x1a0   :  { %v557_v61 = vsub.f32 %v555_v55, %v556_v60 }
 0x1a2   :  { %v558_v62 = vmax.f32 %v557_v61, 0.0 }
 0x1a4   :  { %v559_v63 = vadd.f32 1e-05, %v558_v62 }
 0x1a6   :  { %3929 = vrsqrt.f32 %v559_v63 }
 0x1b0   :  { %v3930_v5 = vpop.eup %3929 }
 0x1b1   :  { %v561_v9 = vmul.f32 %v3930_v5, %v446_v2 }
 0x1b3   :  { %v562_v11 = vmul.f32 %v561_v9, %v554_v54  ;;  %v567_v16 = vrot.slane %v561_v9, %v4375_v3 }
 0x1b5   :  { %v563_v17 = vsub.f32 %v447_v10, %v562_v11  ;;  %v597_v18 = vmul.f32 %v567_v16, %v4316_v43  ;;  %v568_v19 = vmul.f32 %v567_v16, %v4219_v34  ;;  %v569_v20 = vmul.f32 %v567_v16, %v4227_v38 }
 0x1b6   :  { %v570_v21 = vmul.f32 %v4215_v32, %v567_v16  ;;  %v571_v22 = vmul.f32 %v4223_v36, %v567_v16  ;;  %v572_v23 = vmul.f32 %v567_v16, %v4247_v51  ;;  %v573_v25 = vmul.f32 %v567_v16, %v4258_v58 }
 0x1b7   :  { %v603_v29 = vrot.slane %v563_v17, %v4375_v3  ;;  %v574_v30 = vmul.f32 %v4242_v48, %v567_v16  ;;  %v575_v31 = vmul.f32 %v4254_v56, %v567_v16  ;;  %v576_v43 = vmul.f32 %v567_v16, %v4275_v7 }
 0x1b8   :  { %v577_v34 = vmul.f32 %v567_v16, %v4286_v14  ;;  %v578_v38 = vmul.f32 %v4270_v4, %v567_v16  ;;  %v579_v32 = vmul.f32 %v4282_v12, %v567_v16  ;;  %v580_v36 = vmul.f32 %v567_v16, %v4303_v27 }
 0x1b9   :  { %v4393_v44 = vadd.f32 %v603_v29, %v597_v18  ;;  %v581_v51 = vmul.f32 %v567_v16, %v4314_v42  ;;  %v582_v58 = vmul.f32 %v4298_v24, %v567_v16  ;;  %v583_v48 = vmul.f32 %v4310_v40, %v567_v16 }
 0x1ba   :  { %v584_v56 = vmul.f32 %v567_v16, %v4221_v35  ;;  %v585_v7 = vmul.f32 %v567_v16, %v4229_v39  ;;  %v586_v14 = vmul.f32 %v4217_v33, %v567_v16  ;;  %v587_v4 = vmul.f32 %v4225_v37, %v567_v16 }
 0x1bb   :  { %v588_v12 = vmul.f32 %v567_v16, %v4249_v52  ;;  %v589_v27 = vmul.f32 %v567_v16, %v4260_v59  ;;  %v590_v45 = vmul.f32 %v4245_v50, %v567_v16  ;;  %v591_v42 = vmul.f32 %v4256_v57, %v567_v16 }
 0x1bc   :  { %v592_v24 = vmul.f32 %v567_v16, %v4277_v8  ;;  %v593_v40 = vmul.f32 %v567_v16, %v4288_v15  ;;  %v594_v35 = vmul.f32 %v4273_v6, %v567_v16  ;;  %v595_v39 = vmul.f32 %v4284_v13, %v567_v16 }
 0x1bd   :  { %v596_v33 = vmul.f32 %v567_v16, %v4305_v28  ;;  %v598_v37 = vmul.f32 %v4301_v26, %v567_v16  ;;  %v599_v52 = vmul.f32 %v4312_v41, %v567_v16  ;;  %v604_v46 = vadd.f32 %v603_v29, %v568_v19 }
 0x1be   :  { %v605_v59 = vadd.f32 %v603_v29, %v569_v20  ;;  %v606_v47 = vadd.f32 %v603_v29, %v570_v21  ;;  %v607_v50 = vadd.f32 %v603_v29, %v571_v22  ;;  %v608_v49 = vadd.f32 %v603_v29, %v572_v23 }
 0x1bf   :  { %v609_v57 = vadd.f32 %v603_v29, %v573_v25  ;;  %v610_v53 = vadd.f32 %v603_v29, %v574_v30  ;;  %v611_v8 = vadd.f32 %v603_v29, %v575_v31  ;;  %v612_v54 = vadd.f32 %v603_v29, %v576_v43 }
 0x1c0   :  { %v613_v15 = vadd.f32 %v603_v29, %v577_v34  ;;  %v614_v55 = vadd.f32 %v603_v29, %v578_v38  ;;  %v615_v6 = vadd.f32 %v603_v29, %v579_v32  ;;  %v616_v60 = vadd.f32 %v603_v29, %v580_v36 }
 0x1c1   :  { %v617_v13 = vadd.f32 %v603_v29, %v581_v51  ;;  %v618_v61 = vadd.f32 %v603_v29, %v582_v58  ;;  %v619_v28 = vadd.f32 %v603_v29, %v583_v48  ;;  %v620_v62 = vadd.f32 %v603_v29, %v584_v56  ;;  %v3889_v56 = vld [vmem:[#allocation7 + $0x40] sm:$0xff]  }
 0x1c2   :  { %v621_v26 = vadd.f32 %v603_v29, %v585_v7  ;;  %v622_v63 = vadd.f32 %v603_v29, %v586_v14  ;;  %v623_v41 = vadd.f32 %v603_v29, %v587_v4  ;;  %v624_v0 = vadd.f32 %v603_v29, %v588_v12  ;;  %3591 = vmatprep.subr.bf16.mxu0 %v3889_v56  ;;  %v3890_v7 = vld [vmem:[#allocation7 + $0x48] sm:$0xff]   ;;  %v3892_v14 = vld [vmem:[#allocation7 + $0x58] sm:$0xff]   ;;  %v3893_v4 = vld [vmem:[#allocation7 + $0x60] sm:$0xff]  }
 0x1c3   :  { %v625_v1 = vadd.f32 %v603_v29, %v589_v27  ;;  %v626_v2 = vadd.f32 %v603_v29, %v590_v45  ;;  %v627_v5 = vadd.f32 %v603_v29, %v591_v42  ;;  %v628_v9 = vadd.f32 %v603_v29, %v592_v24  ;;  %3592 = vmatpush3.bf16.msra.mxu0 %v3889_v56  ;;  %v3894_v12 = vld [vmem:[#allocation7 + $0x68] sm:$0xff]   ;;  %v3895_v27 = vld [vmem:[#allocation7 + $0x70] sm:$0xff]   ;;  %v3896_v45 = vld [vmem:[#allocation7 + $0x78] sm:$0xff]  }
 0x1c4   :  { %v629_v10 = vadd.f32 %v603_v29, %v593_v40  ;;  %v630_v11 = vadd.f32 %v603_v29, %v594_v35  ;;  %v631_v16 = vadd.f32 %v603_v29, %v595_v39  ;;  %v632_v17 = vadd.f32 %v603_v29, %v596_v33  ;;  %3593 = vmatprep.subr.bf16.mxu0 %v3890_v7 }
 0x1c5   :  { %v634_v18 = vadd.f32 %v603_v29, %v598_v37  ;;  %v635_v19 = vadd.f32 %v603_v29, %v599_v52  ;;  %v637_v20 = vpack.c.bf16 %v607_v50, %v606_v47  ;;  %v636_v21 = vpack.c.bf16 %v605_v59, %v604_v46 }
 0x1c6   :  { %v638_v22 = vpack.c.bf16 %v609_v57, %v608_v49  ;;  %v639_v23 = vpack.c.bf16 %v611_v8, %v610_v53  ;;  %v640_v25 = vpack.c.bf16 %v613_v15, %v612_v54  ;;  %v641_v30 = vpack.c.bf16 %v615_v6, %v614_v55 }
 0x1c7   :  { %3559 = vmatprep.mubr.bf16.mxu1 %v636_v21  ;;  %v642_v31 = vpack.c.bf16 %v617_v13, %v616_v60  ;;  %v643_v43 = vpack.c.bf16 %v619_v28, %v618_v61  ;;  %v644_v34 = vpack.c.bf16 %v621_v26, %v620_v62  ;;  %v645_v38 = vpack.c.bf16 %v623_v41, %v622_v63 }
 0x1c8   :  { %3560 = vmatmul.mubr.bf16.vlgmr.msra.gmra.mrb[16].mxu1 %v637_v20  ;;  %v646_v32 = vpack.c.bf16 %v625_v1, %v624_v0  ;;  %v647_v36 = vpack.c.bf16 %v627_v5, %v626_v2  ;;  %v648_v51 = vpack.c.bf16 %v629_v10, %v628_v9  ;;  %v649_v58 = vpack.c.bf16 %v631_v16, %v630_v11 }
 0x1c9   :  { %3563 = vmatprep.mubr.bf16.mxu1 %v638_v22  ;;  %v650_v48 = vpack.c.bf16 %v4393_v44, %v632_v17  ;;  %v651_v29 = vpack.c.bf16 %v635_v19, %v634_v18  ;;  %3594 = vmatpush3.bf16.msra.mxu0 %v3890_v7  ;;  %v3891_v44 = vld [vmem:[#allocation7 + $0x50] sm:$0xff]  }
 0x1ca   :  { %3595 = vmatprep.subr.bf16.mxu0 %v3891_v44 }
 0x1cd   :  { %3596 = vmatpush3.bf16.msra.mxu0 %v3891_v44 }
 0x1ce   :  { %3597 = vmatprep.subr.bf16.mxu0 %v3892_v14 }
 0x1d0   :  { %3564 = vmatmul.mubr.bf16.gmra.mrb[20].mxu1 %v639_v23 }
 0x1d1   :  { %3567 = vmatprep.mubr.bf16.mxu1 %v640_v25  ;;  %3598 = vmatpush3.bf16.msra.mxu0 %v3892_v14 }
 0x1d2   :  { %3599 = vmatprep.subr.bf16.mxu0 %v3893_v4 }
 0x1d5   :  { %3600 = vmatpush3.bf16.msra.mxu0 %v3893_v4 }
 0x1d6   :  { %3601 = vmatprep.subr.bf16.mxu0 %v3894_v12 }
 0x1d8   :  { %3568 = vmatmul.mubr.bf16.gmra.mrb[24].mxu1 %v641_v30 }
 0x1d9   :  { %3571 = vmatprep.mubr.bf16.mxu1 %v642_v31  ;;  %3602 = vmatpush3.bf16.msra.mxu0 %v3894_v12 }
 0x1da   :  { %3603 = vmatprep.subr.bf16.mxu0 %v3895_v27 }
 0x1dd   :  { %3604 = vmatpush3.bf16.msra.mxu0 %v3895_v27 }
 0x1de   :  { %3605 = vmatprep.subr.bf16.mxu0 %v3896_v45 }
 0x1e0   :  { %3572 = vmatmul.mubr.bf16.gmra.mrb[28].mxu1 %v643_v43 }
 0x1e1   :  { %3575 = vmatprep.mubr.bf16.mxu1 %v644_v34  ;;  %3606 = vmatpush3.bf16.msra.mxu0 %v3896_v45 }
 0x1e8   :  { %3576 = vmatmul.mubr.bf16.gmra.mrb[32].mxu1 %v645_v38 }
 0x1e9   :  { %3579 = vmatprep.mubr.bf16.mxu1 %v646_v32 }
 0x1f0   :  { %3580 = vmatmul.mubr.bf16.gmra.mrb[36].mxu1 %v647_v36 }
 0x1f1   :  { %3583 = vmatprep.mubr.bf16.mxu1 %v648_v51 }
 0x1f8   :  { %3584 = vmatmul.mubr.bf16.gmra.mrb[40].mxu1 %v649_v58 }
 0x1f9   :  { %3587 = vmatprep.mubr.bf16.mxu1 %v650_v48 }
 0x200   :  { %3588 = vmatmul.mubr.bf16.gmra.mrb[44].mxu1 %v651_v29 }
 0x29b   :  { %v4414_v42 = vpop.f32.mrb[16].mxu1 }
 0x29c   :  { %v4416_v24 = vpop.f32.mrb[17].mxu1  ;;  %v918_v52 = vmul.f32 %v4414_v42, %v4414_v42 }
 0x29d   :  { %v4418_v40 = vpop.f32.mrb[18].mxu1  ;;  %v916_v39 = vmul.f32 %v4416_v24, %v4416_v24 }
 0x29e   :  { %v4420_v35 = vpop.f32.mrb[19].mxu1  ;;  %v919_v47 = vmul.f32 %v4418_v40, %v4418_v40 }
 0x29f   :  { %v879_v33 = vadd.f32 %v4420_v35, %v4416_v24  ;;  %v917_v37 = vmul.f32 %v4420_v35, %v4420_v35 }
 0x2a1   :  { %v880_v46 = vadd.f32 %v4414_v42, %v879_v33  ;;  %v948_v59 = vadd.f32 %v917_v37, %v916_v39 }
 0x2a3   :  { %v949_v50 = vadd.f32 %v948_v59, %v918_v52  ;;  %v4433_v49 = vpop.f32.mrb[20].mxu1  ;;  %v881_v57 = vadd.f32 %v4418_v40, %v880_v46 }
 0x2a4   :  { %v4436_v53 = vpop.f32.mrb[21].mxu1  ;;  %v922_v28 = vmul.f32 %v4433_v49, %v4433_v49 }
 0x2a5   :  { %v882_v8 = vadd.f32 %v881_v57, %v4436_v53  ;;  %v920_v54 = vmul.f32 %v4436_v53, %v4436_v53  ;;  %v950_v15 = vadd.f32 %v949_v50, %v919_v47  ;;  %v4441_v55 = vpop.f32.mrb[22].mxu1 }
 0x2a6   :  { %v4443_v6 = vpop.f32.mrb[23].mxu1  ;;  %v923_v63 = vmul.f32 %v4441_v55, %v4441_v55 }
 0x2a7   :  { %v951_v60 = vadd.f32 %v950_v15, %v920_v54  ;;  %v883_v13 = vadd.f32 %v882_v8, %v4443_v6  ;;  %v921_v61 = vmul.f32 %v4443_v6, %v4443_v6 }
 0x2a9   :  { %v884_v62 = vadd.f32 %v4433_v49, %v883_v13  ;;  %v952_v26 = vadd.f32 %v951_v60, %v921_v61 }
 0x2ab   :  { %v953_v41 = vadd.f32 %v952_v26, %v922_v28  ;;  %v4453_v0 = vpop.f32.mrb[24].mxu1  ;;  %v885_v1 = vadd.f32 %v4441_v55, %v884_v62 }
 0x2ac   :  { %v4456_v2 = vpop.f32.mrb[25].mxu1  ;;  %v926_v20 = vmul.f32 %v4453_v0, %v4453_v0 }
 0x2ad   :  { %v886_v5 = vadd.f32 %v885_v1, %v4456_v2  ;;  %v924_v9 = vmul.f32 %v4456_v2, %v4456_v2  ;;  %v954_v10 = vadd.f32 %v953_v41, %v923_v63  ;;  %v4461_v11 = vpop.f32.mrb[26].mxu1 }
 0x2ae   :  { %v4463_v16 = vpop.f32.mrb[27].mxu1  ;;  %v927_v23 = vmul.f32 %v4461_v11, %v4461_v11 }
 0x2af   :  { %v955_v17 = vadd.f32 %v954_v10, %v924_v9  ;;  %v887_v18 = vadd.f32 %v886_v5, %v4463_v16  ;;  %v925_v19 = vmul.f32 %v4463_v16, %v4463_v16 }
 0x2b1   :  { %v888_v21 = vadd.f32 %v4453_v0, %v887_v18  ;;  %v956_v22 = vadd.f32 %v955_v17, %v925_v19 }
 0x2b3   :  { %v957_v25 = vadd.f32 %v956_v22, %v926_v20  ;;  %v4473_v30 = vpop.f32.mrb[28].mxu1  ;;  %v889_v31 = vadd.f32 %v4461_v11, %v888_v21 }
 0x2b4   :  { %v4476_v43 = vpop.f32.mrb[29].mxu1  ;;  %v930_v56 = vmul.f32 %v4473_v30, %v4473_v30 }
 0x2b5   :  { %v890_v34 = vadd.f32 %v889_v31, %v4476_v43  ;;  %v928_v38 = vmul.f32 %v4476_v43, %v4476_v43  ;;  %v958_v32 = vadd.f32 %v957_v25, %v927_v23  ;;  %v4481_v36 = vpop.f32.mrb[30].mxu1 }
 0x2b6   :  { %v4483_v51 = vpop.f32.mrb[31].mxu1  ;;  %v931_v14 = vmul.f32 %v4481_v36, %v4481_v36 }
 0x2b7   :  { %v959_v58 = vadd.f32 %v958_v32, %v928_v38  ;;  %v891_v48 = vadd.f32 %v890_v34, %v4483_v51  ;;  %v929_v29 = vmul.f32 %v4483_v51, %v4483_v51 }
 0x2b9   :  { %v892_v7 = vadd.f32 %v4473_v30, %v891_v48  ;;  %v960_v44 = vadd.f32 %v959_v58, %v929_v29 }
 0x2bb   :  { %v961_v4 = vadd.f32 %v960_v44, %v930_v56  ;;  %v4493_v12 = vpop.f32.mrb[32].mxu1  ;;  %v893_v27 = vadd.f32 %v4481_v36, %v892_v7 }
 0x2bc   :  { %v4496_v45 = vpop.f32.mrb[33].mxu1  ;;  %v934_v57 = vmul.f32 %v4493_v12, %v4493_v12 }
 0x2bd   :  { %v894_v39 = vadd.f32 %v893_v27, %v4496_v45  ;;  %v932_v33 = vmul.f32 %v4496_v45, %v4496_v45  ;;  %v962_v37 = vadd.f32 %v961_v4, %v931_v14  ;;  %v4501_v52 = vpop.f32.mrb[34].mxu1 }
 0x2be   :  { %v4503_v46 = vpop.f32.mrb[35].mxu1  ;;  %v935_v15 = vmul.f32 %v4501_v52, %v4501_v52 }
 0x2bf   :  { %v963_v59 = vadd.f32 %v962_v37, %v932_v33  ;;  %v895_v47 = vadd.f32 %v894_v39, %v4503_v46  ;;  %v933_v50 = vmul.f32 %v4503_v46, %v4503_v46 }
 0x2c1   :  { %v896_v8 = vadd.f32 %v4493_v12, %v895_v47  ;;  %v964_v54 = vadd.f32 %v963_v59, %v933_v50 }
 0x2c3   :  { %v965_v60 = vadd.f32 %v964_v54, %v934_v57  ;;  %v4513_v13 = vpop.f32.mrb[36].mxu1  ;;  %v897_v61 = vadd.f32 %v4501_v52, %v896_v8 }
 0x2c4   :  { %v4516_v28 = vpop.f32.mrb[37].mxu1  ;;  %v938_v17 = vmul.f32 %v4513_v13, %v4513_v13 }
 0x2c5   :  { %v898_v62 = vadd.f32 %v897_v61, %v4516_v28  ;;  %v936_v26 = vmul.f32 %v4516_v28, %v4516_v28  ;;  %v966_v63 = vadd.f32 %v965_v60, %v935_v15  ;;  %v4521_v41 = vpop.f32.mrb[38].mxu1 }
 0x2c6   :  { %v4523_v1 = vpop.f32.mrb[39].mxu1  ;;  %v939_v20 = vmul.f32 %v4521_v41, %v4521_v41 }
 0x2c7   :  { %v967_v5 = vadd.f32 %v966_v63, %v936_v26  ;;  %v899_v9 = vadd.f32 %v898_v62, %v4523_v1  ;;  %v937_v10 = vmul.f32 %v4523_v1, %v4523_v1 }
 0x2c9   :  { %v900_v18 = vadd.f32 %v4513_v13, %v899_v9  ;;  %v968_v19 = vadd.f32 %v967_v5, %v937_v10 }
 0x2cb   :  { %v969_v21 = vadd.f32 %v968_v19, %v938_v17  ;;  %v4533_v22 = vpop.f32.mrb[40].mxu1  ;;  %v901_v23 = vadd.f32 %v4521_v41, %v900_v18 }
 0x2cc   :  { %v4536_v25 = vpop.f32.mrb[41].mxu1  ;;  %v942_v7 = vmul.f32 %v4533_v22, %v4533_v22 }
 0x2cd   :  { %v902_v31 = vadd.f32 %v901_v23, %v4536_v25  ;;  %v940_v34 = vmul.f32 %v4536_v25, %v4536_v25  ;;  %v970_v38 = vadd.f32 %v969_v21, %v939_v20  ;;  %v4541_v32 = vpop.f32.mrb[42].mxu1 }
 0x2ce   :  { %v4543_v58 = vpop.f32.mrb[43].mxu1  ;;  %v943_v4 = vmul.f32 %v4541_v32, %v4541_v32 }
 0x2cf   :  { %v971_v48 = vadd.f32 %v970_v38, %v940_v34  ;;  %v903_v29 = vadd.f32 %v902_v31, %v4543_v58  ;;  %v941_v56 = vmul.f32 %v4543_v58, %v4543_v58 }
 0x2d1   :  { %v904_v44 = vadd.f32 %v4533_v22, %v903_v29  ;;  %v972_v14 = vadd.f32 %v971_v48, %v941_v56 }
 0x2d3   :  { %v973_v27 = vadd.f32 %v972_v14, %v942_v7  ;;  %v4553_v39 = vpop.f32.mrb[44].mxu1  ;;  %v905_v33 = vadd.f32 %v4541_v32, %v904_v44 }
 0x2d4   :  { %v4556_v37 = vpop.f32.mrb[45].mxu1  ;;  %v946_v61 = vmul.f32 %v4553_v39, %v4553_v39 }
 0x2d5   :  { %v906_v59 = vadd.f32 %v905_v33, %v4556_v37  ;;  %v944_v47 = vmul.f32 %v4556_v37, %v4556_v37  ;;  %v974_v50 = vadd.f32 %v973_v27, %v943_v4  ;;  %v4561_v57 = vpop.f32.mrb[46].mxu1 }
 0x2d6   :  { %v865_v8 = vpop.f32.mrb[47].mxu1  ;;  %v947_v63 = vmul.f32 %v4561_v57, %v4561_v57 }
 0x2d7   :  { %v975_v54 = vadd.f32 %v974_v50, %v944_v47  ;;  %v907_v15 = vadd.f32 %v906_v59, %v865_v8  ;;  %v945_v60 = vmul.f32 %v865_v8, %v865_v8  ;;  %v877_v59 = vld [vmem:[#allocation10 + $0x1] sm:$0x1] }
 0x2d9   :  { %v908_v62 = vadd.f32 %v4553_v39, %v907_v15  ;;  %v976_v26 = vadd.f32 %v975_v54, %v945_v60  ;;  %v878_v54 = vld [vmem:[#allocation10 + $0x7] sm:$0x1] }
 0x2db   :  { %v909_v5 = vadd.f32 %v4561_v57, %v908_v62  ;;  %v977_v9 = vadd.f32 %v976_v26, %v946_v61 }
 0x2dd   :  { %v910_v10 = vrot.slane %v909_v5, 4  ;;  %v978_v17 = vadd.f32 %v977_v9, %v947_v63 }
 0x2df   :  { %v911_v18 = vadd.f32 %v910_v10, %v909_v5  ;;  %v979_v19 = vrot.slane %v978_v17, 4 }
 0x2e1   :  { %v912_v20 = vrot.slane %v911_v18, 2  ;;  %v980_v21 = vadd.f32 %v979_v19, %v978_v17 }
 0x2e3   :  { %v913_v23 = vadd.f32 %v912_v20, %v911_v18  ;;  %v981_v31 = vrot.slane %v980_v21, 2 }
 0x2e5   :  { %v914_v34 = vrot.slane %v913_v23, 1  ;;  %v982_v38 = vadd.f32 %v981_v31, %v980_v21 }
 0x2e7   :  { %v915_v48 = vadd.f32 %v914_v34, %v913_v23  ;;  %v983_v29 = vrot.slane %v982_v38, 1 }
 0x2e9   :  { %v984_v56 = vadd.f32 %v983_v29, %v982_v38  ;;  %v985_v7 = vmul.f32 0.00390625, %v915_v48 }
 0x2eb   :  { %v986_v44 = vmul.f32 0.00390625, %v984_v56  ;;  %v987_v14 = vmul.f32 %v985_v7, %v985_v7 }
 0x2ed   :  { %v988_v4 = vsub.f32 %v986_v44, %v987_v14 }
 0x2ef   :  { %v989_v27 = vmax.f32 %v988_v4, 0.0 }
 0x2f1   :  { %v990_v33 = vadd.f32 1e-05, %v989_v27 }
 0x2f3   :  { %3931 = vrsqrt.f32 %v990_v33 }
 0x2fd   :  { %v3932_v47 = vpop.eup %3931 }
 0x2fe   :  { %v992_v50 = vmul.f32 %v3932_v47, %v877_v59 }
 0x300   :  { %v993_v15 = vmul.f32 %v992_v50, %v985_v7  ;;  %v998_v60 = vrot.slane %v992_v50, %v4375_v3 }
 0x302   :  { %v994_v61 = vsub.f32 %v878_v54, %v993_v15  ;;  %v1028_v62 = vmul.f32 %v998_v60, %v865_v8  ;;  %v999_v26 = vmul.f32 %v998_v60, %v4416_v24  ;;  %v1000_v63 = vmul.f32 %v998_v60, %v4420_v35 }
 0x303   :  { %v1001_v5 = vmul.f32 %v4414_v42, %v998_v60  ;;  %v1002_v9 = vmul.f32 %v4418_v40, %v998_v60  ;;  %v1003_v10 = vmul.f32 %v998_v60, %v4436_v53  ;;  %v1004_v17 = vmul.f32 %v998_v60, %v4443_v6 }
 0x304   :  { %v1034_v18 = vrot.slane %v994_v61, %v4375_v3  ;;  %v1005_v19 = vmul.f32 %v4433_v49, %v998_v60  ;;  %v1006_v20 = vmul.f32 %v4441_v55, %v998_v60  ;;  %v1007_v8 = vmul.f32 %v998_v60, %v4456_v2 }
 0x305   :  { %v1008_v24 = vmul.f32 %v998_v60, %v4463_v16  ;;  %v1009_v35 = vmul.f32 %v4453_v0, %v998_v60  ;;  %v1010_v42 = vmul.f32 %v4461_v11, %v998_v60  ;;  %v1011_v40 = vmul.f32 %v998_v60, %v4476_v43 }
 0x306   :  { %v4584_v21 = vadd.f32 %v1034_v18, %v1028_v62  ;;  %v1012_v53 = vmul.f32 %v998_v60, %v4483_v51  ;;  %v1013_v6 = vmul.f32 %v4473_v30, %v998_v60  ;;  %v1014_v49 = vmul.f32 %v4481_v36, %v998_v60 }
 0x307   :  { %v1015_v55 = vmul.f32 %v998_v60, %v4496_v45  ;;  %v1016_v2 = vmul.f32 %v998_v60, %v4503_v46  ;;  %v1017_v16 = vmul.f32 %v4493_v12, %v998_v60  ;;  %v1018_v0 = vmul.f32 %v4501_v52, %v998_v60 }
 0x308   :  { %v1019_v11 = vmul.f32 %v998_v60, %v4516_v28  ;;  %v1020_v43 = vmul.f32 %v998_v60, %v4523_v1  ;;  %v1021_v23 = vmul.f32 %v4513_v13, %v998_v60  ;;  %v1022_v51 = vmul.f32 %v4521_v41, %v998_v60 }
 0x309   :  { %v1023_v30 = vmul.f32 %v998_v60, %v4536_v25  ;;  %v1024_v36 = vmul.f32 %v998_v60, %v4543_v58  ;;  %v1025_v45 = vmul.f32 %v4533_v22, %v998_v60  ;;  %v1026_v46 = vmul.f32 %v4541_v32, %v998_v60 }
 0x30a   :  { %v1027_v12 = vmul.f32 %v998_v60, %v4556_v37  ;;  %v1029_v52 = vmul.f32 %v4553_v39, %v998_v60  ;;  %v1030_v28 = vmul.f32 %v4561_v57, %v998_v60  ;;  %v1035_v31 = vadd.f32 %v1034_v18, %v999_v26 }
 0x30b   :  { %v1036_v1 = vadd.f32 %v1034_v18, %v1000_v63  ;;  %v1037_v34 = vadd.f32 %v1034_v18, %v1001_v5  ;;  %v1038_v13 = vadd.f32 %v1034_v18, %v1002_v9  ;;  %v1039_v38 = vadd.f32 %v1034_v18, %v1003_v10 }
 0x30c   :  { %v1040_v41 = vadd.f32 %v1034_v18, %v1004_v17  ;;  %v1041_v48 = vadd.f32 %v1034_v18, %v1005_v19  ;;  %v1042_v25 = vadd.f32 %v1034_v18, %v1006_v20  ;;  %v1043_v29 = vadd.f32 %v1034_v18, %v1007_v8 }
 0x30d   :  { %v1044_v58 = vadd.f32 %v1034_v18, %v1008_v24  ;;  %v1045_v56 = vadd.f32 %v1034_v18, %v1009_v35  ;;  %v1046_v22 = vadd.f32 %v1034_v18, %v1010_v42  ;;  %v1047_v7 = vadd.f32 %v1034_v18, %v1011_v40 }
 0x30e   :  { %v1048_v32 = vadd.f32 %v1034_v18, %v1012_v53  ;;  %v1049_v44 = vadd.f32 %v1034_v18, %v1013_v6  ;;  %v1050_v37 = vadd.f32 %v1034_v18, %v1014_v49  ;;  %v1051_v14 = vadd.f32 %v1034_v18, %v1015_v55 }
 0x30f   :  { %v1052_v39 = vadd.f32 %v1034_v18, %v1016_v2  ;;  %v1053_v4 = vadd.f32 %v1034_v18, %v1017_v16  ;;  %v1054_v57 = vadd.f32 %v1034_v18, %v1018_v0  ;;  %v1055_v27 = vadd.f32 %v1034_v18, %v1019_v11 }
 0x310   :  { %v1056_v33 = vadd.f32 %v1034_v18, %v1020_v43  ;;  %v1057_v59 = vadd.f32 %v1034_v18, %v1021_v23  ;;  %v1058_v47 = vadd.f32 %v1034_v18, %v1022_v51  ;;  %v1059_v50 = vadd.f32 %v1034_v18, %v1023_v30 }
 0x311   :  { %v1060_v54 = vadd.f32 %v1034_v18, %v1024_v36  ;;  %v1061_v15 = vadd.f32 %v1034_v18, %v1025_v45  ;;  %v1062_v60 = vadd.f32 %v1034_v18, %v1026_v46  ;;  %v1063_v61 = vadd.f32 %v1034_v18, %v1027_v12 }
 0x312   :  { %v1065_v62 = vadd.f32 %v1034_v18, %v1029_v52  ;;  %v1066_v26 = vadd.f32 %v1034_v18, %v1030_v28  ;;  %v1069_v63 = vmax.f32 %v1037_v34, 0.0  ;;  %v1070_v5 = vmax.f32 %v1038_v13, 0.0 }
 0x313   :  { %v1067_v9 = vmax.f32 %v1035_v31, 0.0  ;;  %v1068_v10 = vmax.f32 %v1036_v1, 0.0  ;;  %v1071_v17 = vmax.f32 %v1039_v38, 0.0  ;;  %v1072_v19 = vmax.f32 %v1040_v41, 0.0 }
 0x314   :  { %v1100_v20 = vpack.c.bf16 %v1070_v5, %v1069_v63  ;;  %v1073_v8 = vmax.f32 %v1041_v48, 0.0  ;;  %v1074_v24 = vmax.f32 %v1042_v25, 0.0  ;;  %v1075_v35 = vmax.f32 %v1043_v29, 0.0 }
 0x315   :  { %v1099_v42 = vpack.c.bf16 %v1068_v10, %v1067_v9  ;;  %v1101_v40 = vpack.c.bf16 %v1072_v19, %v1071_v17  ;;  %v1076_v53 = vmax.f32 %v1044_v58, 0.0  ;;  %v1077_v6 = vmax.f32 %v1045_v56, 0.0 }
 0x316   :  { %v1102_v49 = vpack.c.bf16 %v1074_v24, %v1073_v8  ;;  %v1078_v55 = vmax.f32 %v1046_v22, 0.0  ;;  %v1079_v2 = vmax.f32 %v1047_v7, 0.0  ;;  %v1080_v16 = vmax.f32 %v1048_v32, 0.0 }
 0x317   :  { %3607 = vmatprep.mubr.bf16.mxu0 %v1099_v42  ;;  %v1103_v18 = vpack.c.bf16 %v1076_v53, %v1075_v35  ;;  %v1081_v0 = vmax.f32 %v1049_v44, 0.0  ;;  %v1082_v11 = vmax.f32 %v1050_v37, 0.0  ;;  %v1083_v43 = vmax.f32 %v1051_v14, 0.0 }
 0x318   :  { %3608 = vmatmul.mubr.bf16.vlgmr.msra.gmra.mrb[16].mxu0 %v1100_v20  ;;  %v1104_v23 = vpack.c.bf16 %v1078_v55, %v1077_v6  ;;  %v1105_v51 = vpack.c.bf16 %v1080_v16, %v1079_v2  ;;  %v1084_v30 = vmax.f32 %v1052_v39, 0.0  ;;  %v1085_v36 = vmax.f32 %v1053_v4, 0.0  ;;  %v3898_v39 = vld [vmem:[#allocation7 + $0x88] sm:$0xff]   ;;  %v3899_v4 = vld [vmem:[#allocation7 + $0x90] sm:$0xff]  }
 0x319   :  { %3611 = vmatprep.mubr.bf16.mxu0 %v1101_v40  ;;  %v1106_v45 = vpack.c.bf16 %v1082_v11, %v1081_v0  ;;  %v1086_v46 = vmax.f32 %v1054_v57, 0.0  ;;  %v1087_v12 = vmax.f32 %v1055_v27, 0.0  ;;  %v1088_v52 = vmax.f32 %v1056_v33, 0.0  ;;  %v3900_v57 = vld [vmem:[#allocation7 + $0x98] sm:$0xff]   ;;  %v3901_v27 = vld [vmem:[#allocation7 + $0xa0] sm:$0xff]   ;;  %v3902_v33 = vld [vmem:[#allocation7 + $0xa8] sm:$0xff]  }
 0x31a   :  { %v1107_v28 = vpack.c.bf16 %v1084_v30, %v1083_v43  ;;  %v1089_v31 = vmax.f32 %v1057_v59, 0.0  ;;  %v1090_v1 = vmax.f32 %v1058_v47, 0.0  ;;  %v1091_v34 = vmax.f32 %v1059_v50, 0.0  ;;  %v3903_v59 = vld [vmem:[#allocation7 + $0xb0] sm:$0xff]   ;;  %v3904_v47 = vld [vmem:[#allocation7 + $0xb8] sm:$0xff]  }
 0x31b   :  { %v1108_v13 = vpack.c.bf16 %v1086_v46, %v1085_v36  ;;  %v1109_v38 = vpack.c.bf16 %v1088_v52, %v1087_v12  ;;  %v1092_v41 = vmax.f32 %v1060_v54, 0.0  ;;  %v1093_v48 = vmax.f32 %v1061_v15, 0.0 }
 0x31c   :  { %v1110_v25 = vpack.c.bf16 %v1090_v1, %v1089_v31  ;;  %v1094_v29 = vmax.f32 %v1062_v60, 0.0  ;;  %v1095_v58 = vmax.f32 %v1063_v61, 0.0  ;;  %v1096_v56 = vmax.f32 %v4584_v21, 0.0  ;;  %v3897_v21 = vld [vmem:[#allocation7 + $0x80] sm:$0xff]  }
 0x31d   :  { %v1111_v22 = vpack.c.bf16 %v1092_v41, %v1091_v34  ;;  %v1097_v7 = vmax.f32 %v1065_v62, 0.0  ;;  %v1098_v32 = vmax.f32 %v1066_v26, 0.0  ;;  %3639 = vmatprep.subr.bf16.mxu1 %v3897_v21 }
 0x31e   :  { %v1112_v44 = vpack.c.bf16 %v1094_v29, %v1093_v48  ;;  %v1113_v37 = vpack.c.bf16 %v1096_v56, %v1095_v58  ;;  %3640 = vmatpush3.bf16.msra.mxu1 %v3897_v21 }
 0x31f   :  { %v1114_v14 = vpack.c.bf16 %v1098_v32, %v1097_v7  ;;  %3641 = vmatprep.subr.bf16.mxu1 %v3898_v39 }
 0x320   :  { %3612 = vmatmul.mubr.bf16.gmra.mrb[20].mxu0 %v1102_v49 }
 0x321   :  { %3615 = vmatprep.mubr.bf16.mxu0 %v1103_v18 }
 0x322   :  { %3642 = vmatpush3.bf16.msra.mxu1 %v3898_v39 }
 0x323   :  { %3643 = vmatprep.subr.bf16.mxu1 %v3899_v4 }
 0x326   :  { %3644 = vmatpush3.bf16.msra.mxu1 %v3899_v4 }
 0x327   :  { %3645 = vmatprep.subr.bf16.mxu1 %v3900_v57 }
 0x328   :  { %3616 = vmatmul.mubr.bf16.gmra.mrb[24].mxu0 %v1104_v23 }
 0x329   :  { %3619 = vmatprep.mubr.bf16.mxu0 %v1105_v51 }
 0x32a   :  { %3646 = vmatpush3.bf16.msra.mxu1 %v3900_v57 }
 0x32b   :  { %3647 = vmatprep.subr.bf16.mxu1 %v3901_v27 }
 0x32e   :  { %3648 = vmatpush3.bf16.msra.mxu1 %v3901_v27 }
 0x32f   :  { %3649 = vmatprep.subr.bf16.mxu1 %v3902_v33 }
 0x330   :  { %3620 = vmatmul.mubr.bf16.gmra.mrb[28].mxu0 %v1106_v45 }
 0x331   :  { %3623 = vmatprep.mubr.bf16.mxu0 %v1107_v28 }
 0x332   :  { %3650 = vmatpush3.bf16.msra.mxu1 %v3902_v33 }
 0x333   :  { %3651 = vmatprep.subr.bf16.mxu1 %v3903_v59 }
 0x336   :  { %3652 = vmatpush3.bf16.msra.mxu1 %v3903_v59 }
 0x337   :  { %3653 = vmatprep.subr.bf16.mxu1 %v3904_v47 }
 0x338   :  { %3624 = vmatmul.mubr.bf16.gmra.mrb[32].mxu0 %v1108_v13 }
 0x339   :  { %3627 = vmatprep.mubr.bf16.mxu0 %v1109_v38 }
 0x33a   :  { %3654 = vmatpush3.bf16.msra.mxu1 %v3904_v47 }
 0x340   :  { %3628 = vmatmul.mubr.bf16.gmra.mrb[36].mxu0 %v1110_v25 }
 0x341   :  { %3631 = vmatprep.mubr.bf16.mxu0 %v1111_v22 }
 0x348   :  { %3632 = vmatmul.mubr.bf16.gmra.mrb[40].mxu0 %v1112_v44 }
 0x349   :  { %3635 = vmatprep.mubr.bf16.mxu0 %v1113_v37 }
 0x350   :  { %3636 = vmatmul.mubr.bf16.gmra.mrb[44].mxu0 %v1114_v14 }
 0x3eb   :  { %v4605_v50 = vpop.f32.mrb[16].mxu0 }
 0x3ec   :  { %v4607_v54 = vpop.f32.mrb[17].mxu0  ;;  %v1382_v63 = vmul.f32 %v4605_v50, %v4605_v50 }
 0x3ed   :  { %v4609_v15 = vpop.f32.mrb[18].mxu0  ;;  %v1380_v61 = vmul.f32 %v4607_v54, %v4607_v54 }
 0x3ee   :  { %v4611_v60 = vpop.f32.mrb[19].mxu0  ;;  %v1383_v10 = vmul.f32 %v4609_v15, %v4609_v15 }
 0x3ef   :  { %v1343_v62 = vadd.f32 %v4611_v60, %v4607_v54  ;;  %v1381_v26 = vmul.f32 %v4611_v60, %v4611_v60 }
 0x3f1   :  { %v1344_v5 = vadd.f32 %v4605_v50, %v1343_v62  ;;  %v1412_v9 = vadd.f32 %v1381_v26, %v1380_v61 }
 0x3f3   :  { %v1413_v17 = vadd.f32 %v1412_v9, %v1382_v63  ;;  %v4624_v19 = vpop.f32.mrb[20].mxu0  ;;  %v1345_v20 = vadd.f32 %v4609_v15, %v1344_v5 }
 0x3f4   :  { %v4627_v8 = vpop.f32.mrb[21].mxu0  ;;  %v1386_v2 = vmul.f32 %v4624_v19, %v4624_v19 }
 0x3f5   :  { %v1346_v24 = vadd.f32 %v1345_v20, %v4627_v8  ;;  %v1384_v35 = vmul.f32 %v4627_v8, %v4627_v8  ;;  %v1414_v42 = vadd.f32 %v1413_v17, %v1383_v10  ;;  %v4632_v40 = vpop.f32.mrb[22].mxu0 }
 0x3f6   :  { %v4634_v53 = vpop.f32.mrb[23].mxu0  ;;  %v1387_v0 = vmul.f32 %v4632_v40, %v4632_v40 }
 0x3f7   :  { %v1415_v6 = vadd.f32 %v1414_v42, %v1384_v35  ;;  %v1347_v49 = vadd.f32 %v1346_v24, %v4634_v53  ;;  %v1385_v55 = vmul.f32 %v4634_v53, %v4634_v53 }
 0x3f9   :  { %v1348_v16 = vadd.f32 %v4624_v19, %v1347_v49  ;;  %v1416_v18 = vadd.f32 %v1415_v6, %v1385_v55 }
 0x3fb   :  { %v1417_v11 = vadd.f32 %v1416_v18, %v1386_v2  ;;  %v4644_v43 = vpop.f32.mrb[24].mxu0  ;;  %v1349_v23 = vadd.f32 %v4632_v40, %v1348_v16 }
 0x3fc   :  { %v4647_v51 = vpop.f32.mrb[25].mxu0  ;;  %v1390_v1 = vmul.f32 %v4644_v43, %v4644_v43 }
 0x3fd   :  { %v1350_v30 = vadd.f32 %v1349_v23, %v4647_v51  ;;  %v1388_v36 = vmul.f32 %v4647_v51, %v4647_v51  ;;  %v1418_v45 = vadd.f32 %v1417_v11, %v1387_v0  ;;  %v4652_v46 = vpop.f32.mrb[26].mxu0 }
 0x3fe   :  { %v4654_v12 = vpop.f32.mrb[27].mxu0  ;;  %v1391_v38 = vmul.f32 %v4652_v46, %v4652_v46 }
 0x3ff   :  { %v1419_v52 = vadd.f32 %v1418_v45, %v1388_v36  ;;  %v1351_v28 = vadd.f32 %v1350_v30, %v4654_v12  ;;  %v1389_v31 = vmul.f32 %v4654_v12, %v4654_v12 }
 0x401   :  { %v1352_v34 = vadd.f32 %v4644_v43, %v1351_v28  ;;  %v1420_v13 = vadd.f32 %v1419_v52, %v1389_v31 }
 0x403   :  { %v1421_v41 = vadd.f32 %v1420_v13, %v1390_v1  ;;  %v4664_v48 = vpop.f32.mrb[28].mxu0  ;;  %v1353_v25 = vadd.f32 %v4652_v46, %v1352_v34 }
 0x404   :  { %v4667_v29 = vpop.f32.mrb[29].mxu0  ;;  %v1394_v21 = vmul.f32 %v4664_v48, %v4664_v48 }
 0x405   :  { %v1354_v58 = vadd.f32 %v1353_v25, %v4667_v29  ;;  %v1392_v56 = vmul.f32 %v4667_v29, %v4667_v29  ;;  %v1422_v22 = vadd.f32 %v1421_v41, %v1391_v38  ;;  %v4672_v7 = vpop.f32.mrb[30].mxu0 }
 0x406   :  { %v4674_v32 = vpop.f32.mrb[31].mxu0  ;;  %v1395_v57 = vmul.f32 %v4672_v7, %v4672_v7 }
 0x407   :  { %v1423_v44 = vadd.f32 %v1422_v22, %v1392_v56  ;;  %v1355_v37 = vadd.f32 %v1354_v58, %v4674_v32  ;;  %v1393_v14 = vmul.f32 %v4674_v32, %v4674_v32 }
 0x409   :  { %v1356_v39 = vadd.f32 %v4664_v48, %v1355_v37  ;;  %v1424_v4 = vadd.f32 %v1423_v44, %v1393_v14 }
 0x40b   :  { %v1425_v27 = vadd.f32 %v1424_v4, %v1394_v21  ;;  %v4684_v33 = vpop.f32.mrb[32].mxu0  ;;  %v1357_v59 = vadd.f32 %v4672_v7, %v1356_v39 }
 0x40c   :  { %v4687_v47 = vpop.f32.mrb[33].mxu0  ;;  %v1398_v20 = vmul.f32 %v4684_v33, %v4684_v33 }
 0x40d   :  { %v1358_v61 = vadd.f32 %v1357_v59, %v4687_v47  ;;  %v1396_v62 = vmul.f32 %v4687_v47, %v4687_v47  ;;  %v1426_v26 = vadd.f32 %v1425_v27, %v1395_v57  ;;  %v4692_v63 = vpop.f32.mrb[34].mxu0 }
 0x40e   :  { %v4694_v5 = vpop.f32.mrb[35].mxu0  ;;  %v1399_v42 = vmul.f32 %v4692_v63, %v4692_v63 }
 0x40f   :  { %v1427_v9 = vadd.f32 %v1426_v26, %v1396_v62  ;;  %v1359_v10 = vadd.f32 %v1358_v61, %v4694_v5  ;;  %v1397_v17 = vmul.f32 %v4694_v5, %v4694_v5 }
 0x411   :  { %v1360_v24 = vadd.f32 %v4684_v33, %v1359_v10  ;;  %v1428_v35 = vadd.f32 %v1427_v9, %v1397_v17 }
 0x413   :  { %v1429_v6 = vadd.f32 %v1428_v35, %v1398_v20  ;;  %v4704_v49 = vpop.f32.mrb[36].mxu0  ;;  %v1361_v55 = vadd.f32 %v4692_v63, %v1360_v24 }
 0x414   :  { %v4707_v2 = vpop.f32.mrb[37].mxu0  ;;  %v1402_v52 = vmul.f32 %v4704_v49, %v4704_v49 }
 0x415   :  { %v1362_v16 = vadd.f32 %v1361_v55, %v4707_v2  ;;  %v1400_v18 = vmul.f32 %v4707_v2, %v4707_v2  ;;  %v1430_v0 = vadd.f32 %v1429_v6, %v1399_v42  ;;  %v4712_v11 = vpop.f32.mrb[38].mxu0 }
 0x416   :  { %v4714_v23 = vpop.f32.mrb[39].mxu0  ;;  %v1403_v1 = vmul.f32 %v4712_v11, %v4712_v11 }
 0x417   :  { %v1431_v30 = vadd.f32 %v1430_v0, %v1400_v18  ;;  %v1363_v36 = vadd.f32 %v1362_v16, %v4714_v23  ;;  %v1401_v45 = vmul.f32 %v4714_v23, %v4714_v23 }
 0x419   :  { %v1364_v28 = vadd.f32 %v4704_v49, %v1363_v36  ;;  %v1432_v31 = vadd.f32 %v1431_v30, %v1401_v45 }
 0x41b   :  { %v1433_v34 = vadd.f32 %v1432_v31, %v1402_v52  ;;  %v4724_v13 = vpop.f32.mrb[40].mxu0  ;;  %v1365_v38 = vadd.f32 %v4712_v11, %v1364_v28 }
 0x41c   :  { %v4727_v41 = vpop.f32.mrb[41].mxu0  ;;  %v1406_v39 = vmul.f32 %v4724_v13, %v4724_v13 }
 0x41d   :  { %v1366_v25 = vadd.f32 %v1365_v38, %v4727_v41  ;;  %v1404_v58 = vmul.f32 %v4727_v41, %v4727_v41  ;;  %v1434_v56 = vadd.f32 %v1433_v34, %v1403_v1  ;;  %v4732_v22 = vpop.f32.mrb[42].mxu0 }
 0x41e   :  { %v4734_v44 = vpop.f32.mrb[43].mxu0  ;;  %v1407_v27 = vmul.f32 %v4732_v22, %v4732_v22 }
 0x41f   :  { %v1435_v37 = vadd.f32 %v1434_v56, %v1404_v58  ;;  %v1367_v14 = vadd.f32 %v1366_v25, %v4734_v44  ;;  %v1405_v21 = vmul.f32 %v4734_v44, %v4734_v44 }
 0x421   :  { %v1368_v4 = vadd.f32 %v4724_v13, %v1367_v14  ;;  %v1436_v57 = vadd.f32 %v1435_v37, %v1405_v21 }
 0x423   :  { %v1437_v59 = vadd.f32 %v1436_v57, %v1406_v39  ;;  %v4744_v61 = vpop.f32.mrb[44].mxu0  ;;  %v1369_v62 = vadd.f32 %v4732_v22, %v1368_v4 }
 0x424   :  { %v4747_v26 = vpop.f32.mrb[45].mxu0  ;;  %v1410_v55 = vmul.f32 %v4744_v61, %v4744_v61 }
 0x425   :  { %v1370_v9 = vadd.f32 %v1369_v62, %v4747_v26  ;;  %v1408_v10 = vmul.f32 %v4747_v26, %v4747_v26  ;;  %v1438_v17 = vadd.f32 %v1437_v59, %v1407_v27  ;;  %v4752_v20 = vpop.f32.mrb[46].mxu0 }
 0x426   :  { %v1329_v24 = vpop.f32.mrb[47].mxu0  ;;  %v1411_v0 = vmul.f32 %v4752_v20, %v4752_v20 }
 0x427   :  { %v1439_v35 = vadd.f32 %v1438_v17, %v1408_v10  ;;  %v1371_v42 = vadd.f32 %v1370_v9, %v1329_v24  ;;  %v1409_v6 = vmul.f32 %v1329_v24, %v1329_v24  ;;  %v1341_v9 = vld [vmem:[#allocation10 + $0x2] sm:$0x1] }
 0x429   :  { %v1372_v16 = vadd.f32 %v4744_v61, %v1371_v42  ;;  %v1440_v18 = vadd.f32 %v1439_v35, %v1409_v6  ;;  %v1342_v35 = vld [vmem:[#allocation10 + $0x8] sm:$0x1] }
 0x42b   :  { %v1373_v30 = vadd.f32 %v4752_v20, %v1372_v16  ;;  %v1441_v36 = vadd.f32 %v1440_v18, %v1410_v55 }
 0x42d   :  { %v1374_v45 = vrot.slane %v1373_v30, 4  ;;  %v1442_v52 = vadd.f32 %v1441_v36, %v1411_v0 }
 0x42f   :  { %v1375_v28 = vadd.f32 %v1374_v45, %v1373_v30  ;;  %v1443_v31 = vrot.slane %v1442_v52, 4 }
 0x431   :  { %v1376_v1 = vrot.slane %v1375_v28, 2  ;;  %v1444_v34 = vadd.f32 %v1443_v31, %v1442_v52 }
 0x433   :  { %v1377_v38 = vadd.f32 %v1376_v1, %v1375_v28  ;;  %v1445_v25 = vrot.slane %v1444_v34, 2 }
 0x435   :  { %v1378_v58 = vrot.slane %v1377_v38, 1  ;;  %v1446_v56 = vadd.f32 %v1445_v25, %v1444_v34 }
 0x437   :  { %v1379_v37 = vadd.f32 %v1378_v58, %v1377_v38  ;;  %v1447_v14 = vrot.slane %v1446_v56, 1 }
 0x439   :  { %v1448_v21 = vadd.f32 %v1447_v14, %v1446_v56  ;;  %v1449_v39 = vmul.f32 0.00390625, %v1379_v37 }
 0x43b   :  { %v1450_v4 = vmul.f32 0.00390625, %v1448_v21  ;;  %v1451_v57 = vmul.f32 %v1449_v39, %v1449_v39 }
 0x43d   :  { %v1452_v27 = vsub.f32 %v1450_v4, %v1451_v57 }
 0x43f   :  { %v1453_v59 = vmax.f32 %v1452_v27, 0.0 }
 0x441   :  { %v1454_v62 = vadd.f32 1e-05, %v1453_v59 }
 0x443   :  { %3933 = vrsqrt.f32 %v1454_v62 }
 0x44d   :  { %v3934_v10 = vpop.eup %3933 }
 0x44e   :  { %v1456_v17 = vmul.f32 %v3934_v10, %v1341_v9 }
 0x450   :  { %v1457_v42 = vmul.f32 %v1456_v17, %v1449_v39  ;;  %v1462_v6 = vrot.slane %v1456_v17, %v4375_v3 }
 0x452   :  { %v1458_v55 = vsub.f32 %v1342_v35, %v1457_v42  ;;  %v1492_v16 = vmul.f32 %v1462_v6, %v1329_v24  ;;  %v1463_v18 = vmul.f32 %v1462_v6, %v4607_v54  ;;  %v1464_v0 = vmul.f32 %v1462_v6, %v4611_v60 }
 0x453   :  { %v1465_v30 = vmul.f32 %v4605_v50, %v1462_v6  ;;  %v1466_v36 = vmul.f32 %v4609_v15, %v1462_v6  ;;  %v1467_v45 = vmul.f32 %v1462_v6, %v4627_v8  ;;  %v1468_v52 = vmul.f32 %v1462_v6, %v4634_v53 }
 0x454   :  { %v1498_v28 = vrot.slane %v1458_v55, %v4375_v3  ;;  %v1469_v31 = vmul.f32 %v4624_v19, %v1462_v6  ;;  %v1470_v1 = vmul.f32 %v4632_v40, %v1462_v6  ;;  %v1471_v24 = vmul.f32 %v1462_v6, %v4647_v51 }
 0x455   :  { %v1472_v54 = vmul.f32 %v1462_v6, %v4654_v12  ;;  %v1473_v60 = vmul.f32 %v4644_v43, %v1462_v6  ;;  %v1474_v50 = vmul.f32 %v4652_v46, %v1462_v6  ;;  %v1475_v15 = vmul.f32 %v1462_v6, %v4667_v29 }
 0x456   :  { %v4775_v34 = vadd.f32 %v1498_v28, %v1492_v16  ;;  %v1476_v8 = vmul.f32 %v1462_v6, %v4674_v32  ;;  %v1477_v53 = vmul.f32 %v4664_v48, %v1462_v6  ;;  %v1478_v19 = vmul.f32 %v4672_v7, %v1462_v6 }
 0x457   :  { %v1479_v40 = vmul.f32 %v1462_v6, %v4687_v47  ;;  %v1480_v51 = vmul.f32 %v1462_v6, %v4694_v5  ;;  %v1481_v12 = vmul.f32 %v4684_v33, %v1462_v6  ;;  %v1482_v43 = vmul.f32 %v4692_v63, %v1462_v6 }
 0x458   :  { %v1483_v46 = vmul.f32 %v1462_v6, %v4707_v2  ;;  %v1484_v29 = vmul.f32 %v1462_v6, %v4714_v23  ;;  %v1485_v38 = vmul.f32 %v4704_v49, %v1462_v6  ;;  %v1486_v32 = vmul.f32 %v4712_v11, %v1462_v6 }
 0x459   :  { %v1487_v48 = vmul.f32 %v1462_v6, %v4727_v41  ;;  %v1488_v7 = vmul.f32 %v1462_v6, %v4734_v44  ;;  %v1489_v47 = vmul.f32 %v4724_v13, %v1462_v6  ;;  %v1490_v5 = vmul.f32 %v4732_v22, %v1462_v6 }
 0x45a   :  { %v1491_v33 = vmul.f32 %v1462_v6, %v4747_v26  ;;  %v1493_v63 = vmul.f32 %v4744_v61, %v1462_v6  ;;  %v1494_v2 = vmul.f32 %v4752_v20, %v1462_v6  ;;  %v1499_v25 = vadd.f32 %v1498_v28, %v1463_v18 }
 0x45b   :  { %v1500_v23 = vadd.f32 %v1498_v28, %v1464_v0  ;;  %v1501_v58 = vadd.f32 %v1498_v28, %v1465_v30  ;;  %v1502_v49 = vadd.f32 %v1498_v28, %v1466_v36  ;;  %v1503_v56 = vadd.f32 %v1498_v28, %v1467_v45 }
 0x45c   :  { %v1504_v11 = vadd.f32 %v1498_v28, %v1468_v52  ;;  %v1505_v37 = vadd.f32 %v1498_v28, %v1469_v31  ;;  %v1506_v41 = vadd.f32 %v1498_v28, %v1470_v1  ;;  %v1507_v14 = vadd.f32 %v1498_v28, %v1471_v24 }
 0x45d   :  { %v1508_v44 = vadd.f32 %v1498_v28, %v1472_v54  ;;  %v1509_v21 = vadd.f32 %v1498_v28, %v1473_v60  ;;  %v1510_v13 = vadd.f32 %v1498_v28, %v1474_v50  ;;  %v1511_v39 = vadd.f32 %v1498_v28, %v1475_v15 }
 0x45e   :  { %v1512_v22 = vadd.f32 %v1498_v28, %v1476_v8  ;;  %v1513_v4 = vadd.f32 %v1498_v28, %v1477_v53  ;;  %v1514_v26 = vadd.f32 %v1498_v28, %v1478_v19  ;;  %v1515_v57 = vadd.f32 %v1498_v28, %v1479_v40 }
 0x45f   :  { %v1516_v61 = vadd.f32 %v1498_v28, %v1480_v51  ;;  %v1517_v27 = vadd.f32 %v1498_v28, %v1481_v12  ;;  %v1518_v20 = vadd.f32 %v1498_v28, %v1482_v43  ;;  %v1519_v59 = vadd.f32 %v1498_v28, %v1483_v46 }
 0x460   :  { %v1520_v62 = vadd.f32 %v1498_v28, %v1484_v29  ;;  %v1521_v9 = vadd.f32 %v1498_v28, %v1485_v38  ;;  %v1522_v10 = vadd.f32 %v1498_v28, %v1486_v32  ;;  %v1523_v17 = vadd.f32 %v1498_v28, %v1487_v48 }
 0x461   :  { %v1524_v35 = vadd.f32 %v1498_v28, %v1488_v7  ;;  %v1525_v42 = vadd.f32 %v1498_v28, %v1489_v47  ;;  %v1526_v6 = vadd.f32 %v1498_v28, %v1490_v5  ;;  %v1527_v55 = vadd.f32 %v1498_v28, %v1491_v33 }
 0x462   :  { %v1529_v16 = vadd.f32 %v1498_v28, %v1493_v63  ;;  %v1530_v18 = vadd.f32 %v1498_v28, %v1494_v2  ;;  %v1533_v0 = vmax.f32 %v1501_v58, 0.0  ;;  %v1534_v30 = vmax.f32 %v1502_v49, 0.0 }
 0x463   :  { %v1531_v36 = vmax.f32 %v1499_v25, 0.0  ;;  %v1532_v45 = vmax.f32 %v1500_v23, 0.0  ;;  %v1535_v52 = vmax.f32 %v1503_v56, 0.0  ;;  %v1536_v31 = vmax.f32 %v1504_v11, 0.0 }
 0x464   :  { %v1564_v1 = vpack.c.bf16 %v1534_v30, %v1533_v0  ;;  %v1537_v24 = vmax.f32 %v1505_v37, 0.0  ;;  %v1538_v54 = vmax.f32 %v1506_v41, 0.0  ;;  %v1539_v60 = vmax.f32 %v1507_v14, 0.0 }
 0x465   :  { %v1563_v50 = vpack.c.bf16 %v1532_v45, %v1531_v36  ;;  %v1565_v15 = vpack.c.bf16 %v1536_v31, %v1535_v52  ;;  %v1540_v8 = vmax.f32 %v1508_v44, 0.0  ;;  %v1541_v53 = vmax.f32 %v1509_v21, 0.0 }
 0x466   :  { %v1566_v19 = vpack.c.bf16 %v1538_v54, %v1537_v24  ;;  %v1542_v40 = vmax.f32 %v1510_v13, 0.0  ;;  %v1543_v51 = vmax.f32 %v1511_v39, 0.0  ;;  %v1544_v12 = vmax.f32 %v1512_v22, 0.0 }
 0x467   :  { %3655 = vmatprep.mubr.bf16.mxu1 %v1563_v50  ;;  %v1567_v28 = vpack.c.bf16 %v1540_v8, %v1539_v60  ;;  %v1545_v43 = vmax.f32 %v1513_v4, 0.0  ;;  %v1546_v46 = vmax.f32 %v1514_v26, 0.0  ;;  %v1547_v29 = vmax.f32 %v1515_v57, 0.0 }
 0x468   :  { %3656 = vmatmul.mubr.bf16.vlgmr.msra.gmra.mrb[48].mxu1 %v1564_v1  ;;  %v1568_v38 = vpack.c.bf16 %v1542_v40, %v1541_v53  ;;  %v1569_v32 = vpack.c.bf16 %v1544_v12, %v1543_v51  ;;  %v1548_v48 = vmax.f32 %v1516_v61, 0.0  ;;  %v1549_v7 = vmax.f32 %v1517_v27, 0.0  ;;  %v3906_v61 = vld [vmem:[#allocation7 + $0xc8] sm:$0xff]   ;;  %v3907_v27 = vld [vmem:[#allocation7 + $0xd0] sm:$0xff]  }
 0x469   :  { %3659 = vmatprep.mubr.bf16.mxu1 %v1565_v15  ;;  %v1570_v47 = vpack.c.bf16 %v1546_v46, %v1545_v43  ;;  %v1550_v5 = vmax.f32 %v1518_v20, 0.0  ;;  %v1551_v33 = vmax.f32 %v1519_v59, 0.0  ;;  %v1552_v63 = vmax.f32 %v1520_v62, 0.0  ;;  %v3908_v20 = vld [vmem:[#allocation7 + $0xd8] sm:$0xff]   ;;  %v3909_v59 = vld [vmem:[#allocation7 + $0xe0] sm:$0xff]   ;;  %v3910_v62 = vld [vmem:[#allocation7 + $0xe8] sm:$0xff]  }
 0x46a   :  { %v1571_v2 = vpack.c.bf16 %v1548_v48, %v1547_v29  ;;  %v1553_v25 = vmax.f32 %v1521_v9, 0.0  ;;  %v1554_v23 = vmax.f32 %v1522_v10, 0.0  ;;  %v1555_v58 = vmax.f32 %v1523_v17, 0.0  ;;  %v3911_v9 = vld [vmem:[#allocation7 + $0xf0] sm:$0xff]   ;;  %v3912_v10 = vld [vmem:[#allocation7 + $0xf8] sm:$0xff]  }
 0x46b   :  { %v1572_v49 = vpack.c.bf16 %v1550_v5, %v1549_v7  ;;  %v1573_v56 = vpack.c.bf16 %v1552_v63, %v1551_v33  ;;  %v1556_v11 = vmax.f32 %v1524_v35, 0.0  ;;  %v1557_v37 = vmax.f32 %v1525_v42, 0.0 }
 0x46c   :  { %v1574_v41 = vpack.c.bf16 %v1554_v23, %v1553_v25  ;;  %v1558_v14 = vmax.f32 %v1526_v6, 0.0  ;;  %v1559_v44 = vmax.f32 %v1527_v55, 0.0  ;;  %v1560_v21 = vmax.f32 %v4775_v34, 0.0  ;;  %v3905_v34 = vld [vmem:[#allocation7 + $0xc0] sm:$0xff]  }
 0x46d   :  { %v1575_v13 = vpack.c.bf16 %v1556_v11, %v1555_v58  ;;  %v1561_v39 = vmax.f32 %v1529_v16, 0.0  ;;  %v1562_v22 = vmax.f32 %v1530_v18, 0.0  ;;  %3687 = vmatprep.subr.bf16.mxu0 %v3905_v34 }
 0x46e   :  { %v1576_v4 = vpack.c.bf16 %v1558_v14, %v1557_v37  ;;  %v1577_v26 = vpack.c.bf16 %v1560_v21, %v1559_v44  ;;  %3688 = vmatpush3.bf16.msra.mxu0 %v3905_v34 }
 0x46f   :  { %v1578_v57 = vpack.c.bf16 %v1562_v22, %v1561_v39  ;;  %3689 = vmatprep.subr.bf16.mxu0 %v3906_v61 }
 0x470   :  { %3660 = vmatmul.mubr.bf16.gmra.mrb[52].mxu1 %v1566_v19 }
 0x471   :  { %3663 = vmatprep.mubr.bf16.mxu1 %v1567_v28 }
 0x472   :  { %3690 = vmatpush3.bf16.msra.mxu0 %v3906_v61 }
 0x473   :  { %3691 = vmatprep.subr.bf16.mxu0 %v3907_v27 }
 0x476   :  { %3692 = vmatpush3.bf16.msra.mxu0 %v3907_v27 }
 0x477   :  { %3693 = vmatprep.subr.bf16.mxu0 %v3908_v20 }
 0x478   :  { %3664 = vmatmul.mubr.bf16.gmra.mrb[56].mxu1 %v1568_v38 }
 0x479   :  { %3667 = vmatprep.mubr.bf16.mxu1 %v1569_v32 }
 0x47a   :  { %3694 = vmatpush3.bf16.msra.mxu0 %v3908_v20 }
 0x47b   :  { %3695 = vmatprep.subr.bf16.mxu0 %v3909_v59 }
 0x47e   :  { %3696 = vmatpush3.bf16.msra.mxu0 %v3909_v59 }
 0x47f   :  { %3697 = vmatprep.subr.bf16.mxu0 %v3910_v62 }
 0x480   :  { %3668 = vmatmul.mubr.bf16.gmra.mrb[60].mxu1 %v1570_v47 }
 0x481   :  { %3671 = vmatprep.mubr.bf16.mxu1 %v1571_v2 }
 0x482   :  { %3698 = vmatpush3.bf16.msra.mxu0 %v3910_v62 }
 0x483   :  { %3699 = vmatprep.subr.bf16.mxu0 %v3911_v9 }
 0x486   :  { %3700 = vmatpush3.bf16.msra.mxu0 %v3911_v9 }
 0x487   :  { %3701 = vmatprep.subr.bf16.mxu0 %v3912_v10 }
 0x488   :  { %3672 = vmatmul.mubr.bf16.gmra.mrb[64].mxu1 %v1572_v49 }
 0x489   :  { %3675 = vmatprep.mubr.bf16.mxu1 %v1573_v56 }
 0x48a   :  { %3702 = vmatpush3.bf16.msra.mxu0 %v3912_v10 }
 0x490   :  { %3676 = vmatmul.mubr.bf16.gmra.mrb[68].mxu1 %v1574_v41 }
 0x491   :  { %3679 = vmatprep.mubr.bf16.mxu1 %v1575_v13 }
 0x498   :  { %3680 = vmatmul.mubr.bf16.gmra.mrb[72].mxu1 %v1576_v4 }
 0x499   :  { %3683 = vmatprep.mubr.bf16.mxu1 %v1577_v26 }
 0x4a0   :  { %3684 = vmatmul.mubr.bf16.gmra.mrb[76].mxu1 %v1578_v57 }
 0x53b   :  { %v4796_v17 = vpop.f32.mrb[48].mxu1 }
 0x53c   :  { %v4798_v35 = vpop.f32.mrb[49].mxu1  ;;  %v1846_v0 = vmul.f32 %v4796_v17, %v4796_v17 }
 0x53d   :  { %v4800_v42 = vpop.f32.mrb[50].mxu1  ;;  %v1844_v55 = vmul.f32 %v4798_v35, %v4798_v35 }
 0x53e   :  { %v4802_v6 = vpop.f32.mrb[51].mxu1  ;;  %v1847_v45 = vmul.f32 %v4800_v42, %v4800_v42 }
 0x53f   :  { %v1807_v16 = vadd.f32 %v4802_v6, %v4798_v35  ;;  %v1845_v18 = vmul.f32 %v4802_v6, %v4802_v6 }
 0x541   :  { %v1808_v30 = vadd.f32 %v4796_v17, %v1807_v16  ;;  %v1876_v36 = vadd.f32 %v1845_v18, %v1844_v55 }
 0x543   :  { %v1877_v52 = vadd.f32 %v1876_v36, %v1846_v0  ;;  %v4815_v31 = vpop.f32.mrb[52].mxu1  ;;  %v1809_v1 = vadd.f32 %v4800_v42, %v1808_v30 }
 0x544   :  { %v4818_v24 = vpop.f32.mrb[53].mxu1  ;;  %v1850_v51 = vmul.f32 %v4815_v31, %v4815_v31 }
 0x545   :  { %v1810_v54 = vadd.f32 %v1809_v1, %v4818_v24  ;;  %v1848_v60 = vmul.f32 %v4818_v24, %v4818_v24  ;;  %v1878_v50 = vadd.f32 %v1877_v52, %v1847_v45  ;;  %v4823_v15 = vpop.f32.mrb[54].mxu1 }
 0x546   :  { %v4825_v8 = vpop.f32.mrb[55].mxu1  ;;  %v1851_v43 = vmul.f32 %v4823_v15, %v4823_v15 }
 0x547   :  { %v1879_v53 = vadd.f32 %v1878_v50, %v1848_v60  ;;  %v1811_v19 = vadd.f32 %v1810_v54, %v4825_v8  ;;  %v1849_v40 = vmul.f32 %v4825_v8, %v4825_v8 }
 0x549   :  { %v1812_v12 = vadd.f32 %v4815_v31, %v1811_v19  ;;  %v1880_v28 = vadd.f32 %v1879_v53, %v1849_v40 }
 0x54b   :  { %v1881_v46 = vadd.f32 %v1880_v28, %v1850_v51  ;;  %v4835_v29 = vpop.f32.mrb[56].mxu1  ;;  %v1813_v38 = vadd.f32 %v4823_v15, %v1812_v12 }
 0x54c   :  { %v4838_v32 = vpop.f32.mrb[57].mxu1  ;;  %v1854_v23 = vmul.f32 %v4835_v29, %v4835_v29 }
 0x54d   :  { %v1814_v48 = vadd.f32 %v1813_v38, %v4838_v32  ;;  %v1852_v7 = vmul.f32 %v4838_v32, %v4838_v32  ;;  %v1882_v47 = vadd.f32 %v1881_v46, %v1851_v43  ;;  %v4843_v5 = vpop.f32.mrb[58].mxu1 }
 0x54e   :  { %v4845_v33 = vpop.f32.mrb[59].mxu1  ;;  %v1855_v56 = vmul.f32 %v4843_v5, %v4843_v5 }
 0x54f   :  { %v1883_v63 = vadd.f32 %v1882_v47, %v1852_v7  ;;  %v1815_v2 = vadd.f32 %v1814_v48, %v4845_v33  ;;  %v1853_v25 = vmul.f32 %v4845_v33, %v4845_v33 }
 0x551   :  { %v1816_v58 = vadd.f32 %v4835_v29, %v1815_v2  ;;  %v1884_v49 = vadd.f32 %v1883_v63, %v1853_v25 }
 0x553   :  { %v1885_v11 = vadd.f32 %v1884_v49, %v1854_v23  ;;  %v4855_v37 = vpop.f32.mrb[60].mxu1  ;;  %v1817_v41 = vadd.f32 %v4843_v5, %v1816_v58 }
 0x554   :  { %v4858_v14 = vpop.f32.mrb[61].mxu1  ;;  %v1858_v34 = vmul.f32 %v4855_v37, %v4855_v37 }
 0x555   :  { %v1818_v44 = vadd.f32 %v1817_v41, %v4858_v14  ;;  %v1856_v21 = vmul.f32 %v4858_v14, %v4858_v14  ;;  %v1886_v13 = vadd.f32 %v1885_v11, %v1855_v56  ;;  %v4863_v39 = vpop.f32.mrb[62].mxu1 }
 0x556   :  { %v4865_v22 = vpop.f32.mrb[63].mxu1  ;;  %v1859_v20 = vmul.f32 %v4863_v39, %v4863_v39 }
 0x557   :  { %v1887_v4 = vadd.f32 %v1886_v13, %v1856_v21  ;;  %v1819_v26 = vadd.f32 %v1818_v44, %v4865_v22  ;;  %v1857_v57 = vmul.f32 %v4865_v22, %v4865_v22 }
 0x559   :  { %v1820_v61 = vadd.f32 %v4855_v37, %v1819_v26  ;;  %v1888_v27 = vadd.f32 %v1887_v4, %v1857_v57 }
 0x55b   :  { %v1889_v59 = vadd.f32 %v1888_v27, %v1858_v34  ;;  %v4875_v62 = vpop.f32.mrb[64].mxu1  ;;  %v1821_v9 = vadd.f32 %v4863_v39, %v1820_v61 }
 0x55c   :  { %v4878_v10 = vpop.f32.mrb[65].mxu1  ;;  %v1862_v1 = vmul.f32 %v4875_v62, %v4875_v62 }
 0x55d   :  { %v1822_v55 = vadd.f32 %v1821_v9, %v4878_v10  ;;  %v1860_v16 = vmul.f32 %v4878_v10, %v4878_v10  ;;  %v1890_v18 = vadd.f32 %v1889_v59, %v1859_v20  ;;  %v4883_v0 = vpop.f32.mrb[66].mxu1 }
 0x55e   :  { %v4885_v30 = vpop.f32.mrb[67].mxu1  ;;  %v1863_v50 = vmul.f32 %v4883_v0, %v4883_v0 }
 0x55f   :  { %v1891_v36 = vadd.f32 %v1890_v18, %v1860_v16  ;;  %v1823_v45 = vadd.f32 %v1822_v55, %v4885_v30  ;;  %v1861_v52 = vmul.f32 %v4885_v30, %v4885_v30 }
 0x561   :  { %v1824_v54 = vadd.f32 %v4875_v62, %v1823_v45  ;;  %v1892_v60 = vadd.f32 %v1891_v36, %v1861_v52 }
 0x563   :  { %v1893_v53 = vadd.f32 %v1892_v60, %v1862_v1  ;;  %v4895_v19 = vpop.f32.mrb[68].mxu1  ;;  %v1825_v40 = vadd.f32 %v4883_v0, %v1824_v54 }
 0x564   :  { %v4898_v51 = vpop.f32.mrb[69].mxu1  ;;  %v1866_v63 = vmul.f32 %v4895_v19, %v4895_v19 }
 0x565   :  { %v1826_v12 = vadd.f32 %v1825_v40, %v4898_v51  ;;  %v1864_v28 = vmul.f32 %v4898_v51, %v4898_v51  ;;  %v1894_v43 = vadd.f32 %v1893_v53, %v1863_v50  ;;  %v4903_v46 = vpop.f32.mrb[70].mxu1 }
 0x566   :  { %v4905_v38 = vpop.f32.mrb[71].mxu1  ;;  %v1867_v23 = vmul.f32 %v4903_v46, %v4903_v46 }
 0x567   :  { %v1895_v48 = vadd.f32 %v1894_v43, %v1864_v28  ;;  %v1827_v7 = vadd.f32 %v1826_v12, %v4905_v38  ;;  %v1865_v47 = vmul.f32 %v4905_v38, %v4905_v38 }
 0x569   :  { %v1828_v2 = vadd.f32 %v4895_v19, %v1827_v7  ;;  %v1896_v25 = vadd.f32 %v1895_v48, %v1865_v47 }
 0x56b   :  { %v1897_v58 = vadd.f32 %v1896_v25, %v1866_v63  ;;  %v4915_v49 = vpop.f32.mrb[72].mxu1  ;;  %v1829_v56 = vadd.f32 %v4903_v46, %v1828_v2 }
 0x56c   :  { %v4918_v11 = vpop.f32.mrb[73].mxu1  ;;  %v1870_v61 = vmul.f32 %v4915_v49, %v4915_v49 }
 0x56d   :  { %v1830_v41 = vadd.f32 %v1829_v56, %v4918_v11  ;;  %v1868_v44 = vmul.f32 %v4918_v11, %v4918_v11  ;;  %v1898_v21 = vadd.f32 %v1897_v58, %v1867_v23  ;;  %v4923_v13 = vpop.f32.mrb[74].mxu1 }
 0x56e   :  { %v4925_v4 = vpop.f32.mrb[75].mxu1  ;;  %v1871_v59 = vmul.f32 %v4923_v13, %v4923_v13 }
 0x56f   :  { %v1899_v26 = vadd.f32 %v1898_v21, %v1868_v44  ;;  %v1831_v57 = vadd.f32 %v1830_v41, %v4925_v4  ;;  %v1869_v34 = vmul.f32 %v4925_v4, %v4925_v4 }
 0x571   :  { %v1832_v27 = vadd.f32 %v4915_v49, %v1831_v57  ;;  %v1900_v20 = vadd.f32 %v1899_v26, %v1869_v34 }
 0x573   :  { %v1901_v9 = vadd.f32 %v1900_v20, %v1870_v61  ;;  %v4935_v55 = vpop.f32.mrb[76].mxu1  ;;  %v1833_v16 = vadd.f32 %v4923_v13, %v1832_v27 }
 0x574   :  { %v4938_v18 = vpop.f32.mrb[77].mxu1  ;;  %v1874_v40 = vmul.f32 %v4935_v55, %v4935_v55 }
 0x575   :  { %v1834_v36 = vadd.f32 %v1833_v16, %v4938_v18  ;;  %v1872_v45 = vmul.f32 %v4938_v18, %v4938_v18  ;;  %v1902_v52 = vadd.f32 %v1901_v9, %v1871_v59  ;;  %v4943_v1 = vpop.f32.mrb[78].mxu1 }
 0x576   :  { %v1793_v54 = vpop.f32.mrb[79].mxu1  ;;  %v1875_v43 = vmul.f32 %v4943_v1, %v4943_v1 }
 0x577   :  { %v1903_v60 = vadd.f32 %v1902_v52, %v1872_v45  ;;  %v1835_v50 = vadd.f32 %v1834_v36, %v1793_v54  ;;  %v1873_v53 = vmul.f32 %v1793_v54, %v1793_v54  ;;  %v1805_v36 = vld [vmem:[#allocation10 + $0x3] sm:$0x1] }
 0x579   :  { %v1836_v12 = vadd.f32 %v4935_v55, %v1835_v50  ;;  %v1904_v28 = vadd.f32 %v1903_v60, %v1873_v53  ;;  %v1806_v60 = vld [vmem:[#allocation10 + $0x9] sm:$0x1] }
 0x57b   :  { %v1837_v48 = vadd.f32 %v4943_v1, %v1836_v12  ;;  %v1905_v7 = vadd.f32 %v1904_v28, %v1874_v40 }
 0x57d   :  { %v1838_v47 = vrot.slane %v1837_v48, 4  ;;  %v1906_v63 = vadd.f32 %v1905_v7, %v1875_v43 }
 0x57f   :  { %v1839_v2 = vadd.f32 %v1838_v47, %v1837_v48  ;;  %v1907_v25 = vrot.slane %v1906_v63, 4 }
 0x581   :  { %v1840_v23 = vrot.slane %v1839_v2, 2  ;;  %v1908_v58 = vadd.f32 %v1907_v25, %v1906_v63 }
 0x583   :  { %v1841_v56 = vadd.f32 %v1840_v23, %v1839_v2  ;;  %v1909_v41 = vrot.slane %v1908_v58, 2 }
 0x585   :  { %v1842_v44 = vrot.slane %v1841_v56, 1  ;;  %v1910_v21 = vadd.f32 %v1909_v41, %v1908_v58 }
 0x587   :  { %v1843_v26 = vadd.f32 %v1842_v44, %v1841_v56  ;;  %v1911_v57 = vrot.slane %v1910_v21, 1 }
 0x589   :  { %v1912_v34 = vadd.f32 %v1911_v57, %v1910_v21  ;;  %v1913_v61 = vmul.f32 0.00390625, %v1843_v26 }
 0x58b   :  { %v1914_v27 = vmul.f32 0.00390625, %v1912_v34  ;;  %v1915_v20 = vmul.f32 %v1913_v61, %v1913_v61 }
 0x58d   :  { %v1916_v59 = vsub.f32 %v1914_v27, %v1915_v20 }
 0x58f   :  { %v1917_v9 = vmax.f32 %v1916_v59, 0.0 }
 0x591   :  { %v1918_v16 = vadd.f32 1e-05, %v1917_v9 }
 0x593   :  { %3935 = vrsqrt.f32 %v1918_v16 }
 0x59d   :  { %v3936_v45 = vpop.eup %3935 }
 0x59e   :  { %v1920_v52 = vmul.f32 %v3936_v45, %v1805_v36 }
 0x5a0   :  { %v1921_v50 = vmul.f32 %v1920_v52, %v1913_v61  ;;  %v1926_v53 = vrot.slane %v1920_v52, %v4375_v3 }
 0x5a2   :  { %v1922_v40 = vsub.f32 %v1806_v60, %v1921_v50  ;;  %v1956_v12 = vmul.f32 %v1926_v53, %v1793_v54  ;;  %v1927_v28 = vmul.f32 %v1926_v53, %v4798_v35  ;;  %v1928_v43 = vmul.f32 %v1926_v53, %v4802_v6 }
 0x5a3   :  { %v1929_v48 = vmul.f32 %v4796_v17, %v1926_v53  ;;  %v1930_v7 = vmul.f32 %v4800_v42, %v1926_v53  ;;  %v1931_v47 = vmul.f32 %v1926_v53, %v4818_v24  ;;  %v1932_v63 = vmul.f32 %v1926_v53, %v4825_v8 }
 0x5a4   :  { %v1962_v2 = vrot.slane %v1922_v40, %v4375_v3  ;;  %v1933_v25 = vmul.f32 %v4815_v31, %v1926_v53  ;;  %v1934_v23 = vmul.f32 %v4823_v15, %v1926_v53  ;;  %v1935_v54 = vmul.f32 %v1926_v53, %v4838_v32 }
 0x5a5   :  { %v1936_v35 = vmul.f32 %v1926_v53, %v4845_v33  ;;  %v1937_v6 = vmul.f32 %v4835_v29, %v1926_v53  ;;  %v1938_v17 = vmul.f32 %v4843_v5, %v1926_v53  ;;  %v1939_v42 = vmul.f32 %v1926_v53, %v4858_v14 }
 0x5a6   :  { %v4966_v58 = vadd.f32 %v1962_v2, %v1956_v12  ;;  %v1940_v24 = vmul.f32 %v1926_v53, %v4865_v22  ;;  %v1941_v8 = vmul.f32 %v4855_v37, %v1926_v53  ;;  %v1942_v31 = vmul.f32 %v4863_v39, %v1926_v53 }
 0x5a7   :  { %v1943_v15 = vmul.f32 %v1926_v53, %v4878_v10  ;;  %v1944_v32 = vmul.f32 %v1926_v53, %v4885_v30  ;;  %v1945_v33 = vmul.f32 %v4875_v62, %v1926_v53  ;;  %v1946_v29 = vmul.f32 %v4883_v0, %v1926_v53 }
 0x5a8   :  { %v1947_v5 = vmul.f32 %v1926_v53, %v4898_v51  ;;  %v1948_v14 = vmul.f32 %v1926_v53, %v4905_v38  ;;  %v1949_v56 = vmul.f32 %v4895_v19, %v1926_v53  ;;  %v1950_v22 = vmul.f32 %v4903_v46, %v1926_v53 }
 0x5a9   :  { %v1951_v37 = vmul.f32 %v1926_v53, %v4918_v11  ;;  %v1952_v39 = vmul.f32 %v1926_v53, %v4925_v4  ;;  %v1953_v10 = vmul.f32 %v4915_v49, %v1926_v53  ;;  %v1954_v30 = vmul.f32 %v4923_v13, %v1926_v53 }
 0x5aa   :  { %v1955_v62 = vmul.f32 %v1926_v53, %v4938_v18  ;;  %v1957_v0 = vmul.f32 %v4935_v55, %v1926_v53  ;;  %v1958_v51 = vmul.f32 %v4943_v1, %v1926_v53  ;;  %v1963_v41 = vadd.f32 %v1962_v2, %v1927_v28 }
 0x5ab   :  { %v1964_v38 = vadd.f32 %v1962_v2, %v1928_v43  ;;  %v1965_v44 = vadd.f32 %v1962_v2, %v1929_v48  ;;  %v1966_v19 = vadd.f32 %v1962_v2, %v1930_v7  ;;  %v1967_v21 = vadd.f32 %v1962_v2, %v1931_v47 }
 0x5ac   :  { %v1968_v46 = vadd.f32 %v1962_v2, %v1932_v63  ;;  %v1969_v26 = vadd.f32 %v1962_v2, %v1933_v25  ;;  %v1970_v11 = vadd.f32 %v1962_v2, %v1934_v23  ;;  %v1971_v57 = vadd.f32 %v1962_v2, %v1935_v54 }
 0x5ad   :  { %v1972_v4 = vadd.f32 %v1962_v2, %v1936_v35  ;;  %v1973_v34 = vadd.f32 %v1962_v2, %v1937_v6  ;;  %v1974_v49 = vadd.f32 %v1962_v2, %v1938_v17  ;;  %v1975_v61 = vadd.f32 %v1962_v2, %v1939_v42 }
 0x5ae   :  { %v1976_v13 = vadd.f32 %v1962_v2, %v1940_v24  ;;  %v1977_v27 = vadd.f32 %v1962_v2, %v1941_v8  ;;  %v1978_v18 = vadd.f32 %v1962_v2, %v1942_v31  ;;  %v1979_v20 = vadd.f32 %v1962_v2, %v1943_v15 }
 0x5af   :  { %v1980_v55 = vadd.f32 %v1962_v2, %v1944_v32  ;;  %v1981_v59 = vadd.f32 %v1962_v2, %v1945_v33  ;;  %v1982_v1 = vadd.f32 %v1962_v2, %v1946_v29  ;;  %v1983_v9 = vadd.f32 %v1962_v2, %v1947_v5 }
 0x5b0   :  { %v1984_v16 = vadd.f32 %v1962_v2, %v1948_v14  ;;  %v1985_v36 = vadd.f32 %v1962_v2, %v1949_v56  ;;  %v1986_v45 = vadd.f32 %v1962_v2, %v1950_v22  ;;  %v1987_v52 = vadd.f32 %v1962_v2, %v1951_v37 }
 0x5b1   :  { %v1988_v60 = vadd.f32 %v1962_v2, %v1952_v39  ;;  %v1989_v50 = vadd.f32 %v1962_v2, %v1953_v10  ;;  %v1990_v53 = vadd.f32 %v1962_v2, %v1954_v30  ;;  %v1991_v40 = vadd.f32 %v1962_v2, %v1955_v62 }
 0x5b2   :  { %v1993_v12 = vadd.f32 %v1962_v2, %v1957_v0  ;;  %v1994_v28 = vadd.f32 %v1962_v2, %v1958_v51  ;;  %v1997_v43 = vmax.f32 %v1965_v44, 0.0  ;;  %v1998_v48 = vmax.f32 %v1966_v19, 0.0 }
 0x5b3   :  { %v1995_v7 = vmax.f32 %v1963_v41, 0.0  ;;  %v1996_v47 = vmax.f32 %v1964_v38, 0.0  ;;  %v1999_v63 = vmax.f32 %v1967_v21, 0.0  ;;  %v2000_v25 = vmax.f32 %v1968_v46, 0.0 }
 0x5b4   :  { %v2028_v23 = vpack.c.bf16 %v1998_v48, %v1997_v43  ;;  %v2001_v54 = vmax.f32 %v1969_v26, 0.0  ;;  %v2002_v35 = vmax.f32 %v1970_v11, 0.0  ;;  %v2003_v6 = vmax.f32 %v1971_v57, 0.0 }
 0x5b5   :  { %v2027_v17 = vpack.c.bf16 %v1996_v47, %v1995_v7  ;;  %v2029_v42 = vpack.c.bf16 %v2000_v25, %v1999_v63  ;;  %v2004_v24 = vmax.f32 %v1972_v4, 0.0  ;;  %v2005_v8 = vmax.f32 %v1973_v34, 0.0 }
 0x5b6   :  { %v2030_v31 = vpack.c.bf16 %v2002_v35, %v2001_v54  ;;  %v2006_v15 = vmax.f32 %v1974_v49, 0.0  ;;  %v2007_v32 = vmax.f32 %v1975_v61, 0.0  ;;  %v2008_v33 = vmax.f32 %v1976_v13, 0.0 }
 0x5b7   :  { %3703 = vmatprep.mubr.bf16.mxu0 %v2027_v17  ;;  %v2031_v2 = vpack.c.bf16 %v2004_v24, %v2003_v6  ;;  %v2009_v29 = vmax.f32 %v1977_v27, 0.0  ;;  %v2010_v5 = vmax.f32 %v1978_v18, 0.0  ;;  %v2011_v14 = vmax.f32 %v1979_v20, 0.0 }
 0x5b8   :  { %3704 = vmatmul.mubr.bf16.vlgmr.msra.gmra.mrb[48].mxu0 %v2028_v23  ;;  %v2032_v56 = vpack.c.bf16 %v2006_v15, %v2005_v8  ;;  %v2033_v22 = vpack.c.bf16 %v2008_v33, %v2007_v32  ;;  %v2012_v37 = vmax.f32 %v1980_v55, 0.0  ;;  %v2013_v39 = vmax.f32 %v1981_v59, 0.0  ;;  %v3914_v55 = vld [vmem:[#allocation7 + $0x108] sm:$0xff]   ;;  %v3915_v59 = vld [vmem:[#allocation7 + $0x110] sm:$0xff]  }
 0x5b9   :  { %3707 = vmatprep.mubr.bf16.mxu0 %v2029_v42  ;;  %v2034_v10 = vpack.c.bf16 %v2010_v5, %v2009_v29  ;;  %v2014_v30 = vmax.f32 %v1982_v1, 0.0  ;;  %v2015_v62 = vmax.f32 %v1983_v9, 0.0  ;;  %v2016_v0 = vmax.f32 %v1984_v16, 0.0  ;;  %v3916_v1 = vld [vmem:[#allocation7 + $0x118] sm:$0xff]   ;;  %v3917_v9 = vld [vmem:[#allocation7 + $0x120] sm:$0xff]   ;;  %v3918_v16 = vld [vmem:[#allocation7 + $0x128] sm:$0xff]  }
 0x5ba   :  { %v2035_v51 = vpack.c.bf16 %v2012_v37, %v2011_v14  ;;  %v2017_v41 = vmax.f32 %v1985_v36, 0.0  ;;  %v2018_v38 = vmax.f32 %v1986_v45, 0.0  ;;  %v2019_v44 = vmax.f32 %v1987_v52, 0.0  ;;  %v3919_v36 = vld [vmem:[#allocation7 + $0x130] sm:$0xff]   ;;  %v3920_v45 = vld [vmem:[#allocation7 + $0x138] sm:$0xff]  }
 0x5bb   :  { %v2036_v19 = vpack.c.bf16 %v2014_v30, %v2013_v39  ;;  %v2037_v21 = vpack.c.bf16 %v2016_v0, %v2015_v62  ;;  %v2020_v46 = vmax.f32 %v1988_v60, 0.0  ;;  %v2021_v26 = vmax.f32 %v1989_v50, 0.0 }
 0x5bc   :  { %v2038_v11 = vpack.c.bf16 %v2018_v38, %v2017_v41  ;;  %v2022_v57 = vmax.f32 %v1990_v53, 0.0  ;;  %v2023_v4 = vmax.f32 %v1991_v40, 0.0  ;;  %v2024_v34 = vmax.f32 %v4966_v58, 0.0  ;;  %v3913_v58 = vld [vmem:[#allocation7 + $0x100] sm:$0xff]  }
 0x5bd   :  { %v2039_v49 = vpack.c.bf16 %v2020_v46, %v2019_v44  ;;  %v2025_v61 = vmax.f32 %v1993_v12, 0.0  ;;  %v2026_v13 = vmax.f32 %v1994_v28, 0.0  ;;  %3735 = vmatprep.subr.bf16.mxu1 %v3913_v58 }
 0x5be   :  { %v2040_v27 = vpack.c.bf16 %v2022_v57, %v2021_v26  ;;  %v2041_v18 = vpack.c.bf16 %v2024_v34, %v2023_v4  ;;  %3736 = vmatpush3.bf16.msra.mxu1 %v3913_v58 }
 0x5bf   :  { %v2042_v20 = vpack.c.bf16 %v2026_v13, %v2025_v61  ;;  %3737 = vmatprep.subr.bf16.mxu1 %v3914_v55 }
 0x5c0   :  { %3708 = vmatmul.mubr.bf16.gmra.mrb[52].mxu0 %v2030_v31 }
 0x5c1   :  { %3711 = vmatprep.mubr.bf16.mxu0 %v2031_v2 }
 0x5c2   :  { %3738 = vmatpush3.bf16.msra.mxu1 %v3914_v55 }
 0x5c3   :  { %3739 = vmatprep.subr.bf16.mxu1 %v3915_v59 }
 0x5c6   :  { %3740 = vmatpush3.bf16.msra.mxu1 %v3915_v59 }
 0x5c7   :  { %3741 = vmatprep.subr.bf16.mxu1 %v3916_v1 }
 0x5c8   :  { %3712 = vmatmul.mubr.bf16.gmra.mrb[56].mxu0 %v2032_v56 }
 0x5c9   :  { %3715 = vmatprep.mubr.bf16.mxu0 %v2033_v22 }
 0x5ca   :  { %3742 = vmatpush3.bf16.msra.mxu1 %v3916_v1 }
 0x5cb   :  { %3743 = vmatprep.subr.bf16.mxu1 %v3917_v9 }
 0x5ce   :  { %3744 = vmatpush3.bf16.msra.mxu1 %v3917_v9 }
 0x5cf   :  { %3745 = vmatprep.subr.bf16.mxu1 %v3918_v16 }
 0x5d0   :  { %3716 = vmatmul.mubr.bf16.gmra.mrb[60].mxu0 %v2034_v10 }
 0x5d1   :  { %3719 = vmatprep.mubr.bf16.mxu0 %v2035_v51 }
 0x5d2   :  { %3746 = vmatpush3.bf16.msra.mxu1 %v3918_v16 }
 0x5d3   :  { %3747 = vmatprep.subr.bf16.mxu1 %v3919_v36 }
 0x5d6   :  { %3748 = vmatpush3.bf16.msra.mxu1 %v3919_v36 }
 0x5d7   :  { %3749 = vmatprep.subr.bf16.mxu1 %v3920_v45 }
 0x5d8   :  { %3720 = vmatmul.mubr.bf16.gmra.mrb[64].mxu0 %v2036_v19 }
 0x5d9   :  { %3723 = vmatprep.mubr.bf16.mxu0 %v2037_v21 }
 0x5da   :  { %3750 = vmatpush3.bf16.msra.mxu1 %v3920_v45 }
 0x5e0   :  { %3724 = vmatmul.mubr.bf16.gmra.mrb[68].mxu0 %v2038_v11 }
 0x5e1   :  { %3727 = vmatprep.mubr.bf16.mxu0 %v2039_v49 }
 0x5e8   :  { %3728 = vmatmul.mubr.bf16.gmra.mrb[72].mxu0 %v2040_v27 }
 0x5e9   :  { %3731 = vmatprep.mubr.bf16.mxu0 %v2041_v18 }
 0x5f0   :  { %3732 = vmatmul.mubr.bf16.gmra.mrb[76].mxu0 %v2042_v20 }
 0x68b   :  { %v4987_v52 = vpop.f32.mrb[48].mxu0 }
 0x68c   :  { %v4989_v60 = vpop.f32.mrb[49].mxu0  ;;  %v2310_v43 = vmul.f32 %v4987_v52, %v4987_v52 }
 0x68d   :  { %v4991_v50 = vpop.f32.mrb[50].mxu0  ;;  %v2308_v40 = vmul.f32 %v4989_v60, %v4989_v60 }
 0x68e   :  { %v4993_v53 = vpop.f32.mrb[51].mxu0  ;;  %v2311_v47 = vmul.f32 %v4991_v50, %v4991_v50 }
 0x68f   :  { %v2271_v12 = vadd.f32 %v4993_v53, %v4989_v60  ;;  %v2309_v28 = vmul.f32 %v4993_v53, %v4993_v53 }
 0x691   :  { %v2272_v48 = vadd.f32 %v4987_v52, %v2271_v12  ;;  %v2340_v7 = vadd.f32 %v2309_v28, %v2308_v40 }
 0x693   :  { %v2341_v63 = vadd.f32 %v2340_v7, %v2310_v43  ;;  %v5006_v25 = vpop.f32.mrb[52].mxu0  ;;  %v2273_v23 = vadd.f32 %v4991_v50, %v2272_v48 }
 0x694   :  { %v5009_v54 = vpop.f32.mrb[53].mxu0  ;;  %v2314_v32 = vmul.f32 %v5006_v25, %v5006_v25 }
 0x695   :  { %v2274_v35 = vadd.f32 %v2273_v23, %v5009_v54  ;;  %v2312_v6 = vmul.f32 %v5009_v54, %v5009_v54  ;;  %v2342_v17 = vadd.f32 %v2341_v63, %v2311_v47  ;;  %v5014_v42 = vpop.f32.mrb[54].mxu0 }
 0x696   :  { %v5016_v24 = vpop.f32.mrb[55].mxu0  ;;  %v2315_v29 = vmul.f32 %v5014_v42, %v5014_v42 }
 0x697   :  { %v2343_v8 = vadd.f32 %v2342_v17, %v2312_v6  ;;  %v2275_v31 = vadd.f32 %v2274_v35, %v5016_v24  ;;  %v2313_v15 = vmul.f32 %v5016_v24, %v5016_v24 }
 0x699   :  { %v2276_v33 = vadd.f32 %v5006_v25, %v2275_v31  ;;  %v2344_v2 = vadd.f32 %v2343_v8, %v2313_v15 }
 0x69b   :  { %v2345_v5 = vadd.f32 %v2344_v2, %v2314_v32  ;;  %v5026_v14 = vpop.f32.mrb[56].mxu0  ;;  %v2277_v56 = vadd.f32 %v5014_v42, %v2276_v33 }
 0x69c   :  { %v5029_v22 = vpop.f32.mrb[57].mxu0  ;;  %v2318_v38 = vmul.f32 %v5026_v14, %v5026_v14 }
 0x69d   :  { %v2278_v37 = vadd.f32 %v2277_v56, %v5029_v22  ;;  %v2316_v39 = vmul.f32 %v5029_v22, %v5029_v22  ;;  %v2346_v10 = vadd.f32 %v2345_v5, %v2315_v29  ;;  %v5034_v30 = vpop.f32.mrb[58].mxu0 }
 0x69e   :  { %v5036_v62 = vpop.f32.mrb[59].mxu0  ;;  %v2319_v21 = vmul.f32 %v5034_v30, %v5034_v30 }
 0x69f   :  { %v2347_v0 = vadd.f32 %v2346_v10, %v2316_v39  ;;  %v2279_v51 = vadd.f32 %v2278_v37, %v5036_v62  ;;  %v2317_v41 = vmul.f32 %v5036_v62, %v5036_v62 }
 0x6a1   :  { %v2280_v44 = vadd.f32 %v5026_v14, %v2279_v51  ;;  %v2348_v19 = vadd.f32 %v2347_v0, %v2317_v41 }
 0x6a3   :  { %v2349_v46 = vadd.f32 %v2348_v19, %v2318_v38  ;;  %v5046_v26 = vpop.f32.mrb[60].mxu0  ;;  %v2281_v11 = vadd.f32 %v5034_v30, %v2280_v44 }
 0x6a4   :  { %v5049_v57 = vpop.f32.mrb[61].mxu0  ;;  %v2322_v58 = vmul.f32 %v5046_v26, %v5046_v26 }
 0x6a5   :  { %v2282_v4 = vadd.f32 %v2281_v11, %v5049_v57  ;;  %v2320_v34 = vmul.f32 %v5049_v57, %v5049_v57  ;;  %v2350_v49 = vadd.f32 %v2349_v46, %v2319_v21  ;;  %v5054_v61 = vpop.f32.mrb[62].mxu0 }
 0x6a6   :  { %v5056_v13 = vpop.f32.mrb[63].mxu0  ;;  %v2323_v1 = vmul.f32 %v5054_v61, %v5054_v61 }
 0x6a7   :  { %v2351_v27 = vadd.f32 %v2350_v49, %v2320_v34  ;;  %v2283_v18 = vadd.f32 %v2282_v4, %v5056_v13  ;;  %v2321_v20 = vmul.f32 %v5056_v13, %v5056_v13 }
 0x6a9   :  { %v2284_v55 = vadd.f32 %v5046_v26, %v2283_v18  ;;  %v2352_v59 = vadd.f32 %v2351_v27, %v2321_v20 }
 0x6ab   :  { %v2353_v9 = vadd.f32 %v2352_v59, %v2322_v58  ;;  %v5066_v16 = vpop.f32.mrb[64].mxu0  ;;  %v2285_v36 = vadd.f32 %v5054_v61, %v2284_v55 }
 0x6ac   :  { %v5069_v45 = vpop.f32.mrb[65].mxu0  ;;  %v2326_v23 = vmul.f32 %v5066_v16, %v5066_v16 }
 0x6ad   :  { %v2286_v40 = vadd.f32 %v2285_v36, %v5069_v45  ;;  %v2324_v12 = vmul.f32 %v5069_v45, %v5069_v45  ;;  %v2354_v28 = vadd.f32 %v2353_v9, %v2323_v1  ;;  %v5074_v43 = vpop.f32.mrb[66].mxu0 }
 0x6ae   :  { %v5076_v48 = vpop.f32.mrb[67].mxu0  ;;  %v2327_v17 = vmul.f32 %v5074_v43, %v5074_v43 }
 0x6af   :  { %v2355_v7 = vadd.f32 %v2354_v28, %v2324_v12  ;;  %v2287_v47 = vadd.f32 %v2286_v40, %v5076_v48  ;;  %v2325_v63 = vmul.f32 %v5076_v48, %v5076_v48 }
 0x6b1   :  { %v2288_v35 = vadd.f32 %v5066_v16, %v2287_v47  ;;  %v2356_v6 = vadd.f32 %v2355_v7, %v2325_v63 }
 0x6b3   :  { %v2357_v8 = vadd.f32 %v2356_v6, %v2326_v23  ;;  %v5086_v31 = vpop.f32.mrb[68].mxu0  ;;  %v2289_v15 = vadd.f32 %v5074_v43, %v2288_v35 }
 0x6b4   :  { %v5089_v32 = vpop.f32.mrb[69].mxu0  ;;  %v2330_v0 = vmul.f32 %v5086_v31, %v5086_v31 }
 0x6b5   :  { %v2290_v33 = vadd.f32 %v2289_v15, %v5089_v32  ;;  %v2328_v2 = vmul.f32 %v5089_v32, %v5089_v32  ;;  %v2358_v29 = vadd.f32 %v2357_v8, %v2327_v17  ;;  %v5094_v5 = vpop.f32.mrb[70].mxu0 }
 0x6b6   :  { %v5096_v56 = vpop.f32.mrb[71].mxu0  ;;  %v2331_v38 = vmul.f32 %v5094_v5, %v5094_v5 }
 0x6b7   :  { %v2359_v37 = vadd.f32 %v2358_v29, %v2328_v2  ;;  %v2291_v39 = vadd.f32 %v2290_v33, %v5096_v56  ;;  %v2329_v10 = vmul.f32 %v5096_v56, %v5096_v56 }
 0x6b9   :  { %v2292_v51 = vadd.f32 %v5086_v31, %v2291_v39  ;;  %v2360_v41 = vadd.f32 %v2359_v37, %v2329_v10 }
 0x6bb   :  { %v2361_v44 = vadd.f32 %v2360_v41, %v2330_v0  ;;  %v5106_v19 = vpop.f32.mrb[72].mxu0  ;;  %v2293_v21 = vadd.f32 %v5094_v5, %v2292_v51 }
 0x6bc   :  { %v5109_v46 = vpop.f32.mrb[73].mxu0  ;;  %v2334_v55 = vmul.f32 %v5106_v19, %v5106_v19 }
 0x6bd   :  { %v2294_v11 = vadd.f32 %v2293_v21, %v5109_v46  ;;  %v2332_v4 = vmul.f32 %v5109_v46, %v5109_v46  ;;  %v2362_v34 = vadd.f32 %v2361_v44, %v2331_v38  ;;  %v5114_v49 = vpop.f32.mrb[74].mxu0 }
 0x6be   :  { %v5116_v27 = vpop.f32.mrb[75].mxu0  ;;  %v2335_v9 = vmul.f32 %v5114_v49, %v5114_v49 }
 0x6bf   :  { %v2363_v18 = vadd.f32 %v2362_v34, %v2332_v4  ;;  %v2295_v20 = vadd.f32 %v2294_v11, %v5116_v27  ;;  %v2333_v58 = vmul.f32 %v5116_v27, %v5116_v27 }
 0x6c1   :  { %v2296_v59 = vadd.f32 %v5106_v19, %v2295_v20  ;;  %v2364_v1 = vadd.f32 %v2363_v18, %v2333_v58 }
 0x6c3   :  { %v2365_v36 = vadd.f32 %v2364_v1, %v2334_v55  ;;  %v5126_v40 = vpop.f32.mrb[76].mxu0  ;;  %v2297_v12 = vadd.f32 %v5114_v49, %v2296_v59 }
 0x6c4   :  { %v5129_v28 = vpop.f32.mrb[77].mxu0  ;;  %v2338_v15 = vmul.f32 %v5126_v40, %v5126_v40 }
 0x6c5   :  { %v2298_v7 = vadd.f32 %v2297_v12, %v5129_v28  ;;  %v2336_v47 = vmul.f32 %v5129_v28, %v5129_v28  ;;  %v2366_v63 = vadd.f32 %v2365_v36, %v2335_v9  ;;  %v5134_v23 = vpop.f32.mrb[78].mxu0 }
 0x6c6   :  { %v2257_v35 = vpop.f32.mrb[79].mxu0  ;;  %v2339_v29 = vmul.f32 %v5134_v23, %v5134_v23 }
 0x6c7   :  { %v2367_v6 = vadd.f32 %v2366_v63, %v2336_v47  ;;  %v2299_v17 = vadd.f32 %v2298_v7, %v2257_v35  ;;  %v2337_v8 = vmul.f32 %v2257_v35, %v2257_v35  ;;  %v2269_v7 = vld [vmem:[#allocation10 + $0x4] sm:$0x1] }
 0x6c9   :  { %v2300_v33 = vadd.f32 %v5126_v40, %v2299_v17  ;;  %v2368_v2 = vadd.f32 %v2367_v6, %v2337_v8  ;;  %v2270_v6 = vld [vmem:[#allocation10 + $0xa] sm:$0x1] }
 0x6cb   :  { %v2301_v37 = vadd.f32 %v5134_v23, %v2300_v33  ;;  %v2369_v39 = vadd.f32 %v2368_v2, %v2338_v15 }
 0x6cd   :  { %v2302_v10 = vrot.slane %v2301_v37, 4  ;;  %v2370_v0 = vadd.f32 %v2369_v39, %v2339_v29 }
 0x6cf   :  { %v2303_v51 = vadd.f32 %v2302_v10, %v2301_v37  ;;  %v2371_v41 = vrot.slane %v2370_v0, 4 }
 0x6d1   :  { %v2304_v38 = vrot.slane %v2303_v51, 2  ;;  %v2372_v44 = vadd.f32 %v2371_v41, %v2370_v0 }
 0x6d3   :  { %v2305_v21 = vadd.f32 %v2304_v38, %v2303_v51  ;;  %v2373_v11 = vrot.slane %v2372_v44, 2 }
 0x6d5   :  { %v2306_v4 = vrot.slane %v2305_v21, 1  ;;  %v2374_v34 = vadd.f32 %v2373_v11, %v2372_v44 }
 0x6d7   :  { %v2307_v18 = vadd.f32 %v2306_v4, %v2305_v21  ;;  %v2375_v20 = vrot.slane %v2374_v34, 1 }
 0x6d9   :  { %v2376_v58 = vadd.f32 %v2375_v20, %v2374_v34  ;;  %v2377_v55 = vmul.f32 0.00390625, %v2307_v18 }
 0x6db   :  { %v2378_v59 = vmul.f32 0.00390625, %v2376_v58  ;;  %v2379_v1 = vmul.f32 %v2377_v55, %v2377_v55 }
 0x6dd   :  { %v2380_v9 = vsub.f32 %v2378_v59, %v2379_v1 }
 0x6df   :  { %v2381_v36 = vmax.f32 %v2380_v9, 0.0 }
 0x6e1   :  { %v2382_v12 = vadd.f32 1e-05, %v2381_v36 }
 0x6e3   :  { %3937 = vrsqrt.f32 %v2382_v12 }
 0x6ed   :  { %v3938_v47 = vpop.eup %3937 }
 0x6ee   :  { %v2384_v63 = vmul.f32 %v3938_v47, %v2269_v7 }
 0x6f0   :  { %v2385_v17 = vmul.f32 %v2384_v63, %v2377_v55  ;;  %v2390_v8 = vrot.slane %v2384_v63, %v4375_v3 }
 0x6f2   :  { %v2386_v15 = vsub.f32 %v2270_v6, %v2385_v17  ;;  %v2420_v33 = vmul.f32 %v2390_v8, %v2257_v35  ;;  %v2391_v2 = vmul.f32 %v2390_v8, %v4989_v60  ;;  %v2392_v29 = vmul.f32 %v2390_v8, %v4993_v53 }
 0x6f3   :  { %v2393_v37 = vmul.f32 %v4987_v52, %v2390_v8  ;;  %v2394_v39 = vmul.f32 %v4991_v50, %v2390_v8  ;;  %v2395_v10 = vmul.f32 %v2390_v8, %v5009_v54  ;;  %v2396_v0 = vmul.f32 %v2390_v8, %v5016_v24 }
 0x6f4   :  { %v2426_v51 = vrot.slane %v2386_v15, %v4375_v3  ;;  %v2397_v41 = vmul.f32 %v5006_v25, %v2390_v8  ;;  %v2398_v38 = vmul.f32 %v5014_v42, %v2390_v8  ;;  %v2399_v35 = vmul.f32 %v2390_v8, %v5029_v22 }
 0x6f5   :  { %v2400_v60 = vmul.f32 %v2390_v8, %v5036_v62  ;;  %v2401_v53 = vmul.f32 %v5026_v14, %v2390_v8  ;;  %v2402_v52 = vmul.f32 %v5034_v30, %v2390_v8  ;;  %v2403_v50 = vmul.f32 %v2390_v8, %v5049_v57 }
 0x6f6   :  { %v5157_v44 = vadd.f32 %v2426_v51, %v2420_v33  ;;  %v2404_v54 = vmul.f32 %v2390_v8, %v5056_v13  ;;  %v2405_v24 = vmul.f32 %v5046_v26, %v2390_v8  ;;  %v2406_v25 = vmul.f32 %v5054_v61, %v2390_v8 }
 0x6f7   :  { %v2407_v42 = vmul.f32 %v2390_v8, %v5069_v45  ;;  %v2408_v22 = vmul.f32 %v2390_v8, %v5076_v48  ;;  %v2409_v62 = vmul.f32 %v5066_v16, %v2390_v8  ;;  %v2410_v14 = vmul.f32 %v5074_v43, %v2390_v8 }
 0x6f8   :  { %v2411_v30 = vmul.f32 %v2390_v8, %v5089_v32  ;;  %v2412_v57 = vmul.f32 %v2390_v8, %v5096_v56  ;;  %v2413_v21 = vmul.f32 %v5086_v31, %v2390_v8  ;;  %v2414_v13 = vmul.f32 %v5094_v5, %v2390_v8 }
 0x6f9   :  { %v2415_v26 = vmul.f32 %v2390_v8, %v5109_v46  ;;  %v2416_v61 = vmul.f32 %v2390_v8, %v5116_v27  ;;  %v2417_v45 = vmul.f32 %v5106_v19, %v2390_v8  ;;  %v2418_v48 = vmul.f32 %v5114_v49, %v2390_v8 }
 0x6fa   :  { %v2419_v16 = vmul.f32 %v2390_v8, %v5129_v28  ;;  %v2421_v43 = vmul.f32 %v5126_v40, %v2390_v8  ;;  %v2422_v32 = vmul.f32 %v5134_v23, %v2390_v8  ;;  %v2427_v11 = vadd.f32 %v2426_v51, %v2391_v2 }
 0x6fb   :  { %v2428_v56 = vadd.f32 %v2426_v51, %v2392_v29  ;;  %v2429_v4 = vadd.f32 %v2426_v51, %v2393_v37  ;;  %v2430_v31 = vadd.f32 %v2426_v51, %v2394_v39  ;;  %v2431_v34 = vadd.f32 %v2426_v51, %v2395_v10 }
 0x6fc   :  { %v2432_v5 = vadd.f32 %v2426_v51, %v2396_v0  ;;  %v2433_v18 = vadd.f32 %v2426_v51, %v2397_v41  ;;  %v2434_v46 = vadd.f32 %v2426_v51, %v2398_v38  ;;  %v2435_v20 = vadd.f32 %v2426_v51, %v2399_v35 }
 0x6fd   :  { %v2436_v27 = vadd.f32 %v2426_v51, %v2400_v60  ;;  %v2437_v58 = vadd.f32 %v2426_v51, %v2401_v53  ;;  %v2438_v19 = vadd.f32 %v2426_v51, %v2402_v52  ;;  %v2439_v55 = vadd.f32 %v2426_v51, %v2403_v50 }
 0x6fe   :  { %v2440_v49 = vadd.f32 %v2426_v51, %v2404_v54  ;;  %v2441_v59 = vadd.f32 %v2426_v51, %v2405_v24  ;;  %v2442_v28 = vadd.f32 %v2426_v51, %v2406_v25  ;;  %v2443_v1 = vadd.f32 %v2426_v51, %v2407_v42 }
 0x6ff   :  { %v2444_v40 = vadd.f32 %v2426_v51, %v2408_v22  ;;  %v2445_v9 = vadd.f32 %v2426_v51, %v2409_v62  ;;  %v2446_v23 = vadd.f32 %v2426_v51, %v2410_v14  ;;  %v2447_v36 = vadd.f32 %v2426_v51, %v2411_v30 }
 0x700   :  { %v2448_v12 = vadd.f32 %v2426_v51, %v2412_v57  ;;  %v2449_v7 = vadd.f32 %v2426_v51, %v2413_v21  ;;  %v2450_v47 = vadd.f32 %v2426_v51, %v2414_v13  ;;  %v2451_v63 = vadd.f32 %v2426_v51, %v2415_v26 }
 0x701   :  { %v2452_v6 = vadd.f32 %v2426_v51, %v2416_v61  ;;  %v2453_v17 = vadd.f32 %v2426_v51, %v2417_v45  ;;  %v2454_v8 = vadd.f32 %v2426_v51, %v2418_v48  ;;  %v2455_v15 = vadd.f32 %v2426_v51, %v2419_v16 }
 0x702   :  { %v2457_v33 = vadd.f32 %v2426_v51, %v2421_v43  ;;  %v2458_v2 = vadd.f32 %v2426_v51, %v2422_v32  ;;  %v2461_v29 = vmax.f32 %v2429_v4, 0.0  ;;  %v2462_v37 = vmax.f32 %v2430_v31, 0.0 }
 0x703   :  { %v2459_v39 = vmax.f32 %v2427_v11, 0.0  ;;  %v2460_v10 = vmax.f32 %v2428_v56, 0.0  ;;  %v2463_v0 = vmax.f32 %v2431_v34, 0.0  ;;  %v2464_v41 = vmax.f32 %v2432_v5, 0.0 }
 0x704   :  { %v2492_v38 = vpack.c.bf16 %v2462_v37, %v2461_v29  ;;  %v2465_v35 = vmax.f32 %v2433_v18, 0.0  ;;  %v2466_v60 = vmax.f32 %v2434_v46, 0.0  ;;  %v2467_v53 = vmax.f32 %v2435_v20, 0.0 }
 0x705   :  { %v2491_v52 = vpack.c.bf16 %v2460_v10, %v2459_v39  ;;  %v2493_v50 = vpack.c.bf16 %v2464_v41, %v2463_v0  ;;  %v2468_v54 = vmax.f32 %v2436_v27, 0.0  ;;  %v2469_v24 = vmax.f32 %v2437_v58, 0.0 }
 0x706   :  { %v2494_v25 = vpack.c.bf16 %v2466_v60, %v2465_v35  ;;  %v2470_v42 = vmax.f32 %v2438_v19, 0.0  ;;  %v2471_v22 = vmax.f32 %v2439_v55, 0.0  ;;  %v2472_v62 = vmax.f32 %v2440_v49, 0.0 }
 0x707   :  { %3751 = vmatprep.mubr.bf16.mxu1 %v2491_v52  ;;  %v2495_v51 = vpack.c.bf16 %v2468_v54, %v2467_v53  ;;  %v2473_v14 = vmax.f32 %v2441_v59, 0.0  ;;  %v2474_v30 = vmax.f32 %v2442_v28, 0.0  ;;  %v2475_v57 = vmax.f32 %v2443_v1, 0.0 }
 0x708   :  { %3752 = vmatmul.mubr.bf16.vlgmr.msra.gmra.mrb[80].mxu1 %v2492_v38  ;;  %v2496_v21 = vpack.c.bf16 %v2470_v42, %v2469_v24  ;;  %v2497_v13 = vpack.c.bf16 %v2472_v62, %v2471_v22  ;;  %v2476_v26 = vmax.f32 %v2444_v40, 0.0  ;;  %v2477_v61 = vmax.f32 %v2445_v9, 0.0  ;;  %v3922_v40 = vld [vmem:[#allocation8 + $0x8] sm:$0xff]   ;;  %v3923_v9 = vld [vmem:[#allocation8 + $0x10] sm:$0xff]  }
 0x709   :  { %3755 = vmatprep.mubr.bf16.mxu1 %v2493_v50  ;;  %v2498_v45 = vpack.c.bf16 %v2474_v30, %v2473_v14  ;;  %v2478_v48 = vmax.f32 %v2446_v23, 0.0  ;;  %v2479_v16 = vmax.f32 %v2447_v36, 0.0  ;;  %v2480_v43 = vmax.f32 %v2448_v12, 0.0  ;;  %v3924_v23 = vld [vmem:[#allocation8 + $0x18] sm:$0xff]   ;;  %v3925_v36 = vld [vmem:[#allocation8 + $0x20] sm:$0xff]   ;;  %v3926_v12 = vld [vmem:[#allocation8 + $0x28] sm:$0xff]  }
 0x70a   :  { %v2499_v32 = vpack.c.bf16 %v2476_v26, %v2475_v57  ;;  %v2481_v11 = vmax.f32 %v2449_v7, 0.0  ;;  %v2482_v56 = vmax.f32 %v2450_v47, 0.0  ;;  %v2483_v4 = vmax.f32 %v2451_v63, 0.0  ;;  %v3927_v7 = vld [vmem:[#allocation8 + $0x30] sm:$0xff]   ;;  %v3928_v47 = vld [vmem:[#allocation8 + $0x38] sm:$0xff]  }
 0x70b   :  { %v2500_v31 = vpack.c.bf16 %v2478_v48, %v2477_v61  ;;  %v2501_v34 = vpack.c.bf16 %v2480_v43, %v2479_v16  ;;  %v2484_v5 = vmax.f32 %v2452_v6, 0.0  ;;  %v2485_v18 = vmax.f32 %v2453_v17, 0.0 }
 0x70c   :  { %v2502_v46 = vpack.c.bf16 %v2482_v56, %v2481_v11  ;;  %v2486_v20 = vmax.f32 %v2454_v8, 0.0  ;;  %v2487_v27 = vmax.f32 %v2455_v15, 0.0  ;;  %v2488_v58 = vmax.f32 %v5157_v44, 0.0  ;;  %v3921_v44 = vld [vmem:[#allocation8] sm:$0xff]  }
 0x70d   :  { %v2503_v19 = vpack.c.bf16 %v2484_v5, %v2483_v4  ;;  %v2489_v55 = vmax.f32 %v2457_v33, 0.0  ;;  %v2490_v49 = vmax.f32 %v2458_v2, 0.0  ;;  %3783 = vmatprep.subr.bf16.mxu0 %v3921_v44 }
 0x70e   :  { %v2504_v59 = vpack.c.bf16 %v2486_v20, %v2485_v18  ;;  %v2505_v28 = vpack.c.bf16 %v2488_v58, %v2487_v27  ;;  %3784 = vmatpush3.bf16.msra.mxu0 %v3921_v44 }
 0x70f   :  { %v2506_v1 = vpack.c.bf16 %v2490_v49, %v2489_v55  ;;  %3785 = vmatprep.subr.bf16.mxu0 %v3922_v40 }
 0x710   :  { %3756 = vmatmul.mubr.bf16.gmra.mrb[84].mxu1 %v2494_v25 }
 0x711   :  { %3759 = vmatprep.mubr.bf16.mxu1 %v2495_v51 }
 0x712   :  { %3786 = vmatpush3.bf16.msra.mxu0 %v3922_v40 }
 0x713   :  { %3787 = vmatprep.subr.bf16.mxu0 %v3923_v9 }
 0x716   :  { %3788 = vmatpush3.bf16.msra.mxu0 %v3923_v9 }
 0x717   :  { %3789 = vmatprep.subr.bf16.mxu0 %v3924_v23 }
 0x718   :  { %3760 = vmatmul.mubr.bf16.gmra.mrb[88].mxu1 %v2496_v21 }
 0x719   :  { %3763 = vmatprep.mubr.bf16.mxu1 %v2497_v13 }
 0x71a   :  { %3790 = vmatpush3.bf16.msra.mxu0 %v3924_v23 }
 0x71b   :  { %3791 = vmatprep.subr.bf16.mxu0 %v3925_v36 }
 0x71e   :  { %3792 = vmatpush3.bf16.msra.mxu0 %v3925_v36 }
 0x71f   :  { %3793 = vmatprep.subr.bf16.mxu0 %v3926_v12 }
 0x720   :  { %3764 = vmatmul.mubr.bf16.gmra.mrb[92].mxu1 %v2498_v45 }
 0x721   :  { %3767 = vmatprep.mubr.bf16.mxu1 %v2499_v32 }
 0x722   :  { %3794 = vmatpush3.bf16.msra.mxu0 %v3926_v12 }
 0x723   :  { %3795 = vmatprep.subr.bf16.mxu0 %v3927_v7 }
 0x726   :  { %3796 = vmatpush3.bf16.msra.mxu0 %v3927_v7 }
 0x727   :  { %3797 = vmatprep.subr.bf16.mxu0 %v3928_v47 }
 0x728   :  { %3768 = vmatmul.mubr.bf16.gmra.mrb[96].mxu1 %v2500_v31 }
 0x729   :  { %3771 = vmatprep.mubr.bf16.mxu1 %v2501_v34 }
 0x72a   :  { %3798 = vmatpush3.bf16.msra.mxu0 %v3928_v47 }
 0x730   :  { %3772 = vmatmul.mubr.bf16.gmra.mrb[100].mxu1 %v2502_v46 }
 0x731   :  { %3775 = vmatprep.mubr.bf16.mxu1 %v2503_v19 }
 0x738   :  { %3776 = vmatmul.mubr.bf16.gmra.mrb[104].mxu1 %v2504_v59 }
 0x739   :  { %3779 = vmatprep.mubr.bf16.mxu1 %v2505_v28 }
 0x740   :  { %3780 = vmatmul.mubr.bf16.gmra.mrb[108].mxu1 %v2506_v1 }
 0x7db   :  { %v5178_v63 = vpop.f32.mrb[80].mxu1 }
 0x7dc   :  { %v5180_v6 = vpop.f32.mrb[81].mxu1  ;;  %v2774_v29 = vmul.f32 %v5178_v63, %v5178_v63 }
 0x7dd   :  { %v5182_v17 = vpop.f32.mrb[82].mxu1  ;;  %v2772_v15 = vmul.f32 %v5180_v6, %v5180_v6 }
 0x7de   :  { %v5184_v8 = vpop.f32.mrb[83].mxu1  ;;  %v2775_v10 = vmul.f32 %v5182_v17, %v5182_v17 }
 0x7df   :  { %v2735_v33 = vadd.f32 %v5184_v8, %v5180_v6  ;;  %v2773_v2 = vmul.f32 %v5184_v8, %v5184_v8 }
 0x7e1   :  { %v2736_v37 = vadd.f32 %v5178_v63, %v2735_v33  ;;  %v2804_v39 = vadd.f32 %v2773_v2, %v2772_v15 }
 0x7e3   :  { %v2805_v0 = vadd.f32 %v2804_v39, %v2774_v29  ;;  %v5197_v41 = vpop.f32.mrb[84].mxu1  ;;  %v2737_v38 = vadd.f32 %v5182_v17, %v2736_v37 }
 0x7e4   :  { %v5200_v35 = vpop.f32.mrb[85].mxu1  ;;  %v2778_v22 = vmul.f32 %v5197_v41, %v5197_v41 }
 0x7e5   :  { %v2738_v60 = vadd.f32 %v2737_v38, %v5200_v35  ;;  %v2776_v53 = vmul.f32 %v5200_v35, %v5200_v35  ;;  %v2806_v52 = vadd.f32 %v2805_v0, %v2775_v10  ;;  %v5205_v50 = vpop.f32.mrb[86].mxu1 }
 0x7e6   :  { %v5207_v54 = vpop.f32.mrb[87].mxu1  ;;  %v2779_v14 = vmul.f32 %v5205_v50, %v5205_v50 }
 0x7e7   :  { %v2807_v24 = vadd.f32 %v2806_v52, %v2776_v53  ;;  %v2739_v25 = vadd.f32 %v2738_v60, %v5207_v54  ;;  %v2777_v42 = vmul.f32 %v5207_v54, %v5207_v54 }
 0x7e9   :  { %v2740_v62 = vadd.f32 %v5197_v41, %v2739_v25  ;;  %v2808_v51 = vadd.f32 %v2807_v24, %v2777_v42 }
 0x7eb   :  { %v2809_v30 = vadd.f32 %v2808_v51, %v2778_v22  ;;  %v5217_v57 = vpop.f32.mrb[88].mxu1  ;;  %v2741_v21 = vadd.f32 %v5205_v50, %v2740_v62 }
 0x7ec   :  { %v5220_v13 = vpop.f32.mrb[89].mxu1  ;;  %v2782_v56 = vmul.f32 %v5217_v57, %v5217_v57 }
 0x7ed   :  { %v2742_v26 = vadd.f32 %v2741_v21, %v5220_v13  ;;  %v2780_v61 = vmul.f32 %v5220_v13, %v5220_v13  ;;  %v2810_v45 = vadd.f32 %v2809_v30, %v2779_v14  ;;  %v5225_v48 = vpop.f32.mrb[90].mxu1 }
 0x7ee   :  { %v5227_v16 = vpop.f32.mrb[91].mxu1  ;;  %v2783_v34 = vmul.f32 %v5225_v48, %v5225_v48 }
 0x7ef   :  { %v2811_v43 = vadd.f32 %v2810_v45, %v2780_v61  ;;  %v2743_v32 = vadd.f32 %v2742_v26, %v5227_v16  ;;  %v2781_v11 = vmul.f32 %v5227_v16, %v5227_v16 }
 0x7f1   :  { %v2744_v4 = vadd.f32 %v5217_v57, %v2743_v32  ;;  %v2812_v31 = vadd.f32 %v2811_v43, %v2781_v11 }
 0x7f3   :  { %v2813_v5 = vadd.f32 %v2812_v31, %v2782_v56  ;;  %v5237_v18 = vpop.f32.mrb[92].mxu1  ;;  %v2745_v46 = vadd.f32 %v5225_v48, %v2744_v4 }
 0x7f4   :  { %v5240_v20 = vpop.f32.mrb[93].mxu1  ;;  %v2786_v44 = vmul.f32 %v5237_v18, %v5237_v18 }
 0x7f5   :  { %v2746_v27 = vadd.f32 %v2745_v46, %v5240_v20  ;;  %v2784_v58 = vmul.f32 %v5240_v20, %v5240_v20  ;;  %v2814_v19 = vadd.f32 %v2813_v5, %v2783_v34  ;;  %v5245_v55 = vpop.f32.mrb[94].mxu1 }
 0x7f6   :  { %v5247_v49 = vpop.f32.mrb[95].mxu1  ;;  %v2787_v23 = vmul.f32 %v5245_v55, %v5245_v55 }
 0x7f7   :  { %v2815_v59 = vadd.f32 %v2814_v19, %v2784_v58  ;;  %v2747_v28 = vadd.f32 %v2746_v27, %v5247_v49  ;;  %v2785_v1 = vmul.f32 %v5247_v49, %v5247_v49 }
 0x7f9   :  { %v2748_v40 = vadd.f32 %v5237_v18, %v2747_v28  ;;  %v2816_v9 = vadd.f32 %v2815_v59, %v2785_v1 }
 0x7fb   :  { %v2817_v36 = vadd.f32 %v2816_v9, %v2786_v44  ;;  %v5257_v12 = vpop.f32.mrb[96].mxu1  ;;  %v2749_v7 = vadd.f32 %v5245_v55, %v2748_v40 }
 0x7fc   :  { %v5260_v47 = vpop.f32.mrb[97].mxu1  ;;  %v2790_v38 = vmul.f32 %v5257_v12, %v5257_v12 }
 0x7fd   :  { %v2750_v15 = vadd.f32 %v2749_v7, %v5260_v47  ;;  %v2788_v33 = vmul.f32 %v5260_v47, %v5260_v47  ;;  %v2818_v2 = vadd.f32 %v2817_v36, %v2787_v23  ;;  %v5265_v29 = vpop.f32.mrb[98].mxu1 }
 0x7fe   :  { %v5267_v37 = vpop.f32.mrb[99].mxu1  ;;  %v2791_v52 = vmul.f32 %v5265_v29, %v5265_v29 }
 0x7ff   :  { %v2819_v39 = vadd.f32 %v2818_v2, %v2788_v33  ;;  %v2751_v10 = vadd.f32 %v2750_v15, %v5267_v37  ;;  %v2789_v0 = vmul.f32 %v5267_v37, %v5267_v37 }
 0x801   :  { %v2752_v60 = vadd.f32 %v5257_v12, %v2751_v10  ;;  %v2820_v53 = vadd.f32 %v2819_v39, %v2789_v0 }
 0x803   :  { %v2821_v24 = vadd.f32 %v2820_v53, %v2790_v38  ;;  %v5277_v25 = vpop.f32.mrb[100].mxu1  ;;  %v2753_v42 = vadd.f32 %v5265_v29, %v2752_v60 }
 0x804   :  { %v5280_v22 = vpop.f32.mrb[101].mxu1  ;;  %v2794_v43 = vmul.f32 %v5277_v25, %v5277_v25 }
 0x805   :  { %v2754_v62 = vadd.f32 %v2753_v42, %v5280_v22  ;;  %v2792_v51 = vmul.f32 %v5280_v22, %v5280_v22  ;;  %v2822_v14 = vadd.f32 %v2821_v24, %v2791_v52  ;;  %v5285_v30 = vpop.f32.mrb[102].mxu1 }
 0x806   :  { %v5287_v21 = vpop.f32.mrb[103].mxu1  ;;  %v2795_v56 = vmul.f32 %v5285_v30, %v5285_v30 }
 0x807   :  { %v2823_v26 = vadd.f32 %v2822_v14, %v2792_v51  ;;  %v2755_v61 = vadd.f32 %v2754_v62, %v5287_v21  ;;  %v2793_v45 = vmul.f32 %v5287_v21, %v5287_v21 }
 0x809   :  { %v2756_v32 = vadd.f32 %v5277_v25, %v2755_v61  ;;  %v2824_v11 = vadd.f32 %v2823_v26, %v2793_v45 }
 0x80b   :  { %v2825_v4 = vadd.f32 %v2824_v11, %v2794_v43  ;;  %v5297_v31 = vpop.f32.mrb[104].mxu1  ;;  %v2757_v34 = vadd.f32 %v5285_v30, %v2756_v32 }
 0x80c   :  { %v5300_v5 = vpop.f32.mrb[105].mxu1  ;;  %v2798_v40 = vmul.f32 %v5297_v31, %v5297_v31 }
 0x80d   :  { %v2758_v46 = vadd.f32 %v2757_v34, %v5300_v5  ;;  %v2796_v27 = vmul.f32 %v5300_v5, %v5300_v5  ;;  %v2826_v58 = vadd.f32 %v2825_v4, %v2795_v56  ;;  %v5305_v19 = vpop.f32.mrb[106].mxu1 }
 0x80e   :  { %v5307_v59 = vpop.f32.mrb[107].mxu1  ;;  %v2799_v36 = vmul.f32 %v5305_v19, %v5305_v19 }
 0x80f   :  { %v2827_v28 = vadd.f32 %v2826_v58, %v2796_v27  ;;  %v2759_v1 = vadd.f32 %v2758_v46, %v5307_v59  ;;  %v2797_v44 = vmul.f32 %v5307_v59, %v5307_v59 }
 0x811   :  { %v2760_v9 = vadd.f32 %v5297_v31, %v2759_v1  ;;  %v2828_v23 = vadd.f32 %v2827_v28, %v2797_v44 }
 0x813   :  { %v2829_v7 = vadd.f32 %v2828_v23, %v2798_v40  ;;  %v5317_v15 = vpop.f32.mrb[108].mxu1  ;;  %v2761_v33 = vadd.f32 %v5305_v19, %v2760_v9 }
 0x814   :  { %v5320_v2 = vpop.f32.mrb[109].mxu1  ;;  %v2802_v42 = vmul.f32 %v5317_v15, %v5317_v15 }
 0x815   :  { %v2762_v39 = vadd.f32 %v2761_v33, %v5320_v2  ;;  %v2800_v10 = vmul.f32 %v5320_v2, %v5320_v2  ;;  %v2830_v0 = vadd.f32 %v2829_v7, %v2799_v36  ;;  %v5325_v38 = vpop.f32.mrb[110].mxu1 }
 0x816   :  { %v2721_v60 = vpop.f32.mrb[111].mxu1  ;;  %v2803_v14 = vmul.f32 %v5325_v38, %v5325_v38 }
 0x817   :  { %v2831_v53 = vadd.f32 %v2830_v0, %v2800_v10  ;;  %v2763_v52 = vadd.f32 %v2762_v39, %v2721_v60  ;;  %v2801_v24 = vmul.f32 %v2721_v60, %v2721_v60  ;;  %v2733_v39 = vld [vmem:[#allocation10 + $0x5] sm:$0x1] }
 0x819   :  { %v2764_v62 = vadd.f32 %v5317_v15, %v2763_v52  ;;  %v2832_v51 = vadd.f32 %v2831_v53, %v2801_v24  ;;  %v2734_v53 = vld [vmem:[#allocation10 + $0xb] sm:$0x1] }
 0x81b   :  { %v2765_v26 = vadd.f32 %v5325_v38, %v2764_v62  ;;  %v2833_v61 = vadd.f32 %v2832_v51, %v2802_v42 }
 0x81d   :  { %v2766_v45 = vrot.slane %v2765_v26, 4  ;;  %v2834_v43 = vadd.f32 %v2833_v61, %v2803_v14 }
 0x81f   :  { %v2767_v32 = vadd.f32 %v2766_v45, %v2765_v26  ;;  %v2835_v11 = vrot.slane %v2834_v43, 4 }
 0x821   :  { %v2768_v56 = vrot.slane %v2767_v32, 2  ;;  %v2836_v4 = vadd.f32 %v2835_v11, %v2834_v43 }
 0x823   :  { %v2769_v34 = vadd.f32 %v2768_v56, %v2767_v32  ;;  %v2837_v46 = vrot.slane %v2836_v4, 2 }
 0x825   :  { %v2770_v27 = vrot.slane %v2769_v34, 1  ;;  %v2838_v58 = vadd.f32 %v2837_v46, %v2836_v4 }
 0x827   :  { %v2771_v28 = vadd.f32 %v2770_v27, %v2769_v34  ;;  %v2839_v1 = vrot.slane %v2838_v58, 1 }
 0x829   :  { %v2840_v44 = vadd.f32 %v2839_v1, %v2838_v58  ;;  %v2841_v40 = vmul.f32 0.00390625, %v2771_v28 }
 0x82b   :  { %v2842_v9 = vmul.f32 0.00390625, %v2840_v44  ;;  %v2843_v23 = vmul.f32 %v2841_v40, %v2841_v40 }
 0x82d   :  { %v2844_v36 = vsub.f32 %v2842_v9, %v2843_v23 }
 0x82f   :  { %v2845_v7 = vmax.f32 %v2844_v36, 0.0 }
 0x831   :  { %v2846_v33 = vadd.f32 1e-05, %v2845_v7 }
 0x833   :  { %3939 = vrsqrt.f32 %v2846_v33 }
 0x83d   :  { %v3940_v10 = vpop.eup %3939 }
 0x83e   :  { %v2848_v0 = vmul.f32 %v3940_v10, %v2733_v39 }
 0x840   :  { %v2849_v52 = vmul.f32 %v2848_v0, %v2841_v40  ;;  %v2854_v24 = vrot.slane %v2848_v0, %v4375_v3 }
 0x842   :  { %v2850_v42 = vsub.f32 %v2734_v53, %v2849_v52  ;;  %v2884_v62 = vmul.f32 %v2854_v24, %v2721_v60  ;;  %v2855_v51 = vmul.f32 %v2854_v24, %v5180_v6  ;;  %v2856_v14 = vmul.f32 %v2854_v24, %v5184_v8 }
 0x843   :  { %v2857_v26 = vmul.f32 %v5178_v63, %v2854_v24  ;;  %v2858_v61 = vmul.f32 %v5182_v17, %v2854_v24  ;;  %v2859_v45 = vmul.f32 %v2854_v24, %v5200_v35  ;;  %v2860_v43 = vmul.f32 %v2854_v24, %v5207_v54 }
 0x844   :  { %v2890_v32 = vrot.slane %v2850_v42, %v4375_v3  ;;  %v2861_v11 = vmul.f32 %v5197_v41, %v2854_v24  ;;  %v2862_v56 = vmul.f32 %v5205_v50, %v2854_v24  ;;  %v2863_v60 = vmul.f32 %v2854_v24, %v5220_v13 }
 0x845   :  { %v2864_v6 = vmul.f32 %v2854_v24, %v5227_v16  ;;  %v2865_v8 = vmul.f32 %v5217_v57, %v2854_v24  ;;  %v2866_v63 = vmul.f32 %v5225_v48, %v2854_v24  ;;  %v2867_v17 = vmul.f32 %v2854_v24, %v5240_v20 }
 0x846   :  { %v5348_v4 = vadd.f32 %v2890_v32, %v2884_v62  ;;  %v2868_v35 = vmul.f32 %v2854_v24, %v5247_v49  ;;  %v2869_v3 = vmul.f32 %v5237_v18, %v2854_v24  ;;  %v2870_v41 = vmul.f32 %v5245_v55, %v2854_v24 }
 0x847   :  { %v2871_v50 = vmul.f32 %v2854_v24, %v5260_v47  ;;  %v2872_v54 = vmul.f32 %v2854_v24, %v5267_v37  ;;  %v2873_v13 = vmul.f32 %v5257_v12, %v2854_v24  ;;  %v2874_v57 = vmul.f32 %v5265_v29, %v2854_v24 }
 0x848   :  { %v2952_v48 = vmax.f32 %v5348_v4, 0.0  ;;  %v2875_v16 = vmul.f32 %v2854_v24, %v5280_v22  ;;  %v2876_v20 = vmul.f32 %v2854_v24, %v5287_v21  ;;  %v2877_v49 = vmul.f32 %v5277_v25, %v2854_v24 }
 0x849   :  { %v2878_v18 = vmul.f32 %v5285_v30, %v2854_v24  ;;  %v2879_v55 = vmul.f32 %v2854_v24, %v5300_v5  ;;  %v2880_v47 = vmul.f32 %v2854_v24, %v5307_v59  ;;  %v2881_v37 = vmul.f32 %v5297_v31, %v2854_v24 }
 0x84a   :  { %v2882_v12 = vmul.f32 %v5305_v19, %v2854_v24  ;;  %v2883_v29 = vmul.f32 %v2854_v24, %v5320_v2  ;;  %v2885_v34 = vmul.f32 %v5317_v15, %v2854_v24  ;;  %v2886_v22 = vmul.f32 %v5325_v38, %v2854_v24 }
 0x84b   :  { %v2891_v46 = vadd.f32 %v2890_v32, %v2855_v51  ;;  %v2892_v21 = vadd.f32 %v2890_v32, %v2856_v14  ;;  %v2893_v27 = vadd.f32 %v2890_v32, %v2857_v26  ;;  %v2894_v25 = vadd.f32 %v2890_v32, %v2858_v61 }
 0x84c   :  { %v2895_v58 = vadd.f32 %v2890_v32, %v2859_v45  ;;  %v2896_v30 = vadd.f32 %v2890_v32, %v2860_v43  ;;  %v2897_v28 = vadd.f32 %v2890_v32, %v2861_v11  ;;  %v2898_v5 = vadd.f32 %v2890_v32, %v2862_v56 }
 0x84d   :  { %v2899_v1 = vadd.f32 %v2890_v32, %v2863_v60  ;;  %v2900_v59 = vadd.f32 %v2890_v32, %v2864_v6  ;;  %v2901_v44 = vadd.f32 %v2890_v32, %v2865_v8  ;;  %v2902_v31 = vadd.f32 %v2890_v32, %v2866_v63 }
 0x84e   :  { %v2903_v40 = vadd.f32 %v2890_v32, %v2867_v17  ;;  %v2904_v19 = vadd.f32 %v2890_v32, %v2868_v35  ;;  %v2905_v9 = vadd.f32 %v2890_v32, %v2869_v3  ;;  %v2906_v2 = vadd.f32 %v2890_v32, %v2870_v41 }
 0x84f   :  { %v2907_v23 = vadd.f32 %v2890_v32, %v2871_v50  ;;  %v2908_v15 = vadd.f32 %v2890_v32, %v2872_v54  ;;  %v2909_v36 = vadd.f32 %v2890_v32, %v2873_v13  ;;  %v2910_v38 = vadd.f32 %v2890_v32, %v2874_v57 }
 0x850   :  { %v2911_v7 = vadd.f32 %v2890_v32, %v2875_v16  ;;  %v2912_v33 = vadd.f32 %v2890_v32, %v2876_v20  ;;  %v2913_v39 = vadd.f32 %v2890_v32, %v2877_v49  ;;  %v2914_v10 = vadd.f32 %v2890_v32, %v2878_v18 }
 0x851   :  { %v2915_v0 = vadd.f32 %v2890_v32, %v2879_v55  ;;  %v2916_v53 = vadd.f32 %v2890_v32, %v2880_v47  ;;  %v2917_v52 = vadd.f32 %v2890_v32, %v2881_v37  ;;  %v2918_v24 = vadd.f32 %v2890_v32, %v2882_v12 }
 0x852   :  { %v2919_v42 = vadd.f32 %v2890_v32, %v2883_v29  ;;  %v2921_v62 = vadd.f32 %v2890_v32, %v2885_v34  ;;  %v2922_v51 = vadd.f32 %v2890_v32, %v2886_v22  ;;  %v2925_v14 = vmax.f32 %v2893_v27, 0.0 }
 0x853   :  { %v2926_v26 = vmax.f32 %v2894_v25, 0.0  ;;  %v2923_v61 = vmax.f32 %v2891_v46, 0.0  ;;  %v2924_v45 = vmax.f32 %v2892_v21, 0.0  ;;  %v2927_v43 = vmax.f32 %v2895_v58, 0.0 }
 0x854   :  { %v2928_v11 = vmax.f32 %v2896_v30, 0.0  ;;  %v2929_v56 = vmax.f32 %v2897_v28, 0.0  ;;  %v2930_v60 = vmax.f32 %v2898_v5, 0.0  ;;  %v2931_v6 = vmax.f32 %v2899_v1, 0.0 }
 0x855   :  { %v2956_v8 = vpack.c.bf16 %v2926_v26, %v2925_v14  ;;  %v2955_v63 = vpack.c.bf16 %v2924_v45, %v2923_v61  ;;  %v2932_v17 = vmax.f32 %v2900_v59, 0.0  ;;  %v2933_v35 = vmax.f32 %v2901_v44, 0.0 }
 0x856   :  { %v2957_v3 = vpack.c.bf16 %v2928_v11, %v2927_v43  ;;  %v2958_v41 = vpack.c.bf16 %v2930_v60, %v2929_v56  ;;  %v2934_v50 = vmax.f32 %v2902_v31, 0.0  ;;  %v2935_v54 = vmax.f32 %v2903_v40, 0.0 }
 0x857   :  { %3799 = vmatprep.mubr.bf16.mxu0 %v2955_v63  ;;  %v2959_v13 = vpack.c.bf16 %v2932_v17, %v2931_v6  ;;  %v2936_v32 = vmax.f32 %v2904_v19, 0.0  ;;  %v2937_v57 = vmax.f32 %v2905_v9, 0.0  ;;  %v2938_v16 = vmax.f32 %v2906_v2, 0.0 }
 0x858   :  { %3800 = vmatmul.mubr.bf16.vlgmr.msra.gmra.mrb[80].mxu0 %v2956_v8  ;;  %v2960_v20 = vpack.c.bf16 %v2934_v50, %v2933_v35  ;;  %v2939_v49 = vmax.f32 %v2907_v23, 0.0  ;;  %v2940_v18 = vmax.f32 %v2908_v15, 0.0  ;;  %v2941_v55 = vmax.f32 %v2909_v36, 0.0  ;;  %v5374_v23 = vld [vmem:[%s5428_s5] ss:$0 sm:$0xff]  ;;  %s4090_s5 = smov [#allocation11]  }
 0x859   :  { %3803 = vmatprep.mubr.bf16.mxu0 %v2957_v3  ;;  %v2961_v47 = vpack.c.bf16 %v2936_v32, %v2935_v54  ;;  %v2962_v37 = vpack.c.bf16 %v2938_v16, %v2937_v57  ;;  %v2942_v12 = vmax.f32 %v2910_v38, 0.0  ;;  %v2943_v29 = vmax.f32 %v2911_v7, 0.0  ;;  %s3240_s3 = sshll.u32 %s4090_s5, 4  ;;  %s3241_s3 = int_to_ptr.vmem [resolvable:$true] %s3240_s3 }
 0x85a   :  { %v2963_v34 = vpack.c.bf16 %v2940_v18, %v2939_v49  ;;  %v2944_v22 = vmax.f32 %v2912_v33, 0.0  ;;  %v2945_v46 = vmax.f32 %v2913_v39, 0.0  ;;  %v2946_v21 = vmax.f32 %v2914_v10, 0.0  ;;  %s4051_s24 = scalar_lea.vmem %s3241_s3, 4096  ;;  %p4056_p13 = scmp.lt.s32.totalorder %s3241_s3, %s3241_s3 }
 0x85b   :  { %v2964_v27 = vpack.c.bf16 %v2942_v12, %v2941_v55  ;;  %v2947_v25 = vmax.f32 %v2915_v0, 0.0  ;;  %v2948_v58 = vmax.f32 %v2916_v53, 0.0  ;;  %v2949_v30 = vmax.f32 %v2917_v52, 0.0  ;;  %p4052_p12 = scmp.ne.s32.totalorder %s3241_s3, %s4051_s24  ;;  %p4057_p0 = scmp.lt.s32.totalorder %s4051_s24, %s4051_s24 }
 0x85c   :  { %v2965_v28 = vpack.c.bf16 %v2944_v22, %v2943_v29  ;;  %v2966_v5 = vpack.c.bf16 %v2946_v21, %v2945_v46  ;;  %v2950_v1 = vmax.f32 %v2918_v24, 0.0  ;;  %v2951_v59 = vmax.f32 %v2919_v42, 0.0 }
 0x85d   :  { %v2967_v44 = vpack.c.bf16 %v2948_v58, %v2947_v25  ;;  %v2953_v31 = vmax.f32 %v2921_v62, 0.0  ;;  %v2954_v40 = vmax.f32 %v2922_v51, 0.0  ;;  %p4058_p1 = por %p4057_p0, %p4056_p13 }
 0x85e   :  { %v2968_v19 = vpack.c.bf16 %v2950_v1, %v2949_v30  ;;  %v2969_v9 = vpack.c.bf16 %v2952_v48, %v2951_v59 }
 0x85f   :  { %v2970_v2 = vpack.c.bf16 %v2954_v40, %v2953_v31  ;;  %p4059_p2 = pnand %p4058_p1, %p4052_p12 }
 0x860   :  { %3804 = vmatmul.mubr.bf16.gmra.mrb[84].mxu0 %v2958_v41 }
 0x861   :  { %3807 = vmatprep.mubr.bf16.mxu0 %v2959_v13 }
 0x868   :  { %3808 = vmatmul.mubr.bf16.gmra.mrb[88].mxu0 %v2960_v20 }
 0x869   :  { %3811 = vmatprep.mubr.bf16.mxu0 %v2961_v47 }
 0x870   :  { %3812 = vmatmul.mubr.bf16.gmra.mrb[92].mxu0 %v2962_v37 }
 0x871   :  { %3815 = vmatprep.mubr.bf16.mxu0 %v2963_v34 }
 0x878   :  { %3816 = vmatmul.mubr.bf16.gmra.mrb[96].mxu0 %v2964_v27 }
 0x879   :  { %3819 = vmatprep.mubr.bf16.mxu0 %v2965_v28 }
 0x880   :  { %3820 = vmatmul.mubr.bf16.gmra.mrb[100].mxu0 %v2966_v5 }
 0x881   :  { %3823 = vmatprep.mubr.bf16.mxu0 %v2967_v44 }
 0x888   :  { %3824 = vmatmul.mubr.bf16.gmra.mrb[104].mxu0 %v2968_v19 }
 0x889   :  { %3827 = vmatprep.mubr.bf16.mxu0 %v2969_v9 }
 0x890   :  { %3828 = vmatmul.mubr.bf16.gmra.mrb[108].mxu0 %v2970_v2 }
 0x92b   :  { %v3801_v4 = vpop.f32.mrb[80].mxu0 }
 0x92c   :  { %v3085_v48 = vadd.f32 %v3801_v4, %v5374_v23  ;;  %v3076_v15 = vpop.f32.mrb[81].mxu0 }
 0x92d   :  { %v3077_v36 = vadd.f32 %v5374_v23, %v3076_v15  ;;  %v3802_v38 = vpop.f32.mrb[82].mxu0 }
 0x92e   :  { %3205 = vst [vmem:[#allocation11 + $0x10] sm:$0xff] %v3085_v48  ;;  %v3088_v7 = vadd.f32 %v3802_v38, %v5374_v23  ;;  %v3079_v33 = vpop.f32.mrb[83].mxu0 }
 0x92f   :  { %3203 = vst [vmem:[#allocation11] sm:$0xff] %v3077_v36  ;;  %v3080_v39 = vadd.f32 %v5374_v23, %v3079_v33 }
 0x930   :  { %3206 = vst [vmem:[#allocation11 + $0x18] sm:$0xff] %v3088_v7 }
 0x931   :  { %3204 = vst [vmem:[#allocation11 + $0x8] sm:$0xff] %v3080_v39 }
 0x933   :  { %v3805_v10 = vpop.f32.mrb[84].mxu0 }
 0x934   :  { %v3101_v0 = vadd.f32 %v3805_v10, %v5374_v23  ;;  %v3092_v53 = vpop.f32.mrb[85].mxu0 }
 0x935   :  { %v3093_v52 = vadd.f32 %v5374_v23, %v3092_v53  ;;  %v3806_v24 = vpop.f32.mrb[86].mxu0 }
 0x936   :  { %3209 = vst [vmem:[#allocation11 + $0x30] sm:$0xff] %v3101_v0  ;;  %v3104_v42 = vadd.f32 %v3806_v24, %v5374_v23  ;;  %v3095_v62 = vpop.f32.mrb[87].mxu0 }
 0x937   :  { %3207 = vst [vmem:[#allocation11 + $0x20] sm:$0xff] %v3093_v52  ;;  %v3096_v51 = vadd.f32 %v5374_v23, %v3095_v62 }
 0x938   :  { %3210 = vst [vmem:[#allocation11 + $0x38] sm:$0xff] %v3104_v42 }
 0x939   :  { %3208 = vst [vmem:[#allocation11 + $0x28] sm:$0xff] %v3096_v51 }
 0x93b   :  { %v3809_v14 = vpop.f32.mrb[88].mxu0 }
 0x93c   :  { %v3117_v26 = vadd.f32 %v3809_v14, %v5374_v23  ;;  %v3108_v61 = vpop.f32.mrb[89].mxu0 }
 0x93d   :  { %v3109_v45 = vadd.f32 %v5374_v23, %v3108_v61  ;;  %v3810_v43 = vpop.f32.mrb[90].mxu0 }
 0x93e   :  { %3213 = vst [vmem:[#allocation11 + $0x50] sm:$0xff] %v3117_v26  ;;  %v3120_v11 = vadd.f32 %v3810_v43, %v5374_v23  ;;  %v3111_v56 = vpop.f32.mrb[91].mxu0 }
 0x93f   :  { %3211 = vst [vmem:[#allocation11 + $0x40] sm:$0xff] %v3109_v45  ;;  %v3112_v60 = vadd.f32 %v5374_v23, %v3111_v56 }
 0x940   :  { %3214 = vst [vmem:[#allocation11 + $0x58] sm:$0xff] %v3120_v11 }
 0x941   :  { %3212 = vst [vmem:[#allocation11 + $0x48] sm:$0xff] %v3112_v60 }
 0x943   :  { %v3813_v6 = vpop.f32.mrb[92].mxu0 }
 0x944   :  { %v3133_v8 = vadd.f32 %v3813_v6, %v5374_v23  ;;  %v3124_v63 = vpop.f32.mrb[93].mxu0 }
 0x945   :  { %v3125_v17 = vadd.f32 %v5374_v23, %v3124_v63  ;;  %v3814_v35 = vpop.f32.mrb[94].mxu0 }
 0x946   :  { %3217 = vst [vmem:[#allocation11 + $0x70] sm:$0xff] %v3133_v8  ;;  %v3136_v3 = vadd.f32 %v3814_v35, %v5374_v23  ;;  %v3127_v41 = vpop.f32.mrb[95].mxu0 }
 0x947   :  { %3215 = vst [vmem:[#allocation11 + $0x60] sm:$0xff] %v3125_v17  ;;  %v3128_v50 = vadd.f32 %v5374_v23, %v3127_v41 }
 0x948   :  { %3218 = vst [vmem:[#allocation11 + $0x78] sm:$0xff] %v3136_v3 }
 0x949   :  { %3216 = vst [vmem:[#allocation11 + $0x68] sm:$0xff] %v3128_v50 }
 0x94b   :  { %v3817_v54 = vpop.f32.mrb[96].mxu0 }
 0x94c   :  { %v3149_v13 = vadd.f32 %v3817_v54, %v5374_v23  ;;  %v3140_v32 = vpop.f32.mrb[97].mxu0 }
 0x94d   :  { %v3141_v57 = vadd.f32 %v5374_v23, %v3140_v32  ;;  %v3818_v16 = vpop.f32.mrb[98].mxu0 }
 0x94e   :  { %3221 = vst [vmem:[#allocation11 + $0x90] sm:$0xff] %v3149_v13  ;;  %v3152_v20 = vadd.f32 %v3818_v16, %v5374_v23  ;;  %v3143_v49 = vpop.f32.mrb[99].mxu0 }
 0x94f   :  { %3219 = vst [vmem:[#allocation11 + $0x80] sm:$0xff] %v3141_v57  ;;  %v3144_v18 = vadd.f32 %v5374_v23, %v3143_v49 }
 0x950   :  { %3222 = vst [vmem:[#allocation11 + $0x98] sm:$0xff] %v3152_v20 }
 0x951   :  { %3220 = vst [vmem:[#allocation11 + $0x88] sm:$0xff] %v3144_v18 }
 0x953   :  { %v3821_v55 = vpop.f32.mrb[100].mxu0 }
 0x954   :  { %v3165_v47 = vadd.f32 %v3821_v55, %v5374_v23  ;;  %v3156_v37 = vpop.f32.mrb[101].mxu0 }
 0x955   :  { %v3157_v12 = vadd.f32 %v5374_v23, %v3156_v37  ;;  %v3822_v29 = vpop.f32.mrb[102].mxu0 }
 0x956   :  { %3225 = vst [vmem:[#allocation11 + $0xb0] sm:$0xff] %v3165_v47  ;;  %v3168_v34 = vadd.f32 %v3822_v29, %v5374_v23  ;;  %v3159_v22 = vpop.f32.mrb[103].mxu0 }
 0x957   :  { %3223 = vst [vmem:[#allocation11 + $0xa0] sm:$0xff] %v3157_v12  ;;  %v3160_v46 = vadd.f32 %v5374_v23, %v3159_v22 }
 0x958   :  { %3226 = vst [vmem:[#allocation11 + $0xb8] sm:$0xff] %v3168_v34 }
 0x959   :  { %3224 = vst [vmem:[#allocation11 + $0xa8] sm:$0xff] %v3160_v46 }
 0x95b   :  { %v3825_v21 = vpop.f32.mrb[104].mxu0 }
 0x95c   :  { %v3181_v27 = vadd.f32 %v3825_v21, %v5374_v23  ;;  %v3172_v25 = vpop.f32.mrb[105].mxu0 }
 0x95d   :  { %v3173_v58 = vadd.f32 %v5374_v23, %v3172_v25  ;;  %v3826_v30 = vpop.f32.mrb[106].mxu0 }
 0x95e   :  { %3229 = vst [vmem:[#allocation11 + $0xd0] sm:$0xff] %v3181_v27  ;;  %v3184_v28 = vadd.f32 %v3826_v30, %v5374_v23  ;;  %v3175_v5 = vpop.f32.mrb[107].mxu0 }
 0x95f   :  { %3227 = vst [vmem:[#allocation11 + $0xc0] sm:$0xff] %v3173_v58  ;;  %v3176_v1 = vadd.f32 %v5374_v23, %v3175_v5 }
 0x960   :  { %3230 = vst [vmem:[#allocation11 + $0xd8] sm:$0xff] %v3184_v28 }
 0x961   :  { %3228 = vst [vmem:[#allocation11 + $0xc8] sm:$0xff] %v3176_v1 }
 0x963   :  { %v3829_v59 = vpop.f32.mrb[108].mxu0 }
 0x964   :  { %v3197_v44 = vadd.f32 %v3829_v59, %v5374_v23  ;;  %v3188_v31 = vpop.f32.mrb[109].mxu0 }
 0x965   :  { %v3189_v40 = vadd.f32 %v5374_v23, %v3188_v31  ;;  %v3830_v19 = vpop.f32.mrb[110].mxu0 }
 0x966   :  { %3233 = vst [vmem:[#allocation11 + $0xf0] sm:$0xff] %v3197_v44  ;;  %v3200_v9 = vadd.f32 %v3830_v19, %v5374_v23  ;;  %v3191_v2 = vpop.f32.mrb[111].mxu0 }
 0x967   :  { %3231 = vst [vmem:[#allocation11 + $0xe0] sm:$0xff] %v3189_v40  ;;  %v3192_v4 = vadd.f32 %v5374_v23, %v3191_v2 }
 0x968   :  { %3234 = vst [vmem:[#allocation11 + $0xf8] sm:$0xff] %v3200_v9 }
 0x969   :  { %3232 = vst [vmem:[#allocation11 + $0xe8] sm:$0xff] %v3192_v4 }
 0x96a   :  { %4062 = shalt.err (!%p4059_p2)
}
 0x96b   :  { %s4063_s14 = scalar_lea.hbm %s5429_s6, 4096 }
 0x96c   :  { %p4064_p3 = scmp.ne.s32.totalorder %s5429_s6, %s4063_s14  ;;  %p4067_p4 = scmp.lt.u32.totalorder %s4063_s14, %s5429_s6 }
 0x96e   :  { %p4069_p5 = pnand %p4067_p4, %p4064_p3 }
 0x970   :  { %4072 = shalt.err (!%p4069_p5)
}
 0x971   :  { %3246 = dma.vmem_to_hbm [thread:$0]  %s3241_s3, 4096, %s5429_s6, [#allocation4], %s4088_s2, %s4088_s2, %s4089_s9  }
 0x972   :  { %4079 = dma.done.wait [#allocation4], 4096  }
 0x973   :  { %4080 = vsyncadd [#allocation4], 4294963200 }
 0x974   :  { %3250 = vsyncpa [#allocation3], 1 }
 0x975   :  { %3251 = vsyncpa [#allocation6], 1 }
 0x976   :  { %3252 = vsyncpa [#allocation9], 1 }
 0x977   :  { %3253 = vsyncpa [#allocation4], 1 }

</bundles_post_ra>
